<compile_context>
chip_gen: v5e
topology: v5e:2x2
jax: 0.10.0
libtpu: 0.0.40
codegen_flags: <defaults>
</compile_context>

<pallas_src>
import functools

import numpy as np
import jax
import jax.numpy as jnp
from jax.experimental import pallas as pl
from jax.experimental.pallas import tpu as pltpu

FC_N = 120 * 120                                   # 14400
FC_TILE_N = 3840                                   # multiple of 128 -> lane-dense stores
FC_N_PAD = ((FC_N + FC_TILE_N - 1) // FC_TILE_N) * FC_TILE_N   # 15360


# ----------------------------------------------------------------------------
# Pallas kernels
# ----------------------------------------------------------------------------
def _features_kernel(cols1_ref, w1_ref, b1_ref, sel_ref, w2_ref, b2_ref, g_ref,
                     *, r1, rq, batch):
    """Fused conv1+ReLU -> pool1 -> conv2+ReLU -> pool2 -> GAP, all in VMEM."""
    c2o = w2_ref.shape[-1]

    # conv1 + bias + ReLU; im2col rows are ordered (pool1 phase, b, po, qo).
    h1 = jnp.dot(cols1_ref[...], w1_ref[...], preferred_element_type=jnp.float32)
    h1 = jnp.maximum(h1 + b1_ref[...], 0.0)                       # (4*r1, 32)

    # maxpool1 2x2 == elementwise max of the 4 contiguous phase blocks.
    p1 = jnp.maximum(jnp.maximum(h1[0:r1], h1[r1:2 * r1]),
                     jnp.maximum(h1[2 * r1:3 * r1], h1[3 * r1:4 * r1]))  # (r1, 32)

    # conv2: 9 taps; per tap a 0/1 gather matmul then the tap-weight matmul.
    acc = jnp.zeros((4 * rq, c2o), jnp.float32)
    for t in range(9):                                            # static unroll
        xt = jnp.dot(sel_ref[t], p1, preferred_element_type=jnp.float32)        # (4*rq, 32)
        acc = acc + jnp.dot(xt, w2_ref[t], preferred_element_type=jnp.float32)  # (4*rq, 64)
    h2 = jnp.maximum(acc + b2_ref[...], 0.0)

    # maxpool2 2x2 over the 2x2 conv2 map == max of the 4 quadrant row blocks;
    # GAP over the remaining 1x1 spatial map is the identity.
    p2 = jnp.maximum(jnp.maximum(h2[0:rq], h2[rq:2 * rq]),
                     jnp.maximum(h2[2 * rq:3 * rq], h2[3 * rq:4 * rq]))  # (rq, 64)
    g_ref[...] = p2[0:batch]                                      # (B, 64)


def _fc_kernel(g_ref, w_ref, b_ref, o_ref):
    """One lane-dense N tile of the final Linear: out = g @ w + b."""
    o_ref[...] = (jnp.dot(g_ref[...], w_ref[...],
                          preferred_element_type=jnp.float32) + b_ref[...])


# ----------------------------------------------------------------------------
# Glue: im2col for conv1 (rows pre-ordered by pool phase) + conv2 gather matrix
# ----------------------------------------------------------------------------
def _conv1_pool_cols(x):
    """NCHW x -> im2col for conv1 (k=3, s=2, p=1); row = ((dh*2+dw)*B + b)*P1h*P1w
    + po*P1w + qo where conv1 output pos is (2*po+dh, 2*qo+dw); cols = (ci,kh,kw)."""
    B, C, H, W = x.shape
    Ho = (H + 2 - 3) // 2 + 1
    Wo = (W + 2 - 3) // 2 + 1
    assert Ho % 2 == 0 and Wo % 2 == 0, "pool1 needs an even conv1 output size"
    # TODO(synk): PyTorch MaxPool2d floors odd spatial sizes; only even handled.
    xp = jnp.pad(x, ((0, 0), (0, 0), (1, 1), (1, 1)))
    patches = []
    for kh in range(3):
        for kw in range(3):
            patches.append(xp[:, :, kh:kh + 2 * Ho - 1:2, kw:kw + 2 * Wo - 1:2])
    p = jnp.stack(patches, axis=0).reshape(3, 3, B, C, Ho, Wo)
    p = p.transpose(2, 4, 5, 3, 0, 1)                      # (B, Ho, Wo, C, kh, kw)
    cols = p.reshape(B, Ho // 2, 2, Wo // 2, 2, C * 9)     # (b, po, dh, qo, dw, K)
    cols = cols.transpose(2, 4, 0, 1, 3, 5)                # (dh, dw, b, po, qo, K)
    return cols.reshape(4 * B * (Ho // 2) * (Wo // 2), C * 9), Ho // 2, Wo // 2


def _conv2_select(batch, p1h, p1w, rq):
    """One-hot gather matrices (compile-time constant): for tap t=(kh,kw), row
    q*rq+b selects the pool1 row feeding conv2 output (ho2,wo2)=(q//2,q%2) for
    batch b (all-zero row if it falls in conv2's zero padding or b >= batch)."""
    r1 = batch * p1h * p1w
    sel = np.zeros((9, 4 * rq, r1), np.float32)
    for kh in range(3):
        for kw in range(3):
            t = kh * 3 + kw
            for ho2 in range(2):
                for wo2 in range(2):
                    q = ho2 * 2 + wo2
                    y = 2 * ho2 + kh - 1
                    x = 2 * wo2 + kw - 1
                    if 0 <= y < p1h and 0 <= x < p1w:
                        for b in range(batch):
                            sel[t, q * rq + b, b * p1h * p1w + y * p1w + x] = 1.0
    return jnp.asarray(sel)


# ----------------------------------------------------------------------------
# Parameter preparation (one-time, OUTSIDE jit — no per-forward transposes)
# ----------------------------------------------------------------------------
def prepare_params(params):
    c1o = params["conv1_w"].shape[0]                 # 32
    c2o = params["conv2_w"].shape[0]                 # 64
    w1 = params["conv1_w"].reshape(c1o, -1).T.astype(jnp.float32)      # (162, 32)
    b1 = params["conv1_b"].reshape(1, c1o).astype(jnp.float32)
    w2 = params["conv2_w"].transpose(2, 3, 1, 0).astype(jnp.float32)   # (kh, kw, ci, co)
    w2 = w2.reshape(9, w2.shape[2], c2o)                               # (9, 32, 64)
    b2 = params["conv2_b"].reshape(1, c2o).astype(jnp.float32)
    fc_w = params["fc1_w"].T.astype(jnp.float32)                       # (64, 14400)
    fc_w = jnp.pad(fc_w, ((0, 0), (0, FC_N_PAD - FC_N)))               # (64, 15360)
    fc_b = jnp.pad(params["fc1_b"].astype(jnp.float32),
                   (0, FC_N_PAD - FC_N)).reshape(1, FC_N_PAD)
    return {"w1": w1, "b1": b1, "w2": w2, "b2": b2, "fc_w": fc_w, "fc_b": fc_b}


# ----------------------------------------------------------------------------
# SOLUSConvNet forward
# ----------------------------------------------------------------------------
def solus_forward(x, prep):
    B = x.shape[0]
    cols1, p1h, p1w = _conv1_pool_cols(x)            # (4*B*p1h*p1w, 162)
    ho2 = (p1h + 2 - 3) // 2 + 1
    wo2 = (p1w + 2 - 3) // 2 + 1
    assert ho2 == 2 and wo2 == 2, "fused path expects a 16x16-style input"
    # TODO(synk): generalize conv2/pool2/GAP for other input spatial sizes.

    r1 = B * p1h * p1w                               # rows after pool1
    rq = ((B + 7) // 8) * 8                          # 8-aligned pool2 phase block
    sel = _conv2_select(B, p1h, p1w, rq)             # trace-time constant

    # Fused feature extractor: one launch, all activations stay in VMEM.
    # (For much larger batches, tile the cols1 M dimension with a grid instead
    #  of a single whole-array block — matters on v7x's smaller VMEM.)
    g = pl.pallas_call(
        functools.partial(_features_kernel, r1=r1, rq=rq, batch=B),
        out_shape=jax.ShapeDtypeStruct((B, 64), jnp.float32),
    )(cols1, prep["w1"], prep["b1"], sel, prep["w2"], prep["b2"])

    # fc1: tiled over N with lane-dense 3840-wide blocks; "parallel" grid axis
    # lets v7x's two TensorCores split the memory-bound weight stream.
    n_tiles = FC_N_PAD // FC_TILE_N
    out_pad = pl.pallas_call(
        _fc_kernel,
        grid=(n_tiles,),
        out_shape=jax.ShapeDtypeStruct((B, FC_N_PAD), jnp.float32),
        in_specs=[
            pl.BlockSpec((B, 64), lambda j: (0, 0)),           # resident
            pl.BlockSpec((64, FC_TILE_N), lambda j: (0, j)),   # streamed weight
            pl.BlockSpec((1, FC_TILE_N), lambda j: (0, j)),    # streamed bias
        ],
        out_specs=pl.BlockSpec((B, FC_TILE_N), lambda j: (0, j)),
        compiler_params=pltpu.CompilerParams(
            dimension_semantics=("parallel",)),
    )(g, prep["fc_w"], prep["fc_b"])

    return out_pad[:, :FC_N].reshape(B, 120, 120)


# ----------------------------------------------------------------------------
# Deterministic parameter init (shapes/layout from the PyTorch module)
# ----------------------------------------------------------------------------
def init_params(key):
    ks = jax.random.split(key, 6)

    def u(k, shape, fan_in):
        bound = 1.0 / jnp.sqrt(jnp.float32(fan_in))
        return jax.random.uniform(k, shape, jnp.float32, -bound, bound)

    return {
        "conv1_w": u(ks[0], (32, 18, 3, 3), 18 * 9),
        "conv1_b": u(ks[1], (32,), 18 * 9),
        "conv2_w": u(ks[2], (64, 32, 3, 3), 32 * 9),
        "conv2_b": u(ks[3], (64,), 32 * 9),
        "fc1_w": u(ks[4], (120 * 120, 64), 64),
        "fc1_b": u(ks[5], (120 * 120,), 64),
    }


if __name__ == "__main__":
    key = jax.random.PRNGKey(0)
    kx, kp = jax.random.split(key)
    # NCHW input consistent with the module: 18 channels, 16x16 spatial, B=2.
    x = jax.random.normal(kx, (2, 18, 16, 16), jnp.float32)
    params = init_params(kp)
    prep = prepare_params(params)          # one-time layout prep, outside jit

    out = jax.jit(solus_forward)(x, prep)
    out = jax.block_until_ready(out)
    assert out.shape == (2, 120, 120), out.shape
    assert out.dtype == jnp.float32
    print("KERNEL_OK")
</pallas_src>

<mosaic_0001>
module attributes {stable_mosaic.version = 11 : i64} {
  func.func @_fc_kernel(%arg0: i32, %arg1: memref<2x64xf32, #tpu.memory_space<vmem>>, %arg2: memref<64x3840xf32, #tpu.memory_space<vmem>>, %arg3: memref<1x3840xf32, #tpu.memory_space<vmem>>, %arg4: memref<2x3840xf32, #tpu.memory_space<vmem>>) attributes {dimension_semantics = [#tpu.dimension_semantics<parallel>], iteration_bounds = array<i64: 4>, scalar_prefetch = 0 : i64, scratch_operands = 0 : i64, tpu.core_type = #tpu.core_type<tc>, window_params = [{pipeline_mode = #tpu.pipeline_mode<synchronous>, transform_indices = @transform_0, window_bounds = array<i64: 2, 64>}, {transform_indices = @transform_1, window_bounds = array<i64: 64, 3840>}, {transform_indices = @transform_2, window_bounds = array<i64: 1, 3840>}, {transform_indices = @transform_3, window_bounds = array<i64: 2, 3840>}]} {
    %c0 = arith.constant 0 : index
    %c0_0 = arith.constant 0 : index
    %0 = vector.load %arg1[%c0, %c0_0] : memref<2x64xf32, #tpu.memory_space<vmem>>, vector<2x64xf32>
    %c0_1 = arith.constant 0 : index
    %c0_2 = arith.constant 0 : index
    %1 = vector.load %arg2[%c0_1, %c0_2] : memref<64x3840xf32, #tpu.memory_space<vmem>>, vector<64x3840xf32>
    %cst = arith.constant dense<0.000000e+00> : vector<2x3840xf32>
    %2 = tpu.matmul %0, %1, %cst {dimension_numbers = #tpu.dot_dimension_numbers<[1], [0], [0], [1], [0, 0, 1, 1], [], []>} : vector<2x64xf32>, vector<64x3840xf32>, vector<2x3840xf32> -> vector<2x3840xf32>
    %c0_3 = arith.constant 0 : index
    %c0_4 = arith.constant 0 : index
    %3 = vector.load %arg3[%c0_3, %c0_4] : memref<1x3840xf32, #tpu.memory_space<vmem>>, vector<1x3840xf32>
    %4 = vector.broadcast %3 : vector<1x3840xf32> to vector<2x3840xf32>
    %5 = arith.addf %2, %4 : vector<2x3840xf32>
    %c0_5 = arith.constant 0 : index
    %c0_6 = arith.constant 0 : index
    %6 = vector.load %arg4[%c0_5, %c0_6] : memref<2x3840xf32, #tpu.memory_space<vmem>>, vector<2x3840xf32>
    tpu.vector_store %arg4[%c0_5, %c0_6], %5 {strides = array<i32>} : memref<2x3840xf32, #tpu.memory_space<vmem>>, vector<2x3840xf32>,
    return
  }
  func.func @transform_0(%arg0: i32) -> (i32, i32) {
    %c0_i32 = arith.constant 0 : i32
    %c0_i32_0 = arith.constant 0 : i32
    %c0_i32_1 = arith.constant 0 : i32
    return %c0_i32, %c0_i32_0 : i32, i32
  }
  func.func @transform_1(%arg0: i32) -> (i32, i32) {
    %c0_i32 = arith.constant 0 : i32
    %c0_i32_0 = arith.constant 0 : i32
    return %c0_i32, %arg0 : i32, i32
  }
  func.func @transform_2(%arg0: i32) -> (i32, i32) {
    %c0_i32 = arith.constant 0 : i32
    %c0_i32_0 = arith.constant 0 : i32
    return %c0_i32, %arg0 : i32, i32
  }
  func.func @transform_3(%arg0: i32) -> (i32, i32) {
    %c0_i32 = arith.constant 0 : i32
    %c0_i32_0 = arith.constant 0 : i32
    return %c0_i32, %arg0 : i32, i32
  }
}

module attributes {stable_mosaic.version = 11 : i64} {
  func.func @_features_kernel(%arg0: memref<128x162xf32, #tpu.memory_space<vmem>>, %arg1: memref<162x32xf32, #tpu.memory_space<vmem>>, %arg2: memref<1x32xf32, #tpu.memory_space<vmem>>, %arg3: memref<9x32x32xf32, #tpu.memory_space<vmem>>, %arg4: memref<9x32x64xf32, #tpu.memory_space<vmem>>, %arg5: memref<1x64xf32, #tpu.memory_space<vmem>>, %arg6: memref<2x64xf32, #tpu.memory_space<vmem>>) attributes {dimension_semantics = [], scalar_prefetch = 0 : i64, scratch_operands = 0 : i64, tpu.core_type = #tpu.core_type<tc>} {
    %c0 = arith.constant 0 : index
    %c0_0 = arith.constant 0 : index
    %0 = vector.load %arg0[%c0, %c0_0] : memref<128x162xf32, #tpu.memory_space<vmem>>, vector<128x162xf32>
    %c0_1 = arith.constant 0 : index
    %c0_2 = arith.constant 0 : index
    %1 = vector.load %arg1[%c0_1, %c0_2] : memref<162x32xf32, #tpu.memory_space<vmem>>, vector<162x32xf32>
    %cst = arith.constant dense<0.000000e+00> : vector<128x32xf32>
    %2 = tpu.matmul %0, %1, %cst {dimension_numbers = #tpu.dot_dimension_numbers<[1], [0], [0], [1], [0, 0, 1, 1], [], []>} : vector<128x162xf32>, vector<162x32xf32>, vector<128x32xf32> -> vector<128x32xf32>
    %c0_3 = arith.constant 0 : index
    %c0_4 = arith.constant 0 : index
    %3 = vector.load %arg2[%c0_3, %c0_4] : memref<1x32xf32, #tpu.memory_space<vmem>>, vector<1x32xf32>
    %4 = vector.broadcast %3 : vector<1x32xf32> to vector<128x32xf32>
    %5 = arith.addf %2, %4 : vector<128x32xf32>
    %cst_5 = arith.constant 0.000000e+00 : f32
    %6 = vector.broadcast %cst_5 : f32 to vector<128x32xf32>
    %7 = arith.maximumf %5, %6 : vector<128x32xf32>
    %8 = vector.extract_strided_slice %7 {offsets = [0, 0], sizes = [32, 32], strides = [1, 1]} : vector<128x32xf32> to vector<32x32xf32>
    %9 = vector.extract_strided_slice %7 {offsets = [32, 0], sizes = [32, 32], strides = [1, 1]} : vector<128x32xf32> to vector<32x32xf32>
    %10 = arith.maximumf %8, %9 : vector<32x32xf32>
    %11 = vector.extract_strided_slice %7 {offsets = [64, 0], sizes = [32, 32], strides = [1, 1]} : vector<128x32xf32> to vector<32x32xf32>
    %12 = vector.extract_strided_slice %7 {offsets = [96, 0], sizes = [32, 32], strides = [1, 1]} : vector<128x32xf32> to vector<32x32xf32>
    %13 = arith.maximumf %11, %12 : vector<32x32xf32>
    %14 = arith.maximumf %10, %13 : vector<32x32xf32>
    %cst_6 = arith.constant 0.000000e+00 : f32
    %15 = vector.broadcast %cst_6 : f32 to vector<32x64xf32>
    %c0_7 = arith.constant 0 : index
    %c0_8 = arith.constant 0 : index
    %c0_9 = arith.constant 0 : index
    %16 = vector.load %arg3[%c0_7, %c0_8, %c0_9] : memref<9x32x32xf32, #tpu.memory_space<vmem>>, vector<1x32x32xf32>
    %17 = vector.shape_cast %16 : vector<1x32x32xf32> to vector<32x32xf32>
    %cst_10 = arith.constant dense<0.000000e+00> : vector<32x32xf32>
    %18 = tpu.matmul %17, %14, %cst_10 {dimension_numbers = #tpu.dot_dimension_numbers<[1], [0], [0], [1], [0, 0, 1, 1], [], []>} : vector<32x32xf32>, vector<32x32xf32>, vector<32x32xf32> -> vector<32x32xf32>
    %c0_11 = arith.constant 0 : index
    %c0_12 = arith.constant 0 : index
    %c0_13 = arith.constant 0 : index
    %19 = vector.load %arg4[%c0_11, %c0_12, %c0_13] : memref<9x32x64xf32, #tpu.memory_space<vmem>>, vector<1x32x64xf32>
    %20 = vector.shape_cast %19 : vector<1x32x64xf32> to vector<32x64xf32>
    %cst_14 = arith.constant dense<0.000000e+00> : vector<32x64xf32>
    %21 = tpu.matmul %18, %20, %cst_14 {dimension_numbers = #tpu.dot_dimension_numbers<[1], [0], [0], [1], [0, 0, 1, 1], [], []>} : vector<32x32xf32>, vector<32x64xf32>, vector<32x64xf32> -> vector<32x64xf32>
    %22 = arith.addf %15, %21 : vector<32x64xf32>
    %c1 = arith.constant 1 : index
    %c0_15 = arith.constant 0 : index
    %c0_16 = arith.constant 0 : index
    %23 = vector.load %arg3[%c1, %c0_15, %c0_16] : memref<9x32x32xf32, #tpu.memory_space<vmem>>, vector<1x32x32xf32>
    %24 = vector.shape_cast %23 : vector<1x32x32xf32> to vector<32x32xf32>
    %cst_17 = arith.constant dense<0.000000e+00> : vector<32x32xf32>
    %25 = tpu.matmul %24, %14, %cst_17 {dimension_numbers = #tpu.dot_dimension_numbers<[1], [0], [0], [1], [0, 0, 1, 1], [], []>} : vector<32x32xf32>, vector<32x32xf32>, vector<32x32xf32> -> vector<32x32xf32>
    %c1_18 = arith.constant 1 : index
    %c0_19 = arith.constant 0 : index
    %c0_20 = arith.constant 0 : index
    %26 = vector.load %arg4[%c1_18, %c0_19, %c0_20] : memref<9x32x64xf32, #tpu.memory_space<vmem>>, vector<1x32x64xf32>
    %27 = vector.shape_cast %26 : vector<1x32x64xf32> to vector<32x64xf32>
    %cst_21 = arith.constant dense<0.000000e+00> : vector<32x64xf32>
    %28 = tpu.matmul %25, %27, %cst_21 {dimension_numbers = #tpu.dot_dimension_numbers<[1], [0], [0], [1], [0, 0, 1, 1], [], []>} : vector<32x32xf32>, vector<32x64xf32>, vector<32x64xf32> -> vector<32x64xf32>
    %29 = arith.addf %22, %28 : vector<32x64xf32>
    %c2 = arith.constant 2 : index
    %c0_22 = arith.constant 0 : index
    %c0_23 = arith.constant 0 : index
    %30 = vector.load %arg3[%c2, %c0_22, %c0_23] : memref<9x32x32xf32, #tpu.memory_space<vmem>>, vector<1x32x32xf32>
    %31 = vector.shape_cast %30 : vector<1x32x32xf32> to vector<32x32xf32>
    %cst_24 = arith.constant dense<0.000000e+00> : vector<32x32xf32>
    %32 = tpu.matmul %31, %14, %cst_24 {dimension_numbers = #tpu.dot_dimension_numbers<[1], [0], [0], [1], [0, 0, 1, 1], [], []>} : vector<32x32xf32>, vector<32x32xf32>, vector<32x32xf32> -> vector<32x32xf32>
    %c2_25 = arith.constant 2 : index
    %c0_26 = arith.constant 0 : index
    %c0_27 = arith.constant 0 : index
    %33 = vector.load %arg4[%c2_25, %c0_26, %c0_27] : memref<9x32x64xf32, #tpu.memory_space<vmem>>, vector<1x32x64xf32>
    %34 = vector.shape_cast %33 : vector<1x32x64xf32> to vector<32x64xf32>
    %cst_28 = arith.constant dense<0.000000e+00> : vector<32x64xf32>
    %35 = tpu.matmul %32, %34, %cst_28 {dimension_numbers = #tpu.dot_dimension_numbers<[1], [0], [0], [1], [0, 0, 1, 1], [], []>} : vector<32x32xf32>, vector<32x64xf32>, vector<32x64xf32> -> vector<32x64xf32>
    %36 = arith.addf %29, %35 : vector<32x64xf32>
    %c3 = arith.constant 3 : index
    %c0_29 = arith.constant 0 : index
    %c0_30 = arith.constant 0 : index
    %37 = vector.load %arg3[%c3, %c0_29, %c0_30] : memref<9x32x32xf32, #tpu.memory_space<vmem>>, vector<1x32x32xf32>
    %38 = vector.shape_cast %37 : vector<1x32x32xf32> to vector<32x32xf32>
    %cst_31 = arith.constant dense<0.000000e+00> : vector<32x32xf32>
    %39 = tpu.matmul %38, %14, %cst_31 {dimension_numbers = #tpu.dot_dimension_numbers<[1], [0], [0], [1], [0, 0, 1, 1], [], []>} : vector<32x32xf32>, vector<32x32xf32>, vector<32x32xf32> -> vector<32x32xf32>
    %c3_32 = arith.constant 3 : index
    %c0_33 = arith.constant 0 : index
    %c0_34 = arith.constant 0 : index
    %40 = vector.load %arg4[%c3_32, %c0_33, %c0_34] : memref<9x32x64xf32, #tpu.memory_space<vmem>>, vector<1x32x64xf32>
    %41 = vector.shape_cast %40 : vector<1x32x64xf32> to vector<32x64xf32>
    %cst_35 = arith.constant dense<0.000000e+00> : vector<32x64xf32>
    %42 = tpu.matmul %39, %41, %cst_35 {dimension_numbers = #tpu.dot_dimension_numbers<[1], [0], [0], [1], [0, 0, 1, 1], [], []>} : vector<32x32xf32>, vector<32x64xf32>, vector<32x64xf32> -> vector<32x64xf32>
    %43 = arith.addf %36, %42 : vector<32x64xf32>
    %c4 = arith.constant 4 : index
    %c0_36 = arith.constant 0 : index
    %c0_37 = arith.constant 0 : index
    %44 = vector.load %arg3[%c4, %c0_36, %c0_37] : memref<9x32x32xf32, #tpu.memory_space<vmem>>, vector<1x32x32xf32>
    %45 = vector.shape_cast %44 : vector<1x32x32xf32> to vector<32x32xf32>
    %cst_38 = arith.constant dense<0.000000e+00> : vector<32x32xf32>
    %46 = tpu.matmul %45, %14, %cst_38 {dimension_numbers = #tpu.dot_dimension_numbers<[1], [0], [0], [1], [0, 0, 1, 1], [], []>} : vector<32x32xf32>, vector<32x32xf32>, vector<32x32xf32> -> vector<32x32xf32>
    %c4_39 = arith.constant 4 : index
    %c0_40 = arith.constant 0 : index
    %c0_41 = arith.constant 0 : index
    %47 = vector.load %arg4[%c4_39, %c0_40, %c0_41] : memref<9x32x64xf32, #tpu.memory_space<vmem>>, vector<1x32x64xf32>
    %48 = vector.shape_cast %47 : vector<1x32x64xf32> to vector<32x64xf32>
    %cst_42 = arith.constant dense<0.000000e+00> : vector<32x64xf32>
    %49 = tpu.matmul %46, %48, %cst_42 {dimension_numbers = #tpu.dot_dimension_numbers<[1], [0], [0], [1], [0, 0, 1, 1], [], []>} : vector<32x32xf32>, vector<32x64xf32>, vector<32x64xf32> -> vector<32x64xf32>
    %50 = arith.addf %43, %49 : vector<32x64xf32>
    %c5 = arith.constant 5 : index
    %c0_43 = arith.constant 0 : index
    %c0_44 = arith.constant 0 : index
    %51 = vector.load %arg3[%c5, %c0_43, %c0_44] : memref<9x32x32xf32, #tpu.memory_space<vmem>>, vector<1x32x32xf32>
    %52 = vector.shape_cast %51 : vector<1x32x32xf32> to vector<32x32xf32>
    %cst_45 = arith.constant dense<0.000000e+00> : vector<32x32xf32>
    %53 = tpu.matmul %52, %14, %cst_45 {dimension_numbers = #tpu.dot_dimension_numbers<[1], [0], [0], [1], [0, 0, 1, 1], [], []>} : vector<32x32xf32>, vector<32x32xf32>, vector<32x32xf32> -> vector<32x32xf32>
    %c5_46 = arith.constant 5 : index
    %c0_47 = arith.constant 0 : index
    %c0_48 = arith.constant 0 : index
    %54 = vector.load %arg4[%c5_46, %c0_47, %c0_48] : memref<9x32x64xf32, #tpu.memory_space<vmem>>, vector<1x32x64xf32>
    %55 = vector.shape_cast %54 : vector<1x32x64xf32> to vector<32x64xf32>
    %cst_49 = arith.constant dense<0.000000e+00> : vector<32x64xf32>
    %56 = tpu.matmul %53, %55, %cst_49 {dimension_numbers = #tpu.dot_dimension_numbers<[1], [0], [0], [1], [0, 0, 1, 1], [], []>} : vector<32x32xf32>, vector<32x64xf32>, vector<32x64xf32> -> vector<32x64xf32>
    %57 = arith.addf %50, %56 : vector<32x64xf32>
    %c6 = arith.constant 6 : index
    %c0_50 = arith.constant 0 : index
    %c0_51 = arith.constant 0 : index
    %58 = vector.load %arg3[%c6, %c0_50, %c0_51] : memref<9x32x32xf32, #tpu.memory_space<vmem>>, vector<1x32x32xf32>
    %59 = vector.shape_cast %58 : vector<1x32x32xf32> to vector<32x32xf32>
    %cst_52 = arith.constant dense<0.000000e+00> : vector<32x32xf32>
    %60 = tpu.matmul %59, %14, %cst_52 {dimension_numbers = #tpu.dot_dimension_numbers<[1], [0], [0], [1], [0, 0, 1, 1], [], []>} : vector<32x32xf32>, vector<32x32xf32>, vector<32x32xf32> -> vector<32x32xf32>
    %c6_53 = arith.constant 6 : index
    %c0_54 = arith.constant 0 : index
    %c0_55 = arith.constant 0 : index
    %61 = vector.load %arg4[%c6_53, %c0_54, %c0_55] : memref<9x32x64xf32, #tpu.memory_space<vmem>>, vector<1x32x64xf32>
    %62 = vector.shape_cast %61 : vector<1x32x64xf32> to vector<32x64xf32>
    %cst_56 = arith.constant dense<0.000000e+00> : vector<32x64xf32>
    %63 = tpu.matmul %60, %62, %cst_56 {dimension_numbers = #tpu.dot_dimension_numbers<[1], [0], [0], [1], [0, 0, 1, 1], [], []>} : vector<32x32xf32>, vector<32x64xf32>, vector<32x64xf32> -> vector<32x64xf32>
    %64 = arith.addf %57, %63 : vector<32x64xf32>
    %c7 = arith.constant 7 : index
    %c0_57 = arith.constant 0 : index
    %c0_58 = arith.constant 0 : index
    %65 = vector.load %arg3[%c7, %c0_57, %c0_58] : memref<9x32x32xf32, #tpu.memory_space<vmem>>, vector<1x32x32xf32>
    %66 = vector.shape_cast %65 : vector<1x32x32xf32> to vector<32x32xf32>
    %cst_59 = arith.constant dense<0.000000e+00> : vector<32x32xf32>
    %67 = tpu.matmul %66, %14, %cst_59 {dimension_numbers = #tpu.dot_dimension_numbers<[1], [0], [0], [1], [0, 0, 1, 1], [], []>} : vector<32x32xf32>, vector<32x32xf32>, vector<32x32xf32> -> vector<32x32xf32>
    %c7_60 = arith.constant 7 : index
    %c0_61 = arith.constant 0 : index
    %c0_62 = arith.constant 0 : index
    %68 = vector.load %arg4[%c7_60, %c0_61, %c0_62] : memref<9x32x64xf32, #tpu.memory_space<vmem>>, vector<1x32x64xf32>
    %69 = vector.shape_cast %68 : vector<1x32x64xf32> to vector<32x64xf32>
    %cst_63 = arith.constant dense<0.000000e+00> : vector<32x64xf32>
    %70 = tpu.matmul %67, %69, %cst_63 {dimension_numbers = #tpu.dot_dimension_numbers<[1], [0], [0], [1], [0, 0, 1, 1], [], []>} : vector<32x32xf32>, vector<32x64xf32>, vector<32x64xf32> -> vector<32x64xf32>
    %71 = arith.addf %64, %70 : vector<32x64xf32>
    %c8 = arith.constant 8 : index
    %c0_64 = arith.constant 0 : index
    %c0_65 = arith.constant 0 : index
    %72 = vector.load %arg3[%c8, %c0_64, %c0_65] : memref<9x32x32xf32, #tpu.memory_space<vmem>>, vector<1x32x32xf32>
    %73 = vector.shape_cast %72 : vector<1x32x32xf32> to vector<32x32xf32>
    %cst_66 = arith.constant dense<0.000000e+00> : vector<32x32xf32>
    %74 = tpu.matmul %73, %14, %cst_66 {dimension_numbers = #tpu.dot_dimension_numbers<[1], [0], [0], [1], [0, 0, 1, 1], [], []>} : vector<32x32xf32>, vector<32x32xf32>, vector<32x32xf32> -> vector<32x32xf32>
    %c8_67 = arith.constant 8 : index
    %c0_68 = arith.constant 0 : index
    %c0_69 = arith.constant 0 : index
    %75 = vector.load %arg4[%c8_67, %c0_68, %c0_69] : memref<9x32x64xf32, #tpu.memory_space<vmem>>, vector<1x32x64xf32>
    %76 = vector.shape_cast %75 : vector<1x32x64xf32> to vector<32x64xf32>
    %cst_70 = arith.constant dense<0.000000e+00> : vector<32x64xf32>
    %77 = tpu.matmul %74, %76, %cst_70 {dimension_numbers = #tpu.dot_dimension_numbers<[1], [0], [0], [1], [0, 0, 1, 1], [], []>} : vector<32x32xf32>, vector<32x64xf32>, vector<32x64xf32> -> vector<32x64xf32>
    %78 = arith.addf %71, %77 : vector<32x64xf32>
    %c0_71 = arith.constant 0 : index
    %c0_72 = arith.constant 0 : index
    %79 = vector.load %arg5[%c0_71, %c0_72] : memref<1x64xf32, #tpu.memory_space<vmem>>, vector<1x64xf32>
    %80 = vector.broadcast %79 : vector<1x64xf32> to vector<32x64xf32>
    %81 = arith.addf %78, %80 : vector<32x64xf32>
    %cst_73 = arith.constant 0.000000e+00 : f32
    %82 = vector.broadcast %cst_73 : f32 to vector<32x64xf32>
    %83 = arith.maximumf %81, %82 : vector<32x64xf32>
    %84 = vector.extract_strided_slice %83 {offsets = [0, 0], sizes = [8, 64], strides = [1, 1]} : vector<32x64xf32> to vector<8x64xf32>
    %85 = vector.extract_strided_slice %83 {offsets = [8, 0], sizes = [8, 64], strides = [1, 1]} : vector<32x64xf32> to vector<8x64xf32>
    %86 = arith.maximumf %84, %85 : vector<8x64xf32>
    %87 = vector.extract_strided_slice %83 {offsets = [16, 0], sizes = [8, 64], strides = [1, 1]} : vector<32x64xf32> to vector<8x64xf32>
    %88 = vector.extract_strided_slice %83 {offsets = [24, 0], sizes = [8, 64], strides = [1, 1]} : vector<32x64xf32> to vector<8x64xf32>
    %89 = arith.maximumf %87, %88 : vector<8x64xf32>
    %90 = arith.maximumf %86, %89 : vector<8x64xf32>
    %91 = vector.extract_strided_slice %90 {offsets = [0, 0], sizes = [2, 64], strides = [1, 1]} : vector<8x64xf32> to vector<2x64xf32>
    %c0_74 = arith.constant 0 : index
    %c0_75 = arith.constant 0 : index
    %92 = vector.load %arg6[%c0_74, %c0_75] : memref<2x64xf32, #tpu.memory_space<vmem>>, vector<2x64xf32>
    tpu.vector_store %arg6[%c0_74, %c0_75], %91 {strides = array<i32>} : memref<2x64xf32, #tpu.memory_space<vmem>>, vector<2x64xf32>,
    return
  }
}

</mosaic_0001>

<bundles_post_ra>
// kernel: solus_forward.2
= control target key start
LH: loop header
LB: loop body
LE: loop exit
PB: predicated region body
PF: predicated region fallthrough
CT: control target
= control target key end

     0   :  { %vm129_vm0 = vcmask 1041408   ;;  %vm80_vm1 = vcmask 277504   ;;  %vm295_vm2 = vcmask 261120   ;;  %vm1161_vm3 = vcmask 517120   ;;  %s1925_s1 = inlined_call_operand.vmem [shape: f32[162,32], index: 1, kind: input, shape index: {}]   ;;  %s1926_s0 = inlined_call_operand.vmem [shape: f32[128,162], index: 0, kind: input, shape index: {}]   ;;  %s1927_s2 = inlined_call_operand.vmem [shape: f32[1,32], index: 2, kind: input, shape index: {}]   ;;  %s1928_s3 = inlined_call_operand.vmem [shape: f32[9,32,32], index: 3, kind: input, shape index: {}]   ;;  %s1929_s4 = inlined_call_operand.vmem [shape: f32[9,32,64], index: 4, kind: input, shape index: {}]   ;;  %s1930_s5 = inlined_call_operand.vmem [shape: f32[1,64], index: 5, kind: input, shape index: {}]   ;;  %s1931_s6 = inlined_call_operand.vmem [shape: f32[2,64], index: 6, kind: output, shape index: {}]  }
   0x1   :  { %v70_v0 = vld [vmem:[%s1925_s1 + $0x78] sm:$0xff]  ;;  %v69_v1 = vld [vmem:[%s1925_s1 + $0x70] sm:$0xff]  ;;  %v68_v2 = vld [vmem:[%s1925_s1 + $0x68] sm:$0xff] }
   0x2   :  { %133 = vmatpush.msra.mxu0 %v70_v0  ;;  %v67_v3 = vld [vmem:[%s1925_s1 + $0x60] sm:$0xff]  ;;  %v74_v5 = vld [vmem:[%s1925_s1 + $0x98] sm:$0xff]  ;;  %v73_v7 = vld [vmem:[%s1925_s1 + $0x90] sm:$0xff] }
   0x3   :  { %v75_v4 = vld [vmem:[%s1925_s1 + $0xa0] sm:$0x3]  ;;  %v66_v6 = vld [vmem:[%s1925_s1 + $0x58] sm:$0xff]  ;;  %v65_v8 = vld [vmem:[%s1925_s1 + $0x50] sm:$0xff] }
   0x4   :  { %134 = vmatpush.msra.mxu0 %v69_v1  ;;  %1167 = vmatpush.msk.msra.mxu1 %vm129_vm0, %v75_v4  ;;  %v72_v9 = vld [vmem:[%s1925_s1 + $0x88] sm:$0xff]  ;;  %v71_v11 = vld [vmem:[%s1925_s1 + $0x80] sm:$0xff]  ;;  %v62_v14 = vld [vmem:[%s1925_s1 + $0x38] sm:$0xff] }
   0x5   :  { %v64_v10 = vld [vmem:[%s1925_s1 + $0x48] sm:$0xff]  ;;  %v63_v13 = vld [vmem:[%s1925_s1 + $0x40] sm:$0xff]  ;;  %v61_v15 = vld [vmem:[%s1925_s1 + $0x30] sm:$0xff] }
   0x6   :  { %135 = vmatpush.msra.mxu0 %v68_v2  ;;  %210 = vmatpush.msra.mxu1 %v74_v5  ;;  %v24_v12 = vld [vmem:[%s1926_s0 + $0x8] sm:$0xff]  ;;  %v26_v17 = vld [vmem:[%s1926_s0 + $0x18] sm:$0xff]  ;;  %v59_v18 = vld [vmem:[%s1925_s1 + $0x20] sm:$0xff] }
   0x7   :  { %v60_v16 = vld [vmem:[%s1925_s1 + $0x28] sm:$0xff]  ;;  %v58_v19 = vld [vmem:[%s1925_s1 + $0x18] sm:$0xff]  ;;  %v57_v20 = vld [vmem:[%s1925_s1 + $0x10] sm:$0xff] }
   0x8   :  { %136 = vmatpush.msra.mxu0 %v67_v3  ;;  %211 = vmatpush.msra.mxu1 %v73_v7  ;;  %v56_v21 = vld [vmem:[%s1925_s1 + $0x8] sm:$0xff]  ;;  %v55_v23 = vld [vmem:[%s1925_s1] sm:$0xff]  ;;  %v30_v25 = vld [vmem:[%s1926_s0 + $0x38] sm:$0xff] }
   0x9   :  { %v28_v22 = vld [vmem:[%s1926_s0 + $0x28] sm:$0xff]  ;;  %v23_v24 = vld [vmem:[%s1926_s0] sm:$0xff]  ;;  %v25_v26 = vld [vmem:[%s1926_s0 + $0x10] sm:$0xff] }
   0xa   :  { %137 = vmatpush.msra.mxu0 %v66_v6  ;;  %212 = vmatpush.msra.mxu1 %v72_v9  ;;  %v32_v27 = vld [vmem:[%s1926_s0 + $0x48] sm:$0xff]  ;;  %v27_v28 = vld [vmem:[%s1926_s0 + $0x20] sm:$0xff]  ;;  %v34_v29 = vld [vmem:[%s1926_s0 + $0x58] sm:$0xff] }
   0xb   :  { %v29_v30 = vld [vmem:[%s1926_s0 + $0x30] sm:$0xff]  ;;  %v36_v31 = vld [vmem:[%s1926_s0 + $0x68] sm:$0xff]  ;;  %v31_v32 = vld [vmem:[%s1926_s0 + $0x40] sm:$0xff] }
   0xc   :  { %138 = vmatpush.msra.mxu0 %v65_v8  ;;  %213 = vmatpush.msra.mxu1 %v71_v11  ;;  %v38_v33 = vld [vmem:[%s1926_s0 + $0x78] sm:$0xff]  ;;  %v33_v34 = vld [vmem:[%s1926_s0 + $0x50] sm:$0xff]  ;;  %v40_v35 = vld [vmem:[%s1926_s0 + $0x88] sm:$0xff] }
   0xd   :  { %1168 = vmatmul.msk.f32.vlgmr.msra.gmra.mxu1 %vm80_vm1, %v24_v12  ;;  %v35_v36 = vld [vmem:[%s1926_s0 + $0x60] sm:$0xff]  ;;  %v42_v37 = vld [vmem:[%s1926_s0 + $0x98] sm:$0xff]  ;;  %v37_v38 = vld [vmem:[%s1926_s0 + $0x70] sm:$0xff] }
   0xe   :  { %139 = vmatpush.msra.mxu0 %v64_v10  ;;  %v44_v39 = vld [vmem:[%s1926_s0 + $0xa8] sm:$0xff]  ;;  %v39_v40 = vld [vmem:[%s1926_s0 + $0x80] sm:$0xff]  ;;  %v46_v41 = vld [vmem:[%s1926_s0 + $0xb8] sm:$0xff] }
   0xf   :  { %v41_v42 = vld [vmem:[%s1926_s0 + $0x90] sm:$0xff]  ;;  %v48_v43 = vld [vmem:[%s1926_s0 + $0xc8] sm:$0xff]  ;;  %v43_v44 = vld [vmem:[%s1926_s0 + $0xa0] sm:$0xff] }
  0x10   :  { %140 = vmatpush.msra.mxu0 %v63_v13  ;;  %v50_v45 = vld [vmem:[%s1926_s0 + $0xd8] sm:$0xff]  ;;  %v45_v46 = vld [vmem:[%s1926_s0 + $0xb0] sm:$0xff]  ;;  %v52_v47 = vld [vmem:[%s1926_s0 + $0xe8] sm:$0xff] }
  0x11   :  { %v47_v48 = vld [vmem:[%s1926_s0 + $0xc0] sm:$0xff]  ;;  %v54_v49 = vld [vmem:[%s1926_s0 + $0xf8] sm:$0xff]  ;;  %v49_v50 = vld [vmem:[%s1926_s0 + $0xd0] sm:$0xff] }
  0x12   :  { %141 = vmatpush.msra.mxu0 %v62_v14  ;;  %v51_v52 = vld [vmem:[%s1926_s0 + $0xe0] sm:$0xff]  ;;  %v53_v54 = vld [vmem:[%s1926_s0 + $0xf0] sm:$0xff] }
  0x13   :  { %v1543_v60 = vld [vmem:[%s1927_s2] ss:$0 sm:$0xff] }
  0x14   :  { %142 = vmatpush.msra.mxu0 %v61_v15 }
  0x15   :  { %1169 = vmatmul.msk.f32.gmra.mxu1 %vm80_vm1, %v26_v17 }
  0x16   :  { %143 = vmatpush.msra.mxu0 %v60_v16 }
  0x18   :  { %144 = vmatpush.msra.mxu0 %v59_v18 }
  0x1a   :  { %145 = vmatpush.msra.mxu0 %v58_v19 }
  0x1c   :  { %146 = vmatpush.msra.mxu0 %v57_v20 }
  0x1d   :  { %1170 = vmatmul.msk.f32.gmra.mxu1 %vm80_vm1, %v28_v22 }
  0x1e   :  { %147 = vmatpush.msra.mxu0 %v56_v21 }
  0x20   :  { %148 = vmatpush.msra.mxu0 %v55_v23 }
  0x21   :  { %149 = vmatmul.f32.vlgmr.msra.gmra.mxu0 %v23_v24 }
  0x25   :  { %1171 = vmatmul.msk.f32.gmra.mxu1 %vm80_vm1, %v30_v25 }
  0x29   :  { %152 = vmatmul.f32.gmra.mxu0 %v25_v26 }
  0x2d   :  { %1172 = vmatmul.msk.f32.gmra.mxu1 %vm80_vm1, %v32_v27 }
  0x31   :  { %155 = vmatmul.f32.gmra.mxu0 %v27_v28 }
  0x35   :  { %1173 = vmatmul.msk.f32.gmra.mxu1 %vm80_vm1, %v34_v29 }
  0x39   :  { %158 = vmatmul.f32.gmra.mxu0 %v29_v30 }
  0x3d   :  { %1174 = vmatmul.msk.f32.gmra.mxu1 %vm80_vm1, %v36_v31 }
  0x41   :  { %161 = vmatmul.f32.gmra.mxu0 %v31_v32 }
  0x45   :  { %1175 = vmatmul.msk.f32.gmra.mxu1 %vm80_vm1, %v38_v33 }
  0x49   :  { %164 = vmatmul.f32.gmra.mxu0 %v33_v34 }
  0x4d   :  { %1176 = vmatmul.msk.f32.gmra.mxu1 %vm80_vm1, %v40_v35 }
  0x51   :  { %167 = vmatmul.f32.gmra.mxu0 %v35_v36 }
  0x55   :  { %1177 = vmatmul.msk.f32.gmra.mxu1 %vm80_vm1, %v42_v37 }
  0x59   :  { %170 = vmatmul.f32.gmra.mxu0 %v37_v38 }
  0x5d   :  { %1178 = vmatmul.msk.f32.gmra.mxu1 %vm80_vm1, %v44_v39 }
  0x61   :  { %173 = vmatmul.f32.gmra.mxu0 %v39_v40 }
  0x65   :  { %1179 = vmatmul.msk.f32.gmra.mxu1 %vm80_vm1, %v46_v41 }
  0x69   :  { %176 = vmatmul.f32.gmra.mxu0 %v41_v42 }
  0x6d   :  { %1180 = vmatmul.msk.f32.gmra.mxu1 %vm80_vm1, %v48_v43 }
  0x71   :  { %179 = vmatmul.f32.gmra.mxu0 %v43_v44 }
  0x75   :  { %1181 = vmatmul.msk.f32.gmra.mxu1 %vm80_vm1, %v50_v45 }
  0x79   :  { %182 = vmatmul.f32.gmra.mxu0 %v45_v46 }
  0x7d   :  { %1182 = vmatmul.msk.f32.gmra.mxu1 %vm80_vm1, %v52_v47 }
  0x81   :  { %185 = vmatmul.f32.gmra.mxu0 %v47_v48 }
  0x85   :  { %1183 = vmatmul.msk.f32.gmra.mxu1 %vm80_vm1, %v54_v49 }
  0x89   :  { %188 = vmatmul.f32.gmra.mxu0 %v49_v50 }
  0x8a   :  { %v215_v51 = vpop.f32.mrf.mxu1 }
  0x91   :  { %191 = vmatmul.f32.gmra.mxu0 %v51_v52 }
  0x92   :  { %v218_v53 = vpop.f32.mrf.mxu1 }
  0x99   :  { %194 = vmatmul.f32.gmra.mxu0 %v53_v54 }
  0x9a   :  { %v221_v55 = vpop.f32.mrf.mxu1 }
  0x9e   :  { %v150_v56 = vpop.f32.mrf.mxu0 }
  0x9f   :  { %v151_v4 = vadd.f32 %v1543_v60, %v150_v56 }
  0xa1   :  { %v216_v7 = vadd.f32 %v215_v51, %v151_v4 }
  0xa2   :  { %v224_v57 = vpop.f32.mrf.mxu1 }
  0xa3   :  { %v263_v10 = vmax.f32 %v216_v7, 0.0 }
  0xa6   :  { %v153_v58 = vpop.f32.mrf.mxu0 }
  0xa7   :  { %v154_v11 = vadd.f32 %v1543_v60, %v153_v58 }
  0xa9   :  { %v219_v16 = vadd.f32 %v218_v53, %v154_v11 }
  0xaa   :  { %v227_v59 = vpop.f32.mrf.mxu1 }
  0xab   :  { %v264_v19 = vmax.f32 %v219_v16, 0.0 }
  0xae   :  { %v156_v61 = vpop.f32.mrf.mxu0 }
  0xaf   :  { %v157_v62 = vadd.f32 %v1543_v60, %v156_v61 }
  0xb1   :  { %v222_v63 = vadd.f32 %v221_v55, %v157_v62 }
  0xb2   :  { %v230_v0 = vpop.f32.mrf.mxu1 }
  0xb3   :  { %v265_v26 = vmax.f32 %v222_v63, 0.0 }
  0xb6   :  { %v159_v1 = vpop.f32.mrf.mxu0 }
  0xb7   :  { %v160_v2 = vadd.f32 %v1543_v60, %v159_v1 }
  0xb9   :  { %v225_v3 = vadd.f32 %v224_v57, %v160_v2 }
  0xba   :  { %v233_v5 = vpop.f32.mrf.mxu1 }
  0xbb   :  { %v266_v33 = vmax.f32 %v225_v3, 0.0 }
  0xbe   :  { %v162_v6 = vpop.f32.mrf.mxu0 }
  0xbf   :  { %v163_v8 = vadd.f32 %v1543_v60, %v162_v6 }
  0xc1   :  { %v228_v9 = vadd.f32 %v227_v59, %v163_v8 }
  0xc2   :  { %v236_v15 = vpop.f32.mrf.mxu1 }
  0xc3   :  { %v267_v12 = vmax.f32 %v228_v9, 0.0 }
  0xc5   :  { %v1550_v13 = vmax.f32 %v263_v10, %v267_v12 }
  0xc6   :  { %v165_v14 = vpop.f32.mrf.mxu0 }
  0xc7   :  { %v166_v17 = vadd.f32 %v1543_v60, %v165_v14 }
  0xc9   :  { %v231_v18 = vadd.f32 %v230_v0, %v166_v17 }
  0xca   :  { %v239_v24 = vpop.f32.mrf.mxu1 }
  0xcb   :  { %v268_v20 = vmax.f32 %v231_v18, 0.0 }
  0xcd   :  { %v1553_v21 = vmax.f32 %v264_v19, %v268_v20  ;;  %v291_v19 = vld [vmem:[%s1928_s3] sm:$0xff]  ;;  %v1199_v20 = vld [vmem:[%s1929_s4 + $0x38] sm:$0xff] }
  0xce   :  { %v168_v22 = vpop.f32.mrf.mxu0 }
  0xcf   :  { %v169_v23 = vadd.f32 %v1543_v60, %v168_v22  ;;  %v1198_v22 = vld [vmem:[%s1929_s4 + $0x30] sm:$0xff] }
  0xd1   :  { %v234_v25 = vadd.f32 %v233_v5, %v169_v23  ;;  %v1197_v23 = vld [vmem:[%s1929_s4 + $0x28] sm:$0xff] }
  0xd2   :  { %v242_v32 = vpop.f32.mrf.mxu1 }
  0xd3   :  { %v269_v27 = vmax.f32 %v234_v25, 0.0  ;;  %v1188_v25 = vld [vmem:[%s1928_s3 + $0x20] sm:$0xff] }
  0xd5   :  { %v281_v28 = vmax.f32 %v265_v26, %v269_v27  ;;  %v1190_v26 = vld [vmem:[%s1928_s3 + $0x30] sm:$0xff] }
  0xd6   :  { %v171_v29 = vpop.f32.mrf.mxu0  ;;  %v293_v27 = vld [vmem:[%s1928_s3 + $0x10] sm:$0xff] }
  0xd7   :  { %v172_v30 = vadd.f32 %v1543_v60, %v171_v29  ;;  %v294_v29 = vld [vmem:[%s1928_s3 + $0x18] sm:$0xff] }
  0xd9   :  { %v237_v31 = vadd.f32 %v236_v15, %v172_v30  ;;  %v340_v30 = vld [vmem:[%s1929_s4 + $0x18] sm:$0xff] }
  0xda   :  { %v245_v37 = vpop.f32.mrf.mxu1 }
  0xdb   :  { %v270_v34 = vmax.f32 %v237_v31, 0.0  ;;  %v339_v31 = vld [vmem:[%s1929_s4 + $0x10] sm:$0xff] }
  0xdd   :  { %v282_v35 = vmax.f32 %v266_v33, %v270_v34  ;;  %v337_v33 = vld [vmem:[%s1929_s4] sm:$0xff] }
  0xde   :  { %v174_v36 = vpop.f32.mrf.mxu0 }
  0xdf   :  { %v175_v55 = vadd.f32 %v1543_v60, %v174_v36 }
  0xe1   :  { %v240_v3 = vadd.f32 %v239_v24, %v175_v55  ;;  %v1196_v24 = vld [vmem:[%s1929_s4 + $0x20] sm:$0xff]  ;;  %v1241_v55 = vld [vmem:[%s1928_s3 + $0x88] sm:$0xff] }
  0xe2   :  { %v248_v40 = vpop.f32.mrf.mxu1 }
  0xe3   :  { %v271_v12 = vmax.f32 %v240_v3, 0.0 }
  0xe6   :  { %v177_v38 = vpop.f32.mrf.mxu0 }
  0xe7   :  { %v178_v52 = vadd.f32 %v1543_v60, %v177_v38 }
  0xe9   :  { %v243_v63 = vadd.f32 %v242_v32, %v178_v52  ;;  %v338_v32 = vld [vmem:[%s1929_s4 + $0x8] sm:$0xff]  ;;  %v1258_v52 = vld [vmem:[%s1928_s3 + $0xb0] sm:$0xff] }
  0xea   :  { %v251_v42 = vpop.f32.mrf.mxu1 }
  0xeb   :  { %v272_v8 = vmax.f32 %v243_v63, 0.0  ;;  %v1218_v63 = vld [vmem:[%s1929_s4 + $0x50] sm:$0xff] }
  0xee   :  { %v180_v39 = vpop.f32.mrf.mxu0 }
  0xef   :  { %v181_v49 = vadd.f32 %v1543_v60, %v180_v39 }
  0xf1   :  { %v246_v58 = vadd.f32 %v245_v37, %v181_v49  ;;  %v1226_v49 = vld [vmem:[%s1928_s3 + $0x70] sm:$0xff] }
  0xf2   :  { %v254_v44 = vpop.f32.mrf.mxu1 }
  0xf3   :  { %v273_v4 = vmax.f32 %v246_v58, 0.0  ;;  %v1289_v58 = vld [vmem:[%s1928_s3 + $0xe8] sm:$0xff] }
  0xf6   :  { %v183_v41 = vpop.f32.mrf.mxu0 }
  0xf7   :  { %v184_v50 = vadd.f32 %v1543_v60, %v183_v41 }
  0xf9   :  { %v249_v59 = vadd.f32 %v248_v40, %v184_v50  ;;  %v1257_v50 = vld [vmem:[%s1928_s3 + $0xa8] sm:$0xff] }
  0xfa   :  { %v257_v46 = vpop.f32.mrf.mxu1 }
  0xfb   :  { %v274_v5 = vmax.f32 %v249_v59, 0.0  ;;  %v1243_v59 = vld [vmem:[%s1928_s3 + $0x98] sm:$0xff] }
  0xfe   :  { %v186_v43 = vpop.f32.mrf.mxu0 }
  0xff   :  { %v187_v53 = vadd.f32 %v1543_v60, %v186_v43  ;;  %v1209_v43 = vld [vmem:[%s1928_s3 + $0x48] sm:$0xff] }
 0x101   :  { %v252_v0 = vadd.f32 %v251_v42, %v187_v53  ;;  %v1208_v42 = vld [vmem:[%s1928_s3 + $0x40] sm:$0xff] }
 0x102   :  { %v260_v57 = vpop.f32.mrf.mxu1  ;;  %v1240_v53 = vld [vmem:[%s1928_s3 + $0x80] sm:$0xff] }
 0x103   :  { %v275_v9 = vmax.f32 %v252_v0, 0.0  ;;  %v1272_v0 = vld [vmem:[%s1928_s3 + $0xc0] sm:$0xff] }
 0x105   :  { %v283_v16 = vmax.f32 %v271_v12, %v275_v9 }
 0x106   :  { %v189_v45 = vpop.f32.mrf.mxu0 }
 0x107   :  { %v190_v51 = vadd.f32 %v1543_v60, %v189_v45  ;;  %v1579_v18 = vmax.f32 %v1550_v13, %v283_v16  ;;  %v292_v13 = vld [vmem:[%s1928_s3 + $0x8] sm:$0xff]  ;;  %v1211_v45 = vld [vmem:[%s1928_s3 + $0x58] sm:$0xff] }
 0x108   :  { %v1275_v16 = vld [vmem:[%s1928_s3 + $0xd8] sm:$0xff] }
 0x109   :  { %v255_v61 = vadd.f32 %v254_v44, %v190_v51  ;;  %v1210_v44 = vld [vmem:[%s1928_s3 + $0x50] sm:$0xff]  ;;  %v1227_v51 = vld [vmem:[%s1928_s3 + $0x78] sm:$0xff] }
 0x10b   :  { %v276_v6 = vmax.f32 %v255_v61, 0.0  ;;  %v1219_v61 = vld [vmem:[%s1929_s4 + $0x58] sm:$0xff] }
 0x10d   :  { %v284_v14 = vmax.f32 %v272_v8, %v276_v6 }
 0x10e   :  { %v192_v47 = vpop.f32.mrf.mxu0 }
 0x10f   :  { %v193_v48 = vadd.f32 %v1543_v60, %v192_v47  ;;  %v1225_v47 = vld [vmem:[%s1928_s3 + $0x68] sm:$0xff] }
 0x111   :  { %v258_v54 = vadd.f32 %v257_v46, %v193_v48  ;;  %v1224_v46 = vld [vmem:[%s1928_s3 + $0x60] sm:$0xff] }
 0x112   :  { %v1256_v48 = vld [vmem:[%s1928_s3 + $0xa0] sm:$0xff] }
 0x113   :  { %v277_v1 = vmax.f32 %v258_v54, 0.0  ;;  %v1259_v54 = vld [vmem:[%s1928_s3 + $0xb8] sm:$0xff] }
 0x115   :  { %v285_v10 = vmax.f32 %v273_v4, %v277_v1  ;;  %v1216_v4 = vld [vmem:[%s1929_s4 + $0x40] sm:$0xff] }
 0x116   :  { %v195_v56 = vpop.f32.mrf.mxu0 }
 0x117   :  { %v196_v62 = vadd.f32 %v1543_v60, %v195_v56  ;;  %v1567_v17 = vmax.f32 %v281_v28, %v285_v10  ;;  %v1573_v60 = vmax.f32 %v1553_v21, %v284_v14  ;;  %v1189_v21 = vld [vmem:[%s1928_s3 + $0x28] sm:$0xff]  ;;  %v1191_v28 = vld [vmem:[%s1928_s3 + $0x38] sm:$0xff]  ;;  %v1288_v56 = vld [vmem:[%s1928_s3 + $0xe0] sm:$0xff] }
 0x119   :  { %v261_v2 = vadd.f32 %v260_v57, %v196_v62  ;;  %v1242_v57 = vld [vmem:[%s1928_s3 + $0x90] sm:$0xff] }
 0x11a   :  { %v1290_v62 = vld [vmem:[%s1928_s3 + $0xf0] sm:$0xff] }
 0x11b   :  { %v278_v7 = vmax.f32 %v261_v2, 0.0  ;;  %v1217_v2 = vld [vmem:[%s1929_s4 + $0x48] sm:$0xff] }
 0x11d   :  { %v286_v11 = vmax.f32 %v274_v5, %v278_v7  ;;  %v1291_v5 = vld [vmem:[%s1928_s3 + $0xf8] sm:$0xff]  ;;  %v1273_v7 = vld [vmem:[%s1928_s3 + $0xc8] sm:$0xff] }
 0x11f   :  { %v1565_v15 = vmax.f32 %v282_v35, %v286_v11  ;;  %v1274_v11 = vld [vmem:[%s1928_s3 + $0xd0] sm:$0xff] }
 0x121   :  { %320 = vmatpush.msrb.mxu1 %v1565_v15  ;;  %1320 = vmatpush.msra.mxu2 %v1565_v15 }
 0x122   :  { %1324 = vmatpush.msra.mxu3 %v1565_v15 }
 0x123   :  { %321 = vmatpush.msrb.mxu1 %v1567_v17  ;;  %1321 = vmatpush.msra.mxu2 %v1567_v17 }
 0x124   :  { %1325 = vmatpush.msra.mxu3 %v1567_v17 }
 0x125   :  { %322 = vmatpush.msrb.mxu1 %v1573_v60  ;;  %1322 = vmatpush.msra.mxu2 %v1573_v60 }
 0x126   :  { %1326 = vmatpush.msra.mxu3 %v1573_v60 }
 0x127   :  { %323 = vmatpush.msrb.mxu1 %v1579_v18  ;;  %1323 = vmatpush.msra.mxu2 %v1579_v18 }
 0x128   :  { %1327 = vmatpush.msra.mxu3 %v1579_v18  ;;  %1184 = vmatmul.msk.f32.vlgmr.msrb.gmra.mxu1 %vm295_vm2, %v291_v19  ;;  %v1304_v19 = vld [vmem:[%s1928_s3 + $0x100] sm:$0xff] }
 0x129   :  { %370 = vmatpush.msra.mxu1 %v1565_v15  ;;  %416 = vmatpush.msrb.mxu2 %v1199_v20  ;;  %v1233_v20 = vld [vmem:[%s1929_s4 + $0x68] sm:$0xff] }
 0x12a   :  { %1185 = vmatmul.msk.f32.vlgmr.msra.gmra.mxu2 %vm295_vm2, %v292_v13  ;;  %1193 = vmatmul.msk.f32.vlgmr.msra.gmra.mxu3 %vm295_vm2, %v1189_v21  ;;  %v1232_v21 = vld [vmem:[%s1929_s4 + $0x60] sm:$0xff] }
 0x12b   :  { %371 = vmatpush.msra.mxu1 %v1567_v17  ;;  %417 = vmatpush.msrb.mxu2 %v1198_v22  ;;  %v1305_v22 = vld [vmem:[%s1928_s3 + $0x108] sm:$0xff] }
 0x12c   :  { %457 = vmatpush.msrb.mxu3 %v340_v30  ;;  %v1249_v30 = vld [vmem:[%s1929_s4 + $0x88] sm:$0xff] }
 0x12d   :  { %372 = vmatpush.msra.mxu1 %v1573_v60  ;;  %418 = vmatpush.msrb.mxu2 %v1197_v23 }
 0x12e   :  { %458 = vmatpush.msrb.mxu3 %v339_v31 }
 0x12f   :  { %373 = vmatpush.msra.mxu1 %v1579_v18  ;;  %419 = vmatpush.msrb.mxu2 %v1196_v24  ;;  %v1306_v24 = vld [vmem:[%s1928_s3 + $0x110] sm:$0xff] }
 0x130   :  { %1192 = vmatmul.msk.f32.vlgmr.msra.gmra.mxu1 %vm295_vm2, %v1188_v25  ;;  %459 = vmatpush.msrb.mxu3 %v338_v32  ;;  %v1248_v32 = vld [vmem:[%s1929_s4 + $0x80] sm:$0xff] }
 0x131   :  { %503 = vmatpush.msra.mxu2 %v1565_v15  ;;  %791 = vmatpush.msrb.mxu1 %v1565_v15 }
 0x132   :  { %1194 = vmatmul.msk.f32.gmra.mxu3 %vm295_vm2, %v1190_v26  ;;  %1186 = vmatmul.msk.f32.gmra.mxu2 %vm295_vm2, %v293_v27  ;;  %v1307_v26 = vld [vmem:[%s1928_s3 + $0x118] sm:$0xff] }
 0x133   :  { %504 = vmatpush.msra.mxu2 %v1567_v17  ;;  %792 = vmatpush.msrb.mxu1 %v1567_v17 }
 0x134   :  { %460 = vmatpush.msrb.mxu3 %v337_v33  ;;  %v1267_v33 = vld [vmem:[%s1929_s4 + $0xb8] sm:$0xff] }
 0x135   :  { %505 = vmatpush.msra.mxu2 %v1573_v60  ;;  %793 = vmatpush.msrb.mxu1 %v1573_v60 }
 0x136   :  { %549 = vmatpush.msra.mxu3 %v1219_v61  ;;  %837 = vmatpush.msrb.mxu0 %v1267_v33  ;;  %v1314_v61 = vld [vmem:[%s1929_s4 + $0x110] sm:$0xff] }
 0x137   :  { %506 = vmatpush.msra.mxu2 %v1579_v18  ;;  %794 = vmatpush.msrb.mxu1 %v1579_v18 }
 0x138   :  { %1260 = vmatmul.msk.f32.vlgmr.msrb.gmra.mxu1 %vm295_vm2, %v1256_v48  ;;  %550 = vmatpush.msra.mxu3 %v1218_v63  ;;  %v1280_v48 = vld [vmem:[%s1929_s4 + $0xc0] sm:$0xff] }
 0x139   :  { %983 = vmatpush.msra.mxu1 %v1565_v15 }
 0x13a   :  { %1195 = vmatmul.msk.f32.gmra.mxu3 %vm295_vm2, %v1191_v28  ;;  %1187 = vmatmul.msk.f32.gmra.mxu2 %vm295_vm2, %v294_v29  ;;  %v1251_v28 = vld [vmem:[%s1929_s4 + $0x98] sm:$0xff]  ;;  %v1250_v29 = vld [vmem:[%s1929_s4 + $0x90] sm:$0xff] }
 0x13b   :  { %984 = vmatpush.msra.mxu1 %v1567_v17  ;;  %551 = vmatpush.msra.mxu3 %v1217_v2 }
 0x13d   :  { %985 = vmatpush.msra.mxu1 %v1573_v60  ;;  %552 = vmatpush.msra.mxu3 %v1216_v4 }
 0x13f   :  { %986 = vmatpush.msra.mxu1 %v1579_v18 }
 0x140   :  { %1261 = vmatmul.msk.f32.gmra.mxu1 %vm295_vm2, %v1257_v50  ;;  %v1298_v50 = vld [vmem:[%s1929_s4 + $0xf0] sm:$0xff] }
 0x148   :  { %1262 = vmatmul.msk.f32.gmra.mxu1 %vm295_vm2, %v1258_v52 }
 0x150   :  { %1263 = vmatmul.msk.f32.gmra.mxu1 %vm295_vm2, %v1259_v54  ;;  %v1296_v54 = vld [vmem:[%s1929_s4 + $0xe0] sm:$0xff] }
 0x158   :  { %1292 = vmatmul.msk.f32.vlgmr.msra.gmra.mxu1 %vm295_vm2, %v1288_v56 }
 0x160   :  { %1293 = vmatmul.msk.f32.gmra.mxu1 %vm295_vm2, %v1289_v58 }
 0x168   :  { %1294 = vmatmul.msk.f32.gmra.mxu1 %vm295_vm2, %v1290_v62  ;;  %v1313_v62 = vld [vmem:[%s1929_s4 + $0x108] sm:$0xff] }
 0x170   :  { %1295 = vmatmul.msk.f32.gmra.mxu1 %vm295_vm2, %v1291_v5 }
 0x1a5   :  { %v325_v34 = vpop.f32.mrf.mxu1 }
 0x1a6   :  { %1204 = vmatmul.msk.f32.vlgmr.msrb.gmra.mxu3 %vm295_vm2, %v325_v34  ;;  %v1266_v34 = vld [vmem:[%s1929_s4 + $0xb0] sm:$0xff] }
 0x1a7   :  { %838 = vmatpush.msrb.mxu0 %v1266_v34 }
 0x1ad   :  { %v328_v35 = vpop.f32.mrf.mxu2  ;;  %v375_v36 = vpop.f32.mrf.mxu1 }
 0x1ae   :  { %1205 = vmatmul.msk.f32.gmra.mxu3 %vm295_vm2, %v328_v35  ;;  %1200 = vmatmul.msk.f32.vlgmr.msrb.gmra.mxu2 %vm295_vm2, %v375_v36  ;;  %v378_v37 = vpop.f32.mrf.mxu3  ;;  %v1265_v35 = vld [vmem:[%s1929_s4 + $0xa8] sm:$0xff] }
 0x1af   :  { %599 = vmatpush.msrb.mxu2 %v1565_v15  ;;  %839 = vmatpush.msrb.mxu0 %v1265_v35 }
 0x1b1   :  { %600 = vmatpush.msrb.mxu2 %v1567_v17 }
 0x1b3   :  { %601 = vmatpush.msrb.mxu2 %v1573_v60 }
 0x1b5   :  { %602 = vmatpush.msrb.mxu2 %v1579_v18  ;;  %v331_v38 = vpop.f32.mrf.mxu2 }
 0x1b6   :  { %1201 = vmatmul.msk.f32.gmra.mxu2 %vm295_vm2, %v378_v37  ;;  %1206 = vmatmul.msk.f32.gmra.mxu3 %vm295_vm2, %v331_v38  ;;  %v381_v39 = vpop.f32.mrf.mxu3  ;;  %v796_v37 = vpop.f32.mrf.mxu1  ;;  %v1264_v38 = vld [vmem:[%s1929_s4 + $0xa0] sm:$0xff] }
 0x1b7   :  { %840 = vmatpush.msrb.mxu0 %v1264_v38 }
 0x1b8   :  { %1268 = vmatmul.msk.f32.vlgmr.msrb.gmra.mxu0 %vm295_vm2, %v796_v37 }
 0x1bd   :  { %v334_v40 = vpop.f32.mrf.mxu2 }
 0x1be   :  { %1202 = vmatmul.msk.f32.gmra.mxu2 %vm295_vm2, %v381_v39  ;;  %1207 = vmatmul.msk.f32.gmra.mxu3 %vm295_vm2, %v334_v40  ;;  %v384_v41 = vpop.f32.mrf.mxu3  ;;  %v799_v40 = vpop.f32.mrf.mxu1 }
 0x1c0   :  { %1269 = vmatmul.msk.f32.gmra.mxu0 %vm295_vm2, %v799_v40 }
 0x1c6   :  { %1203 = vmatmul.msk.f32.gmra.mxu2 %vm295_vm2, %v384_v41 }
 0x1ce   :  { %1212 = vmatmul.msk.f32.vlgmr.msra.gmra.mxu2 %vm295_vm2, %v1208_v42  ;;  %v802_v42 = vpop.f32.mrf.mxu1 }
 0x1cf   :  { %695 = vmatpush.msra.mxu2 %v1565_v15  ;;  %1270 = vmatmul.msk.f32.gmra.mxu0 %vm295_vm2, %v802_v42 }
 0x1d1   :  { %696 = vmatpush.msra.mxu2 %v1567_v17 }
 0x1d3   :  { %697 = vmatpush.msra.mxu2 %v1573_v60 }
 0x1d5   :  { %698 = vmatpush.msra.mxu2 %v1579_v18 }
 0x1d6   :  { %1213 = vmatmul.msk.f32.gmra.mxu2 %vm295_vm2, %v1209_v43  ;;  %v1283_v43 = vld [vmem:[%s1929_s4 + $0xd8] sm:$0xff] }
 0x1de   :  { %1214 = vmatmul.msk.f32.gmra.mxu2 %vm295_vm2, %v1210_v44  ;;  %v1282_v44 = vld [vmem:[%s1929_s4 + $0xd0] sm:$0xff] }
 0x1e6   :  { %1215 = vmatmul.msk.f32.gmra.mxu2 %vm295_vm2, %v1211_v45  ;;  %v1281_v45 = vld [vmem:[%s1929_s4 + $0xc8] sm:$0xff] }
 0x1ee   :  { %1228 = vmatmul.msk.f32.vlgmr.msrb.gmra.mxu2 %vm295_vm2, %v1224_v46 }
 0x1ef   :  { %887 = vmatpush.msrb.mxu2 %v1565_v15 }
 0x1f1   :  { %888 = vmatpush.msrb.mxu2 %v1567_v17 }
 0x1f3   :  { %889 = vmatpush.msrb.mxu2 %v1573_v60 }
 0x1f5   :  { %890 = vmatpush.msrb.mxu2 %v1579_v18 }
 0x1f6   :  { %1229 = vmatmul.msk.f32.gmra.mxu2 %vm295_vm2, %v1225_v47  ;;  %v805_v47 = vpop.f32.mrf.mxu1 }
 0x1f7   :  { %1271 = vmatmul.msk.f32.gmra.mxu0 %vm295_vm2, %v805_v47 }
 0x1fe   :  { %1230 = vmatmul.msk.f32.gmra.mxu2 %vm295_vm2, %v1226_v49  ;;  %v1299_v49 = vld [vmem:[%s1929_s4 + $0xf8] sm:$0xff] }
 0x1ff   :  { %1029 = vmatpush.msra.mxu0 %v1299_v49 }
 0x201   :  { %1030 = vmatpush.msra.mxu0 %v1298_v50  ;;  %v1329_v50 = vld [vmem:[%s1930_s5] ss:$0 sm:$0xff] }
 0x206   :  { %1231 = vmatmul.msk.f32.gmra.mxu2 %vm295_vm2, %v1227_v51  ;;  %v1297_v51 = vld [vmem:[%s1929_s4 + $0xe8] sm:$0xff] }
 0x207   :  { %1031 = vmatpush.msra.mxu0 %v1297_v51 }
 0x209   :  { %1032 = vmatpush.msra.mxu0 %v1296_v54 }
 0x20e   :  { %1244 = vmatmul.msk.f32.vlgmr.msra.gmra.mxu2 %vm295_vm2, %v1240_v53  ;;  %v988_v53 = vpop.f32.mrf.mxu1 }
 0x20f   :  { %1079 = vmatpush.msra.mxu2 %v1565_v15  ;;  %1300 = vmatmul.msk.f32.vlgmr.msra.gmra.mxu0 %vm295_vm2, %v988_v53 }
 0x211   :  { %1080 = vmatpush.msra.mxu2 %v1567_v17 }
 0x213   :  { %1081 = vmatpush.msra.mxu2 %v1573_v60  ;;  %v1235_v60 = vld [vmem:[%s1929_s4 + $0x78] sm:$0xff] }
 0x214   :  { %645 = vmatpush.msrb.mxu3 %v1235_v60 }
 0x215   :  { %1082 = vmatpush.msra.mxu2 %v1579_v18  ;;  %v1234_v18 = vld [vmem:[%s1929_s4 + $0x70] sm:$0xff] }
 0x216   :  { %1245 = vmatmul.msk.f32.gmra.mxu2 %vm295_vm2, %v1241_v55  ;;  %646 = vmatpush.msrb.mxu3 %v1234_v18  ;;  %v991_v56 = vpop.f32.mrf.mxu1 }
 0x217   :  { %1301 = vmatmul.msk.f32.gmra.mxu0 %vm295_vm2, %v991_v56 }
 0x218   :  { %647 = vmatpush.msrb.mxu3 %v1233_v20 }
 0x21a   :  { %648 = vmatpush.msrb.mxu3 %v1232_v21 }
 0x21e   :  { %1246 = vmatmul.msk.f32.gmra.mxu2 %vm295_vm2, %v1242_v57  ;;  %v994_v58 = vpop.f32.mrf.mxu1 }
 0x21f   :  { %1302 = vmatmul.msk.f32.gmra.mxu0 %vm295_vm2, %v994_v58 }
 0x226   :  { %1247 = vmatmul.msk.f32.gmra.mxu2 %vm295_vm2, %v1243_v59  ;;  %v1315_v59 = vld [vmem:[%s1929_s4 + $0x118] sm:$0xff] }
 0x229   :  { %v462_v1 = vpop.f32.mrf.mxu3 }
 0x22e   :  { %1276 = vmatmul.msk.f32.vlgmr.msrb.gmra.mxu2 %vm295_vm2, %v1272_v0  ;;  %v997_v0 = vpop.f32.mrf.mxu1 }
 0x22f   :  { %1303 = vmatmul.msk.f32.gmra.mxu0 %vm295_vm2, %v997_v0 }
 0x231   :  { %v421_v3 = vpop.f32.mrf.mxu2  ;;  %v465_v8 = vpop.f32.mrf.mxu3 }
 0x232   :  { %v1778_v6 = vadd.f32 %v462_v1, %v421_v3  ;;  %v1312_v1 = vld [vmem:[%s1929_s4 + $0x100] sm:$0xff] }
 0x236   :  { %1277 = vmatmul.msk.f32.gmra.mxu2 %vm295_vm2, %v1273_v7 }
 0x239   :  { %v424_v9 = vpop.f32.mrf.mxu2  ;;  %v468_v12 = vpop.f32.mrf.mxu3 }
 0x23a   :  { %v1785_v10 = vadd.f32 %v465_v8, %v424_v9 }
 0x23e   :  { %1278 = vmatmul.msk.f32.gmra.mxu2 %vm295_vm2, %v1274_v11 }
 0x241   :  { %v427_v14 = vpop.f32.mrf.mxu2  ;;  %v471_v5 = vpop.f32.mrf.mxu3 }
 0x242   :  { %v1791_v15 = vadd.f32 %v468_v12, %v427_v14 }
 0x246   :  { %1279 = vmatmul.msk.f32.gmra.mxu2 %vm295_vm2, %v1275_v16 }
 0x249   :  { %v1797_v17 = vpop.f32.mrf.mxu2 }
 0x24a   :  { %v472_v20 = vadd.f32 %v471_v5, %v1797_v17 }
 0x24e   :  { %1308 = vmatmul.msk.f32.vlgmr.msra.gmra.mxu2 %vm295_vm2, %v1304_v19 }
 0x251   :  { %v508_v13 = vpop.f32.mrf.mxu2 }
 0x252   :  { %1220 = vmatmul.msk.f32.vlgmr.msra.gmra.mxu3 %vm295_vm2, %v508_v13 }
 0x253   :  { %741 = vmatpush.msra.mxu3 %v1251_v28 }
 0x255   :  { %742 = vmatpush.msra.mxu3 %v1250_v29 }
 0x256   :  { %1309 = vmatmul.msk.f32.gmra.mxu2 %vm295_vm2, %v1305_v22 }
 0x257   :  { %743 = vmatpush.msra.mxu3 %v1249_v30 }
 0x259   :  { %v511_v23 = vpop.f32.mrf.mxu2  ;;  %744 = vmatpush.msra.mxu3 %v1248_v32 }
 0x25a   :  { %1221 = vmatmul.msk.f32.gmra.mxu3 %vm295_vm2, %v511_v23 }
 0x25e   :  { %1310 = vmatmul.msk.f32.gmra.mxu2 %vm295_vm2, %v1306_v24 }
 0x261   :  { %v514_v25 = vpop.f32.mrf.mxu2 }
 0x262   :  { %1222 = vmatmul.msk.f32.gmra.mxu3 %vm295_vm2, %v514_v25 }
 0x266   :  { %1311 = vmatmul.msk.f32.gmra.mxu2 %vm295_vm2, %v1307_v26 }
 0x269   :  { %v517_v27 = vpop.f32.mrf.mxu2 }
 0x26a   :  { %1223 = vmatmul.msk.f32.gmra.mxu3 %vm295_vm2, %v517_v27 }
 0x271   :  { %v604_v31 = vpop.f32.mrf.mxu2 }
 0x272   :  { %1236 = vmatmul.msk.f32.vlgmr.msrb.gmra.mxu3 %vm295_vm2, %v604_v31 }
 0x273   :  { %933 = vmatpush.msrb.mxu3 %v1283_v43 }
 0x275   :  { %934 = vmatpush.msrb.mxu3 %v1282_v44 }
 0x277   :  { %935 = vmatpush.msrb.mxu3 %v1281_v45 }
 0x279   :  { %v607_v36 = vpop.f32.mrf.mxu2  ;;  %936 = vmatpush.msrb.mxu3 %v1280_v48 }
 0x27a   :  { %1237 = vmatmul.msk.f32.gmra.mxu3 %vm295_vm2, %v607_v36 }
 0x281   :  { %v610_v39 = vpop.f32.mrf.mxu2 }
 0x282   :  { %1238 = vmatmul.msk.f32.gmra.mxu3 %vm295_vm2, %v610_v39 }
 0x289   :  { %v613_v41 = vpop.f32.mrf.mxu2 }
 0x28a   :  { %1239 = vmatmul.msk.f32.gmra.mxu3 %vm295_vm2, %v613_v41 }
 0x291   :  { %v700_v46 = vpop.f32.mrf.mxu2 }
 0x292   :  { %1252 = vmatmul.msk.f32.vlgmr.msra.gmra.mxu3 %vm295_vm2, %v700_v46 }
 0x293   :  { %1125 = vmatpush.msra.mxu3 %v1315_v59 }
 0x295   :  { %1126 = vmatpush.msra.mxu3 %v1314_v61 }
 0x297   :  { %1127 = vmatpush.msra.mxu3 %v1313_v62 }
 0x299   :  { %v703_v52 = vpop.f32.mrf.mxu2  ;;  %1128 = vmatpush.msra.mxu3 %v1312_v1 }
 0x29a   :  { %1253 = vmatmul.msk.f32.gmra.mxu3 %vm295_vm2, %v703_v52 }
 0x2a1   :  { %v706_v55 = vpop.f32.mrf.mxu2 }
 0x2a2   :  { %1254 = vmatmul.msk.f32.gmra.mxu3 %vm295_vm2, %v706_v55 }
 0x2a9   :  { %v709_v57 = vpop.f32.mrf.mxu2 }
 0x2aa   :  { %1255 = vmatmul.msk.f32.gmra.mxu3 %vm295_vm2, %v709_v57 }
 0x2b1   :  { %v892_v63 = vpop.f32.mrf.mxu2 }
 0x2b2   :  { %1284 = vmatmul.msk.f32.vlgmr.msrb.gmra.mxu3 %vm295_vm2, %v892_v63 }
 0x2b9   :  { %v895_v2 = vpop.f32.mrf.mxu2 }
 0x2ba   :  { %1285 = vmatmul.msk.f32.gmra.mxu3 %vm295_vm2, %v895_v2 }
 0x2c1   :  { %v898_v3 = vpop.f32.mrf.mxu2 }
 0x2c2   :  { %1286 = vmatmul.msk.f32.gmra.mxu3 %vm295_vm2, %v898_v3 }
 0x2c9   :  { %v901_v4 = vpop.f32.mrf.mxu2 }
 0x2ca   :  { %1287 = vmatmul.msk.f32.gmra.mxu3 %vm295_vm2, %v901_v4 }
 0x2d1   :  { %v1084_v7 = vpop.f32.mrf.mxu2 }
 0x2d2   :  { %1316 = vmatmul.msk.f32.vlgmr.msra.gmra.mxu3 %vm295_vm2, %v1084_v7 }
 0x2d5   :  { %v554_v8 = vpop.f32.mrf.mxu3 }
 0x2d6   :  { %v566_v9 = vadd.f32 %v554_v8, %v1778_v6 }
 0x2d9   :  { %v1087_v11 = vpop.f32.mrf.mxu2 }
 0x2da   :  { %1317 = vmatmul.msk.f32.gmra.mxu3 %vm295_vm2, %v1087_v11 }
 0x2dd   :  { %v557_v12 = vpop.f32.mrf.mxu3 }
 0x2de   :  { %v567_v14 = vadd.f32 %v557_v12, %v1785_v10 }
 0x2e1   :  { %v1090_v16 = vpop.f32.mrf.mxu2 }
 0x2e2   :  { %1318 = vmatmul.msk.f32.gmra.mxu3 %vm295_vm2, %v1090_v16 }
 0x2e5   :  { %v560_v60 = vpop.f32.mrf.mxu3 }
 0x2e6   :  { %v568_v18 = vadd.f32 %v560_v60, %v1791_v15  ;;  %v842_v15 = vpop.f32.mrf.mxu0 }
 0x2e9   :  { %v1093_v19 = vpop.f32.mrf.mxu2 }
 0x2ea   :  { %1319 = vmatmul.msk.f32.gmra.mxu3 %vm295_vm2, %v1093_v19 }
 0x2ed   :  { %v563_v13 = vpop.f32.mrf.mxu3 }
 0x2ee   :  { %v569_v21 = vadd.f32 %v563_v13, %v472_v20  ;;  %v845_v34 = vpop.f32.mrf.mxu0 }
 0x2f5   :  { %v650_v6 = vpop.f32.mrf.mxu3 }
 0x2f6   :  { %v662_v22 = vadd.f32 %v650_v6, %v566_v9  ;;  %v848_v36 = vpop.f32.mrf.mxu0 }
 0x2fd   :  { %v653_v23 = vpop.f32.mrf.mxu3 }
 0x2fe   :  { %v663_v24 = vadd.f32 %v653_v23, %v567_v14  ;;  %v851_v38 = vpop.f32.mrf.mxu0 }
 0x305   :  { %v656_v25 = vpop.f32.mrf.mxu3 }
 0x306   :  { %v664_v26 = vadd.f32 %v656_v25, %v568_v18  ;;  %v1034_v40 = vpop.f32.mrf.mxu0 }
 0x30d   :  { %v659_v10 = vpop.f32.mrf.mxu3 }
 0x30e   :  { %v665_v27 = vadd.f32 %v659_v10, %v569_v21  ;;  %v1037_v44 = vpop.f32.mrf.mxu0 }
 0x315   :  { %v746_v28 = vpop.f32.mrf.mxu3 }
 0x316   :  { %v758_v29 = vadd.f32 %v746_v28, %v662_v22  ;;  %v1040_v55 = vpop.f32.mrf.mxu0 }
 0x318   :  { %v854_v42 = vadd.f32 %v842_v15, %v758_v29 }
 0x31d   :  { %v749_v30 = vpop.f32.mrf.mxu3 }
 0x31e   :  { %v759_v31 = vadd.f32 %v749_v30, %v663_v24  ;;  %v1043_v4 = vpop.f32.mrf.mxu0 }
 0x320   :  { %v855_v46 = vadd.f32 %v845_v34, %v759_v31 }
 0x325   :  { %v752_v32 = vpop.f32.mrf.mxu3 }
 0x326   :  { %v760_v33 = vadd.f32 %v752_v32, %v664_v26 }
 0x328   :  { %v856_v57 = vadd.f32 %v848_v36, %v760_v33 }
 0x32d   :  { %v755_v35 = vpop.f32.mrf.mxu3 }
 0x32e   :  { %v761_v58 = vadd.f32 %v755_v35, %v665_v27 }
 0x330   :  { %v857_v1 = vadd.f32 %v851_v38, %v761_v58 }
 0x335   :  { %v938_v17 = vpop.f32.mrf.mxu3 }
 0x336   :  { %v950_v43 = vadd.f32 %v938_v17, %v854_v42 }
 0x338   :  { %v1046_v47 = vadd.f32 %v1034_v40, %v950_v43 }
 0x33d   :  { %v941_v37 = vpop.f32.mrf.mxu3 }
 0x33e   :  { %v951_v48 = vadd.f32 %v941_v37, %v855_v46 }
 0x340   :  { %v1047_v51 = vadd.f32 %v1037_v44, %v951_v48 }
 0x345   :  { %v944_v39 = vpop.f32.mrf.mxu3 }
 0x346   :  { %v952_v62 = vadd.f32 %v944_v39, %v856_v57 }
 0x348   :  { %v1048_v2 = vadd.f32 %v1040_v55, %v952_v62 }
 0x34d   :  { %v947_v41 = vpop.f32.mrf.mxu3 }
 0x34e   :  { %v953_v3 = vadd.f32 %v947_v41, %v857_v1 }
 0x350   :  { %v1049_v7 = vadd.f32 %v1043_v4, %v953_v3 }
 0x355   :  { %v1130_v45 = vpop.f32.mrf.mxu3 }
 0x356   :  { %v1142_v49 = vadd.f32 %v1130_v45, %v1046_v47 }
 0x358   :  { %v1150_v53 = vadd.f32 %v1329_v50, %v1142_v49 }
 0x35a   :  { %v1154_v59 = vmax.f32 %v1150_v53, 0.0 }
 0x35d   :  { %v1133_v52 = vpop.f32.mrf.mxu3 }
 0x35e   :  { %v1143_v54 = vadd.f32 %v1133_v52, %v1047_v51 }
 0x360   :  { %v1151_v56 = vadd.f32 %v1329_v50, %v1143_v54 }
 0x362   :  { %v1155_v61 = vmax.f32 %v1151_v56, 0.0 }
 0x364   :  { %v1158_v63 = vmax.f32 %v1154_v59, %v1155_v61 }
 0x365   :  { %v1136_v0 = vpop.f32.mrf.mxu3 }
 0x366   :  { %v1144_v5 = vadd.f32 %v1136_v0, %v1048_v2 }
 0x368   :  { %v1152_v9 = vadd.f32 %v1329_v50, %v1144_v5 }
 0x36a   :  { %v1156_v14 = vmax.f32 %v1152_v9, 0.0 }
 0x36d   :  { %v1139_v8 = vpop.f32.mrf.mxu3 }
 0x36e   :  { %v1145_v11 = vadd.f32 %v1139_v8, %v1049_v7 }
 0x370   :  { %v1153_v12 = vadd.f32 %v1329_v50, %v1145_v11 }
 0x372   :  { %v1157_v16 = vmax.f32 %v1153_v12, 0.0 }
 0x374   :  { %v1159_v60 = vmax.f32 %v1156_v14, %v1157_v16 }
 0x376   :  { %v1160_v18 = vmax.f32 %v1158_v63, %v1159_v60 }
 0x378   :  { %1162 = vst.msk [vmem:[%s1931_s6] sm:$0x3] %vm1161_vm3, %v1160_v18 }

// kernel: solus_forward.3
= control target key start
LH: loop header
LB: loop body
LE: loop exit
PB: predicated region body
PF: predicated region fallthrough
CT: control target
= control target key end

     0   :  { %s1877_s12 = smov 0   ;;  %s1879_s13 = smov 0   ;;  %s2761_s0 = inlined_call_operand.vmem [shape: f32[2,64], index: 0, kind: input, shape index: {}]   ;;  %s2762_s1 = inlined_call_operand.vmem [shape: f32[64,15360], index: 1, kind: input, shape index: {}]   ;;  %s2763_s2 = inlined_call_operand.vmem [shape: f32[1,15360], index: 2, kind: input, shape index: {}]   ;;  %s2764_s3 = inlined_call_operand.vmem [shape: f32[2,15360], index: 3, kind: output, shape index: {}]  }
   0x1   :  { %s1881_s14 = smov 0  }
   0x2 LB: > { %s1767_s15 = sadd.s32 4294967295, %s1855_s14   ;;  %s1894_s16 = sadd.s32 1, %s1855_s14   ;;  %s1855_s14 = sphi %s1881_s14, %s2767_s14   ;;  %s1851_s13 = sphi %s1879_s13, %s2766_s13   ;;  %s1847_s12 = sphi %s1877_s12, %s2765_s12  }
   0x3   : > { %s38_s17 = ssub.s32 %s1855_s14, %s1894_s16  ;;  %s41_s18 = sadd.s32 1, %s1851_s13 }
   0x4   : > { %p39_p0 = scmp.eq.s32.totalorder %s38_s17, 0  ;;  %p48_p1 = scmp.ne.s32.totalorder %s1851_s13, %s1847_s12 }
   0x5   : > { %p49_p2 = scmp.eq.s32.totalorder %s1855_s14, 0  ;;  %p1770_p4 = scmp.ge.s32.totalorder %s1855_s14, 4 }
   0x6   : > { %s1903_s19 = scalar_select %p39_p0, %s1851_s13, %s41_s18  }
   0x7   : > { %p50_p3 = por %p49_p2, %p48_p1  ;;  %129 = sbr.rel (%p1770_p4) target bundleno = 257 (0x101), region = 20 }
   0xc   : > { %132 = sbr.rel (!%p50_p3) target bundleno = 257 (0x101), region = 24  ;;  %s134_s20 = sand.u32 (%p50_p3), 1, %s1851_s13  }
   0xd   : > { %s1806_s21 = smul.u32 (%p50_p3), 240, %s1855_s14 }
   0xe   : > { %s1807_s22 = smul.u32 (%p50_p3), 1920, %s134_s20 }
   0xf   : > { %s1911_s25 = scalar_lea.vmem (%p50_p3), %s2762_s1, %s1806_s21 }
  0x10   : > { %v152_v0 = vld [vmem:[%s1911_s25] sm:$0xff] (%p50_p3)  ;;  %v154_v1 = vld [vmem:[%s1911_s25 + $0x8] sm:$0xff] (%p50_p3)  ;;  %v156_v2 = vld [vmem:[%s1911_s25 + $0x10] sm:$0xff] (%p50_p3)  ;;  %s1916_s26 = scalar_lea.vmem (%p50_p3), [#allocation2], %s1807_s22 }
  0x11   : > { %153 = vst [vmem:[%s1916_s26] sm:$0xff] %v152_v0  ;;  %v158_v3 = vld [vmem:[%s1911_s25 + $0x18] sm:$0xff]  ;;  %v160_v4 = vld [vmem:[%s1911_s25 + $0x20] sm:$0xff]  ;;  %v162_v5 = vld [vmem:[%s1911_s25 + $0x28] sm:$0xff] }
  0x12   : > { %155 = vst [vmem:[%s1916_s26 + $0x8] sm:$0xff] %v154_v1  ;;  %v164_v6 = vld [vmem:[%s1911_s25 + $0x30] sm:$0xff]  ;;  %v166_v7 = vld [vmem:[%s1911_s25 + $0x38] sm:$0xff]  ;;  %v168_v8 = vld [vmem:[%s1911_s25 + $0x40] sm:$0xff] }
  0x13   : > { %157 = vst [vmem:[%s1916_s26 + $0x10] sm:$0xff] %v156_v2  ;;  %v170_v9 = vld [vmem:[%s1911_s25 + $0x48] sm:$0xff]  ;;  %v172_v10 = vld [vmem:[%s1911_s25 + $0x50] sm:$0xff]  ;;  %v174_v11 = vld [vmem:[%s1911_s25 + $0x58] sm:$0xff] }
  0x14   : > { %159 = vst [vmem:[%s1916_s26 + $0x18] sm:$0xff] %v158_v3  ;;  %v176_v12 = vld [vmem:[%s1911_s25 + $0x60] sm:$0xff]  ;;  %v178_v13 = vld [vmem:[%s1911_s25 + $0x68] sm:$0xff]  ;;  %v180_v14 = vld [vmem:[%s1911_s25 + $0x70] sm:$0xff] }
  0x15   : > { %161 = vst [vmem:[%s1916_s26 + $0x20] sm:$0xff] %v160_v4  ;;  %v182_v15 = vld [vmem:[%s1911_s25 + $0x78] sm:$0xff]  ;;  %v184_v16 = vld [vmem:[%s1911_s25 + $0x80] sm:$0xff]  ;;  %v186_v17 = vld [vmem:[%s1911_s25 + $0x88] sm:$0xff] }
  0x16   : > { %163 = vst [vmem:[%s1916_s26 + $0x28] sm:$0xff] %v162_v5  ;;  %v188_v18 = vld [vmem:[%s1911_s25 + $0x90] sm:$0xff]  ;;  %v190_v19 = vld [vmem:[%s1911_s25 + $0x98] sm:$0xff]  ;;  %v192_v20 = vld [vmem:[%s1911_s25 + $0xa0] sm:$0xff] }
  0x17   : > { %165 = vst [vmem:[%s1916_s26 + $0x30] sm:$0xff] %v164_v6  ;;  %v194_v21 = vld [vmem:[%s1911_s25 + $0xa8] sm:$0xff]  ;;  %v196_v22 = vld [vmem:[%s1911_s25 + $0xb0] sm:$0xff]  ;;  %v198_v23 = vld [vmem:[%s1911_s25 + $0xb8] sm:$0xff] }
  0x18   : > { %167 = vst [vmem:[%s1916_s26 + $0x38] sm:$0xff] %v166_v7  ;;  %v200_v24 = vld [vmem:[%s1911_s25 + $0xc0] sm:$0xff]  ;;  %v202_v25 = vld [vmem:[%s1911_s25 + $0xc8] sm:$0xff]  ;;  %v204_v26 = vld [vmem:[%s1911_s25 + $0xd0] sm:$0xff] }
  0x19   : > { %169 = vst [vmem:[%s1916_s26 + $0x40] sm:$0xff] %v168_v8  ;;  %v206_v27 = vld [vmem:[%s1911_s25 + $0xd8] sm:$0xff]  ;;  %v208_v28 = vld [vmem:[%s1911_s25 + $0xe0] sm:$0xff]  ;;  %v210_v29 = vld [vmem:[%s1911_s25 + $0xe8] sm:$0xff] }
  0x1a   : > { %171 = vst [vmem:[%s1916_s26 + $0x48] sm:$0xff] %v170_v9  ;;  %v212_v30 = vld [vmem:[%s1911_s25 + $0x3c0] sm:$0xff]  ;;  %v214_v31 = vld [vmem:[%s1911_s25 + $0x3c8] sm:$0xff]  ;;  %v216_v32 = vld [vmem:[%s1911_s25 + $0x3d0] sm:$0xff] }
  0x1b   : > { %173 = vst [vmem:[%s1916_s26 + $0x50] sm:$0xff] %v172_v10  ;;  %v218_v33 = vld [vmem:[%s1911_s25 + $0x3d8] sm:$0xff]  ;;  %v220_v34 = vld [vmem:[%s1911_s25 + $0x3e0] sm:$0xff]  ;;  %v222_v35 = vld [vmem:[%s1911_s25 + $0x3e8] sm:$0xff] }
  0x1c   : > { %175 = vst [vmem:[%s1916_s26 + $0x58] sm:$0xff] %v174_v11  ;;  %v224_v36 = vld [vmem:[%s1911_s25 + $0x3f0] sm:$0xff]  ;;  %v226_v37 = vld [vmem:[%s1911_s25 + $0x3f8] sm:$0xff]  ;;  %v228_v38 = vld [vmem:[%s1911_s25 + $0x400] sm:$0xff] }
  0x1d   : > { %177 = vst [vmem:[%s1916_s26 + $0x60] sm:$0xff] %v176_v12  ;;  %v230_v39 = vld [vmem:[%s1911_s25 + $0x408] sm:$0xff]  ;;  %v232_v40 = vld [vmem:[%s1911_s25 + $0x410] sm:$0xff]  ;;  %v234_v41 = vld [vmem:[%s1911_s25 + $0x418] sm:$0xff] }
  0x1e   : > { %179 = vst [vmem:[%s1916_s26 + $0x68] sm:$0xff] %v178_v13  ;;  %v236_v42 = vld [vmem:[%s1911_s25 + $0x420] sm:$0xff]  ;;  %v238_v43 = vld [vmem:[%s1911_s25 + $0x428] sm:$0xff]  ;;  %v240_v44 = vld [vmem:[%s1911_s25 + $0x430] sm:$0xff] }
  0x1f   : > { %181 = vst [vmem:[%s1916_s26 + $0x70] sm:$0xff] %v180_v14  ;;  %v242_v45 = vld [vmem:[%s1911_s25 + $0x438] sm:$0xff]  ;;  %v244_v46 = vld [vmem:[%s1911_s25 + $0x440] sm:$0xff]  ;;  %v246_v47 = vld [vmem:[%s1911_s25 + $0x448] sm:$0xff] }
  0x20   : > { %183 = vst [vmem:[%s1916_s26 + $0x78] sm:$0xff] %v182_v15  ;;  %v248_v48 = vld [vmem:[%s1911_s25 + $0x450] sm:$0xff]  ;;  %v250_v49 = vld [vmem:[%s1911_s25 + $0x458] sm:$0xff]  ;;  %v252_v50 = vld [vmem:[%s1911_s25 + $0x460] sm:$0xff] }
  0x21   : > { %185 = vst [vmem:[%s1916_s26 + $0x80] sm:$0xff] %v184_v16  ;;  %v254_v51 = vld [vmem:[%s1911_s25 + $0x468] sm:$0xff]  ;;  %v256_v52 = vld [vmem:[%s1911_s25 + $0x470] sm:$0xff]  ;;  %v258_v53 = vld [vmem:[%s1911_s25 + $0x478] sm:$0xff] }
  0x22   : > { %187 = vst [vmem:[%s1916_s26 + $0x88] sm:$0xff] %v186_v17  ;;  %v260_v54 = vld [vmem:[%s1911_s25 + $0x480] sm:$0xff]  ;;  %v262_v55 = vld [vmem:[%s1911_s25 + $0x488] sm:$0xff]  ;;  %v264_v56 = vld [vmem:[%s1911_s25 + $0x490] sm:$0xff] }
  0x23   : > { %189 = vst [vmem:[%s1916_s26 + $0x90] sm:$0xff] %v188_v18  ;;  %v266_v57 = vld [vmem:[%s1911_s25 + $0x498] sm:$0xff]  ;;  %v268_v58 = vld [vmem:[%s1911_s25 + $0x4a0] sm:$0xff]  ;;  %v270_v59 = vld [vmem:[%s1911_s25 + $0x4a8] sm:$0xff] }
  0x24   : > { %191 = vst [vmem:[%s1916_s26 + $0x98] sm:$0xff] %v190_v19  ;;  %v272_v60 = vld [vmem:[%s1911_s25 + $0x780] sm:$0xff]  ;;  %v274_v61 = vld [vmem:[%s1911_s25 + $0x788] sm:$0xff]  ;;  %v276_v62 = vld [vmem:[%s1911_s25 + $0x790] sm:$0xff] }
  0x25   : > { %193 = vst [vmem:[%s1916_s26 + $0xa0] sm:$0xff] %v192_v20  ;;  %v278_v63 = vld [vmem:[%s1911_s25 + $0x798] sm:$0xff]  ;;  %v280_v0 = vld [vmem:[%s1911_s25 + $0x7a0] sm:$0xff]  ;;  %v282_v1 = vld [vmem:[%s1911_s25 + $0x7a8] sm:$0xff] }
  0x26   : > { %195 = vst [vmem:[%s1916_s26 + $0xa8] sm:$0xff] %v194_v21  ;;  %v284_v2 = vld [vmem:[%s1911_s25 + $0x7b0] sm:$0xff]  ;;  %v286_v3 = vld [vmem:[%s1911_s25 + $0x7b8] sm:$0xff]  ;;  %v288_v4 = vld [vmem:[%s1911_s25 + $0x7c0] sm:$0xff] }
  0x27   : > { %197 = vst [vmem:[%s1916_s26 + $0xb0] sm:$0xff] %v196_v22  ;;  %v290_v5 = vld [vmem:[%s1911_s25 + $0x7c8] sm:$0xff]  ;;  %v292_v6 = vld [vmem:[%s1911_s25 + $0x7d0] sm:$0xff]  ;;  %v294_v7 = vld [vmem:[%s1911_s25 + $0x7d8] sm:$0xff] }
  0x28   : > { %199 = vst [vmem:[%s1916_s26 + $0xb8] sm:$0xff] %v198_v23  ;;  %v296_v8 = vld [vmem:[%s1911_s25 + $0x7e0] sm:$0xff]  ;;  %v298_v9 = vld [vmem:[%s1911_s25 + $0x7e8] sm:$0xff]  ;;  %v300_v10 = vld [vmem:[%s1911_s25 + $0x7f0] sm:$0xff] }
  0x29   : > { %201 = vst [vmem:[%s1916_s26 + $0xc0] sm:$0xff] %v200_v24  ;;  %v302_v11 = vld [vmem:[%s1911_s25 + $0x7f8] sm:$0xff]  ;;  %v304_v12 = vld [vmem:[%s1911_s25 + $0x800] sm:$0xff]  ;;  %v306_v13 = vld [vmem:[%s1911_s25 + $0x808] sm:$0xff] }
  0x2a   : > { %203 = vst [vmem:[%s1916_s26 + $0xc8] sm:$0xff] %v202_v25  ;;  %v308_v14 = vld [vmem:[%s1911_s25 + $0x810] sm:$0xff]  ;;  %v310_v15 = vld [vmem:[%s1911_s25 + $0x818] sm:$0xff]  ;;  %v312_v16 = vld [vmem:[%s1911_s25 + $0x820] sm:$0xff] }
  0x2b   : > { %205 = vst [vmem:[%s1916_s26 + $0xd0] sm:$0xff] %v204_v26  ;;  %v314_v17 = vld [vmem:[%s1911_s25 + $0x828] sm:$0xff]  ;;  %v316_v18 = vld [vmem:[%s1911_s25 + $0x830] sm:$0xff]  ;;  %v318_v19 = vld [vmem:[%s1911_s25 + $0x838] sm:$0xff] }
  0x2c   : > { %207 = vst [vmem:[%s1916_s26 + $0xd8] sm:$0xff] %v206_v27  ;;  %v320_v20 = vld [vmem:[%s1911_s25 + $0x840] sm:$0xff]  ;;  %v322_v21 = vld [vmem:[%s1911_s25 + $0x848] sm:$0xff]  ;;  %v324_v22 = vld [vmem:[%s1911_s25 + $0x850] sm:$0xff] }
  0x2d   : > { %209 = vst [vmem:[%s1916_s26 + $0xe0] sm:$0xff] %v208_v28  ;;  %v326_v23 = vld [vmem:[%s1911_s25 + $0x858] sm:$0xff]  ;;  %v328_v24 = vld [vmem:[%s1911_s25 + $0x860] sm:$0xff]  ;;  %v330_v25 = vld [vmem:[%s1911_s25 + $0x868] sm:$0xff] }
  0x2e   : > { %211 = vst [vmem:[%s1916_s26 + $0xe8] sm:$0xff] %v210_v29  ;;  %v332_v26 = vld [vmem:[%s1911_s25 + $0xb40] sm:$0xff]  ;;  %v334_v27 = vld [vmem:[%s1911_s25 + $0xb48] sm:$0xff]  ;;  %v336_v28 = vld [vmem:[%s1911_s25 + $0xb50] sm:$0xff] }
  0x2f   : > { %213 = vst [vmem:[%s1916_s26 + $0xf0] sm:$0xff] %v212_v30  ;;  %v338_v29 = vld [vmem:[%s1911_s25 + $0xb58] sm:$0xff]  ;;  %v340_v30 = vld [vmem:[%s1911_s25 + $0xb60] sm:$0xff] }
  0x30   : > { %215 = vst [vmem:[%s1916_s26 + $0xf8] sm:$0xff] %v214_v31  ;;  %v342_v31 = vld [vmem:[%s1911_s25 + $0xb68] sm:$0xff] }
  0x31   : > { %217 = vst [vmem:[%s1916_s26 + $0x100] sm:$0xff] %v216_v32  ;;  %v344_v32 = vld [vmem:[%s1911_s25 + $0xb70] sm:$0xff] }
  0x32   : > { %219 = vst [vmem:[%s1916_s26 + $0x108] sm:$0xff] %v218_v33  ;;  %v346_v33 = vld [vmem:[%s1911_s25 + $0xb78] sm:$0xff] }
  0x33   : > { %221 = vst [vmem:[%s1916_s26 + $0x110] sm:$0xff] %v220_v34  ;;  %v348_v34 = vld [vmem:[%s1911_s25 + $0xb80] sm:$0xff] }
  0x34   : > { %223 = vst [vmem:[%s1916_s26 + $0x118] sm:$0xff] %v222_v35  ;;  %v350_v35 = vld [vmem:[%s1911_s25 + $0xb88] sm:$0xff] }
  0x35   : > { %225 = vst [vmem:[%s1916_s26 + $0x120] sm:$0xff] %v224_v36  ;;  %v352_v36 = vld [vmem:[%s1911_s25 + $0xb90] sm:$0xff] }
  0x36   : > { %227 = vst [vmem:[%s1916_s26 + $0x128] sm:$0xff] %v226_v37  ;;  %v354_v37 = vld [vmem:[%s1911_s25 + $0xb98] sm:$0xff] }
  0x37   : > { %229 = vst [vmem:[%s1916_s26 + $0x130] sm:$0xff] %v228_v38  ;;  %v356_v38 = vld [vmem:[%s1911_s25 + $0xba0] sm:$0xff] }
  0x38   : > { %231 = vst [vmem:[%s1916_s26 + $0x138] sm:$0xff] %v230_v39  ;;  %v358_v39 = vld [vmem:[%s1911_s25 + $0xba8] sm:$0xff] }
  0x39   : > { %233 = vst [vmem:[%s1916_s26 + $0x140] sm:$0xff] %v232_v40  ;;  %v360_v40 = vld [vmem:[%s1911_s25 + $0xbb0] sm:$0xff] }
  0x3a   : > { %235 = vst [vmem:[%s1916_s26 + $0x148] sm:$0xff] %v234_v41  ;;  %v362_v41 = vld [vmem:[%s1911_s25 + $0xbb8] sm:$0xff] }
  0x3b   : > { %237 = vst [vmem:[%s1916_s26 + $0x150] sm:$0xff] %v236_v42  ;;  %v364_v42 = vld [vmem:[%s1911_s25 + $0xbc0] sm:$0xff] }
  0x3c   : > { %239 = vst [vmem:[%s1916_s26 + $0x158] sm:$0xff] %v238_v43  ;;  %v366_v43 = vld [vmem:[%s1911_s25 + $0xbc8] sm:$0xff] }
  0x3d   : > { %241 = vst [vmem:[%s1916_s26 + $0x160] sm:$0xff] %v240_v44  ;;  %v368_v44 = vld [vmem:[%s1911_s25 + $0xbd0] sm:$0xff] }
  0x3e   : > { %243 = vst [vmem:[%s1916_s26 + $0x168] sm:$0xff] %v242_v45  ;;  %v370_v45 = vld [vmem:[%s1911_s25 + $0xbd8] sm:$0xff] }
  0x3f   : > { %245 = vst [vmem:[%s1916_s26 + $0x170] sm:$0xff] %v244_v46  ;;  %v372_v46 = vld [vmem:[%s1911_s25 + $0xbe0] sm:$0xff] }
  0x40   : > { %247 = vst [vmem:[%s1916_s26 + $0x178] sm:$0xff] %v246_v47  ;;  %v374_v47 = vld [vmem:[%s1911_s25 + $0xbe8] sm:$0xff] }
  0x41   : > { %249 = vst [vmem:[%s1916_s26 + $0x180] sm:$0xff] %v248_v48  ;;  %v376_v48 = vld [vmem:[%s1911_s25 + $0xbf0] sm:$0xff] }
  0x42   : > { %251 = vst [vmem:[%s1916_s26 + $0x188] sm:$0xff] %v250_v49  ;;  %v378_v49 = vld [vmem:[%s1911_s25 + $0xbf8] sm:$0xff] }
  0x43   : > { %253 = vst [vmem:[%s1916_s26 + $0x190] sm:$0xff] %v252_v50  ;;  %v380_v50 = vld [vmem:[%s1911_s25 + $0xc00] sm:$0xff] }
  0x44   : > { %255 = vst [vmem:[%s1916_s26 + $0x198] sm:$0xff] %v254_v51  ;;  %v382_v51 = vld [vmem:[%s1911_s25 + $0xc08] sm:$0xff] }
  0x45   : > { %257 = vst [vmem:[%s1916_s26 + $0x1a0] sm:$0xff] %v256_v52  ;;  %v384_v52 = vld [vmem:[%s1911_s25 + $0xc10] sm:$0xff] }
  0x46   : > { %259 = vst [vmem:[%s1916_s26 + $0x1a8] sm:$0xff] %v258_v53  ;;  %v386_v53 = vld [vmem:[%s1911_s25 + $0xc18] sm:$0xff] }
  0x47   : > { %261 = vst [vmem:[%s1916_s26 + $0x1b0] sm:$0xff] %v260_v54  ;;  %v388_v54 = vld [vmem:[%s1911_s25 + $0xc20] sm:$0xff] }
  0x48   : > { %263 = vst [vmem:[%s1916_s26 + $0x1b8] sm:$0xff] %v262_v55  ;;  %v390_v55 = vld [vmem:[%s1911_s25 + $0xc28] sm:$0xff] }
  0x49   : > { %265 = vst [vmem:[%s1916_s26 + $0x1c0] sm:$0xff] %v264_v56  ;;  %v392_v56 = vld [vmem:[%s1911_s25 + $0xf00] sm:$0xff] }
  0x4a   : > { %267 = vst [vmem:[%s1916_s26 + $0x1c8] sm:$0xff] %v266_v57  ;;  %v394_v57 = vld [vmem:[%s1911_s25 + $0xf08] sm:$0xff] }
  0x4b   : > { %269 = vst [vmem:[%s1916_s26 + $0x1d0] sm:$0xff] %v268_v58  ;;  %v396_v58 = vld [vmem:[%s1911_s25 + $0xf10] sm:$0xff] }
  0x4c   : > { %271 = vst [vmem:[%s1916_s26 + $0x1d8] sm:$0xff] %v270_v59  ;;  %v398_v59 = vld [vmem:[%s1911_s25 + $0xf18] sm:$0xff] }
  0x4d   : > { %273 = vst [vmem:[%s1916_s26 + $0x1e0] sm:$0xff] %v272_v60  ;;  %v400_v60 = vld [vmem:[%s1911_s25 + $0xf20] sm:$0xff] }
  0x4e   : > { %275 = vst [vmem:[%s1916_s26 + $0x1e8] sm:$0xff] %v274_v61  ;;  %v402_v61 = vld [vmem:[%s1911_s25 + $0xf28] sm:$0xff] }
  0x4f   : > { %277 = vst [vmem:[%s1916_s26 + $0x1f0] sm:$0xff] %v276_v62  ;;  %v404_v62 = vld [vmem:[%s1911_s25 + $0xf30] sm:$0xff] }
  0x50   : > { %279 = vst [vmem:[%s1916_s26 + $0x1f8] sm:$0xff] %v278_v63  ;;  %v406_v63 = vld [vmem:[%s1911_s25 + $0xf38] sm:$0xff] }
  0x51   : > { %281 = vst [vmem:[%s1916_s26 + $0x200] sm:$0xff] %v280_v0  ;;  %v408_v0 = vld [vmem:[%s1911_s25 + $0xf40] sm:$0xff] }
  0x52   : > { %283 = vst [vmem:[%s1916_s26 + $0x208] sm:$0xff] %v282_v1  ;;  %v410_v1 = vld [vmem:[%s1911_s25 + $0xf48] sm:$0xff] }
  0x53   : > { %285 = vst [vmem:[%s1916_s26 + $0x210] sm:$0xff] %v284_v2  ;;  %v412_v2 = vld [vmem:[%s1911_s25 + $0xf50] sm:$0xff] }
  0x54   : > { %287 = vst [vmem:[%s1916_s26 + $0x218] sm:$0xff] %v286_v3  ;;  %v414_v3 = vld [vmem:[%s1911_s25 + $0xf58] sm:$0xff] }
  0x55   : > { %289 = vst [vmem:[%s1916_s26 + $0x220] sm:$0xff] %v288_v4  ;;  %v416_v4 = vld [vmem:[%s1911_s25 + $0xf60] sm:$0xff] }
  0x56   : > { %291 = vst [vmem:[%s1916_s26 + $0x228] sm:$0xff] %v290_v5  ;;  %v418_v5 = vld [vmem:[%s1911_s25 + $0xf68] sm:$0xff] }
  0x57   : > { %293 = vst [vmem:[%s1916_s26 + $0x230] sm:$0xff] %v292_v6  ;;  %v420_v6 = vld [vmem:[%s1911_s25 + $0xf70] sm:$0xff] }
  0x58   : > { %295 = vst [vmem:[%s1916_s26 + $0x238] sm:$0xff] %v294_v7  ;;  %v422_v7 = vld [vmem:[%s1911_s25 + $0xf78] sm:$0xff] }
  0x59   : > { %297 = vst [vmem:[%s1916_s26 + $0x240] sm:$0xff] %v296_v8  ;;  %v424_v8 = vld [vmem:[%s1911_s25 + $0xf80] sm:$0xff] }
  0x5a   : > { %299 = vst [vmem:[%s1916_s26 + $0x248] sm:$0xff] %v298_v9  ;;  %v426_v9 = vld [vmem:[%s1911_s25 + $0xf88] sm:$0xff] }
  0x5b   : > { %301 = vst [vmem:[%s1916_s26 + $0x250] sm:$0xff] %v300_v10  ;;  %v428_v10 = vld [vmem:[%s1911_s25 + $0xf90] sm:$0xff] }
  0x5c   : > { %303 = vst [vmem:[%s1916_s26 + $0x258] sm:$0xff] %v302_v11  ;;  %v430_v11 = vld [vmem:[%s1911_s25 + $0xf98] sm:$0xff] }
  0x5d   : > { %305 = vst [vmem:[%s1916_s26 + $0x260] sm:$0xff] %v304_v12  ;;  %v432_v12 = vld [vmem:[%s1911_s25 + $0xfa0] sm:$0xff] }
  0x5e   : > { %307 = vst [vmem:[%s1916_s26 + $0x268] sm:$0xff] %v306_v13  ;;  %v434_v13 = vld [vmem:[%s1911_s25 + $0xfa8] sm:$0xff] }
  0x5f   : > { %309 = vst [vmem:[%s1916_s26 + $0x270] sm:$0xff] %v308_v14  ;;  %v436_v14 = vld [vmem:[%s1911_s25 + $0xfb0] sm:$0xff] }
  0x60   : > { %311 = vst [vmem:[%s1916_s26 + $0x278] sm:$0xff] %v310_v15  ;;  %v438_v15 = vld [vmem:[%s1911_s25 + $0xfb8] sm:$0xff] }
  0x61   : > { %313 = vst [vmem:[%s1916_s26 + $0x280] sm:$0xff] %v312_v16  ;;  %v440_v16 = vld [vmem:[%s1911_s25 + $0xfc0] sm:$0xff] }
  0x62   : > { %315 = vst [vmem:[%s1916_s26 + $0x288] sm:$0xff] %v314_v17  ;;  %v442_v17 = vld [vmem:[%s1911_s25 + $0xfc8] sm:$0xff] }
  0x63   : > { %317 = vst [vmem:[%s1916_s26 + $0x290] sm:$0xff] %v316_v18  ;;  %v444_v18 = vld [vmem:[%s1911_s25 + $0xfd0] sm:$0xff] }
  0x64   : > { %319 = vst [vmem:[%s1916_s26 + $0x298] sm:$0xff] %v318_v19  ;;  %v446_v19 = vld [vmem:[%s1911_s25 + $0xfd8] sm:$0xff] }
  0x65   : > { %321 = vst [vmem:[%s1916_s26 + $0x2a0] sm:$0xff] %v320_v20  ;;  %v448_v20 = vld [vmem:[%s1911_s25 + $0xfe0] sm:$0xff] }
  0x66   : > { %323 = vst [vmem:[%s1916_s26 + $0x2a8] sm:$0xff] %v322_v21  ;;  %v450_v21 = vld [vmem:[%s1911_s25 + $0xfe8] sm:$0xff] }
  0x67   : > { %325 = vst [vmem:[%s1916_s26 + $0x2b0] sm:$0xff] %v324_v22  ;;  %v452_v22 = vld [vmem:[%s1911_s25 + $0x12c0] sm:$0xff] }
  0x68   : > { %327 = vst [vmem:[%s1916_s26 + $0x2b8] sm:$0xff] %v326_v23  ;;  %v454_v23 = vld [vmem:[%s1911_s25 + $0x12c8] sm:$0xff] }
  0x69   : > { %329 = vst [vmem:[%s1916_s26 + $0x2c0] sm:$0xff] %v328_v24  ;;  %v456_v24 = vld [vmem:[%s1911_s25 + $0x12d0] sm:$0xff] }
  0x6a   : > { %331 = vst [vmem:[%s1916_s26 + $0x2c8] sm:$0xff] %v330_v25  ;;  %v458_v25 = vld [vmem:[%s1911_s25 + $0x12d8] sm:$0xff] }
  0x6b   : > { %333 = vst [vmem:[%s1916_s26 + $0x2d0] sm:$0xff] %v332_v26  ;;  %v460_v26 = vld [vmem:[%s1911_s25 + $0x12e0] sm:$0xff] }
  0x6c   : > { %335 = vst [vmem:[%s1916_s26 + $0x2d8] sm:$0xff] %v334_v27  ;;  %v462_v27 = vld [vmem:[%s1911_s25 + $0x12e8] sm:$0xff] }
  0x6d   : > { %337 = vst [vmem:[%s1916_s26 + $0x2e0] sm:$0xff] %v336_v28  ;;  %v464_v28 = vld [vmem:[%s1911_s25 + $0x12f0] sm:$0xff] }
  0x6e   : > { %339 = vst [vmem:[%s1916_s26 + $0x2e8] sm:$0xff] %v338_v29  ;;  %v466_v29 = vld [vmem:[%s1911_s25 + $0x12f8] sm:$0xff] }
  0x6f   : > { %341 = vst [vmem:[%s1916_s26 + $0x2f0] sm:$0xff] %v340_v30  ;;  %v468_v30 = vld [vmem:[%s1911_s25 + $0x1300] sm:$0xff] }
  0x70   : > { %343 = vst [vmem:[%s1916_s26 + $0x2f8] sm:$0xff] %v342_v31  ;;  %v470_v31 = vld [vmem:[%s1911_s25 + $0x1308] sm:$0xff] }
  0x71   : > { %345 = vst [vmem:[%s1916_s26 + $0x300] sm:$0xff] %v344_v32  ;;  %v472_v32 = vld [vmem:[%s1911_s25 + $0x1310] sm:$0xff] }
  0x72   : > { %347 = vst [vmem:[%s1916_s26 + $0x308] sm:$0xff] %v346_v33  ;;  %v474_v33 = vld [vmem:[%s1911_s25 + $0x1318] sm:$0xff] }
  0x73   : > { %349 = vst [vmem:[%s1916_s26 + $0x310] sm:$0xff] %v348_v34  ;;  %v476_v34 = vld [vmem:[%s1911_s25 + $0x1320] sm:$0xff] }
  0x74   : > { %351 = vst [vmem:[%s1916_s26 + $0x318] sm:$0xff] %v350_v35  ;;  %v478_v35 = vld [vmem:[%s1911_s25 + $0x1328] sm:$0xff] }
  0x75   : > { %353 = vst [vmem:[%s1916_s26 + $0x320] sm:$0xff] %v352_v36  ;;  %v480_v36 = vld [vmem:[%s1911_s25 + $0x1330] sm:$0xff] }
  0x76   : > { %355 = vst [vmem:[%s1916_s26 + $0x328] sm:$0xff] %v354_v37  ;;  %v482_v37 = vld [vmem:[%s1911_s25 + $0x1338] sm:$0xff] }
  0x77   : > { %357 = vst [vmem:[%s1916_s26 + $0x330] sm:$0xff] %v356_v38  ;;  %v484_v38 = vld [vmem:[%s1911_s25 + $0x1340] sm:$0xff] }
  0x78   : > { %359 = vst [vmem:[%s1916_s26 + $0x338] sm:$0xff] %v358_v39  ;;  %v486_v39 = vld [vmem:[%s1911_s25 + $0x1348] sm:$0xff] }
  0x79   : > { %361 = vst [vmem:[%s1916_s26 + $0x340] sm:$0xff] %v360_v40  ;;  %v488_v40 = vld [vmem:[%s1911_s25 + $0x1350] sm:$0xff] }
  0x7a   : > { %363 = vst [vmem:[%s1916_s26 + $0x348] sm:$0xff] %v362_v41  ;;  %v490_v41 = vld [vmem:[%s1911_s25 + $0x1358] sm:$0xff] }
  0x7b   : > { %365 = vst [vmem:[%s1916_s26 + $0x350] sm:$0xff] %v364_v42  ;;  %v492_v42 = vld [vmem:[%s1911_s25 + $0x1360] sm:$0xff] }
  0x7c   : > { %367 = vst [vmem:[%s1916_s26 + $0x358] sm:$0xff] %v366_v43  ;;  %v494_v43 = vld [vmem:[%s1911_s25 + $0x1368] sm:$0xff] }
  0x7d   : > { %369 = vst [vmem:[%s1916_s26 + $0x360] sm:$0xff] %v368_v44  ;;  %v496_v44 = vld [vmem:[%s1911_s25 + $0x1370] sm:$0xff] }
  0x7e   : > { %371 = vst [vmem:[%s1916_s26 + $0x368] sm:$0xff] %v370_v45  ;;  %v498_v45 = vld [vmem:[%s1911_s25 + $0x1378] sm:$0xff] }
  0x7f   : > { %373 = vst [vmem:[%s1916_s26 + $0x370] sm:$0xff] %v372_v46  ;;  %v500_v46 = vld [vmem:[%s1911_s25 + $0x1380] sm:$0xff] }
  0x80   : > { %375 = vst [vmem:[%s1916_s26 + $0x378] sm:$0xff] %v374_v47  ;;  %v502_v47 = vld [vmem:[%s1911_s25 + $0x1388] sm:$0xff] }
  0x81   : > { %377 = vst [vmem:[%s1916_s26 + $0x380] sm:$0xff] %v376_v48  ;;  %v504_v48 = vld [vmem:[%s1911_s25 + $0x1390] sm:$0xff] }
  0x82   : > { %379 = vst [vmem:[%s1916_s26 + $0x388] sm:$0xff] %v378_v49  ;;  %v506_v49 = vld [vmem:[%s1911_s25 + $0x1398] sm:$0xff] }
  0x83   : > { %381 = vst [vmem:[%s1916_s26 + $0x390] sm:$0xff] %v380_v50  ;;  %v508_v50 = vld [vmem:[%s1911_s25 + $0x13a0] sm:$0xff] }
  0x84   : > { %383 = vst [vmem:[%s1916_s26 + $0x398] sm:$0xff] %v382_v51  ;;  %v510_v51 = vld [vmem:[%s1911_s25 + $0x13a8] sm:$0xff] }
  0x85   : > { %385 = vst [vmem:[%s1916_s26 + $0x3a0] sm:$0xff] %v384_v52  ;;  %v512_v52 = vld [vmem:[%s1911_s25 + $0x1680] sm:$0xff] }
  0x86   : > { %387 = vst [vmem:[%s1916_s26 + $0x3a8] sm:$0xff] %v386_v53  ;;  %v514_v53 = vld [vmem:[%s1911_s25 + $0x1688] sm:$0xff] }
  0x87   : > { %389 = vst [vmem:[%s1916_s26 + $0x3b0] sm:$0xff] %v388_v54  ;;  %v516_v54 = vld [vmem:[%s1911_s25 + $0x1690] sm:$0xff] }
  0x88   : > { %391 = vst [vmem:[%s1916_s26 + $0x3b8] sm:$0xff] %v390_v55  ;;  %v518_v55 = vld [vmem:[%s1911_s25 + $0x1698] sm:$0xff] }
  0x89   : > { %393 = vst [vmem:[%s1916_s26 + $0x3c0] sm:$0xff] %v392_v56  ;;  %v520_v56 = vld [vmem:[%s1911_s25 + $0x16a0] sm:$0xff] }
  0x8a   : > { %395 = vst [vmem:[%s1916_s26 + $0x3c8] sm:$0xff] %v394_v57  ;;  %v522_v57 = vld [vmem:[%s1911_s25 + $0x16a8] sm:$0xff] }
  0x8b   : > { %397 = vst [vmem:[%s1916_s26 + $0x3d0] sm:$0xff] %v396_v58  ;;  %v524_v58 = vld [vmem:[%s1911_s25 + $0x16b0] sm:$0xff] }
  0x8c   : > { %399 = vst [vmem:[%s1916_s26 + $0x3d8] sm:$0xff] %v398_v59  ;;  %v526_v59 = vld [vmem:[%s1911_s25 + $0x16b8] sm:$0xff] }
  0x8d   : > { %401 = vst [vmem:[%s1916_s26 + $0x3e0] sm:$0xff] %v400_v60  ;;  %v528_v60 = vld [vmem:[%s1911_s25 + $0x16c0] sm:$0xff] }
  0x8e   : > { %403 = vst [vmem:[%s1916_s26 + $0x3e8] sm:$0xff] %v402_v61  ;;  %v530_v61 = vld [vmem:[%s1911_s25 + $0x16c8] sm:$0xff] }
  0x8f   : > { %405 = vst [vmem:[%s1916_s26 + $0x3f0] sm:$0xff] %v404_v62  ;;  %v532_v62 = vld [vmem:[%s1911_s25 + $0x16d0] sm:$0xff] }
  0x90   : > { %407 = vst [vmem:[%s1916_s26 + $0x3f8] sm:$0xff] %v406_v63  ;;  %v534_v63 = vld [vmem:[%s1911_s25 + $0x16d8] sm:$0xff] }
  0x91   : > { %409 = vst [vmem:[%s1916_s26 + $0x400] sm:$0xff] %v408_v0  ;;  %v536_v0 = vld [vmem:[%s1911_s25 + $0x16e0] sm:$0xff] }
  0x92   : > { %411 = vst [vmem:[%s1916_s26 + $0x408] sm:$0xff] %v410_v1  ;;  %v538_v1 = vld [vmem:[%s1911_s25 + $0x16e8] sm:$0xff] }
  0x93   : > { %413 = vst [vmem:[%s1916_s26 + $0x410] sm:$0xff] %v412_v2  ;;  %v540_v2 = vld [vmem:[%s1911_s25 + $0x16f0] sm:$0xff] }
  0x94   : > { %415 = vst [vmem:[%s1916_s26 + $0x418] sm:$0xff] %v414_v3  ;;  %v542_v3 = vld [vmem:[%s1911_s25 + $0x16f8] sm:$0xff] }
  0x95   : > { %417 = vst [vmem:[%s1916_s26 + $0x420] sm:$0xff] %v416_v4  ;;  %v544_v4 = vld [vmem:[%s1911_s25 + $0x1700] sm:$0xff] }
  0x96   : > { %419 = vst [vmem:[%s1916_s26 + $0x428] sm:$0xff] %v418_v5  ;;  %v546_v5 = vld [vmem:[%s1911_s25 + $0x1708] sm:$0xff] }
  0x97   : > { %421 = vst [vmem:[%s1916_s26 + $0x430] sm:$0xff] %v420_v6  ;;  %v548_v6 = vld [vmem:[%s1911_s25 + $0x1710] sm:$0xff] }
  0x98   : > { %423 = vst [vmem:[%s1916_s26 + $0x438] sm:$0xff] %v422_v7  ;;  %v550_v7 = vld [vmem:[%s1911_s25 + $0x1718] sm:$0xff] }
  0x99   : > { %425 = vst [vmem:[%s1916_s26 + $0x440] sm:$0xff] %v424_v8  ;;  %v552_v8 = vld [vmem:[%s1911_s25 + $0x1720] sm:$0xff] }
  0x9a   : > { %427 = vst [vmem:[%s1916_s26 + $0x448] sm:$0xff] %v426_v9  ;;  %v554_v9 = vld [vmem:[%s1911_s25 + $0x1728] sm:$0xff] }
  0x9b   : > { %429 = vst [vmem:[%s1916_s26 + $0x450] sm:$0xff] %v428_v10  ;;  %v556_v10 = vld [vmem:[%s1911_s25 + $0x1730] sm:$0xff] }
  0x9c   : > { %431 = vst [vmem:[%s1916_s26 + $0x458] sm:$0xff] %v430_v11  ;;  %v558_v11 = vld [vmem:[%s1911_s25 + $0x1738] sm:$0xff] }
  0x9d   : > { %433 = vst [vmem:[%s1916_s26 + $0x460] sm:$0xff] %v432_v12  ;;  %v560_v12 = vld [vmem:[%s1911_s25 + $0x1740] sm:$0xff] }
  0x9e   : > { %435 = vst [vmem:[%s1916_s26 + $0x468] sm:$0xff] %v434_v13  ;;  %v562_v13 = vld [vmem:[%s1911_s25 + $0x1748] sm:$0xff] }
  0x9f   : > { %437 = vst [vmem:[%s1916_s26 + $0x470] sm:$0xff] %v436_v14  ;;  %v564_v14 = vld [vmem:[%s1911_s25 + $0x1750] sm:$0xff] }
  0xa0   : > { %439 = vst [vmem:[%s1916_s26 + $0x478] sm:$0xff] %v438_v15  ;;  %v566_v15 = vld [vmem:[%s1911_s25 + $0x1758] sm:$0xff] }
  0xa1   : > { %441 = vst [vmem:[%s1916_s26 + $0x480] sm:$0xff] %v440_v16  ;;  %v568_v16 = vld [vmem:[%s1911_s25 + $0x1760] sm:$0xff] }
  0xa2   : > { %443 = vst [vmem:[%s1916_s26 + $0x488] sm:$0xff] %v442_v17  ;;  %v570_v17 = vld [vmem:[%s1911_s25 + $0x1768] sm:$0xff] }
  0xa3   : > { %445 = vst [vmem:[%s1916_s26 + $0x490] sm:$0xff] %v444_v18  ;;  %v572_v18 = vld [vmem:[%s1911_s25 + $0x1a40] sm:$0xff] }
  0xa4   : > { %447 = vst [vmem:[%s1916_s26 + $0x498] sm:$0xff] %v446_v19  ;;  %v574_v19 = vld [vmem:[%s1911_s25 + $0x1a48] sm:$0xff] }
  0xa5   : > { %449 = vst [vmem:[%s1916_s26 + $0x4a0] sm:$0xff] %v448_v20  ;;  %v576_v20 = vld [vmem:[%s1911_s25 + $0x1a50] sm:$0xff] }
  0xa6   : > { %451 = vst [vmem:[%s1916_s26 + $0x4a8] sm:$0xff] %v450_v21  ;;  %v578_v21 = vld [vmem:[%s1911_s25 + $0x1a58] sm:$0xff] }
  0xa7   : > { %453 = vst [vmem:[%s1916_s26 + $0x4b0] sm:$0xff] %v452_v22  ;;  %v580_v22 = vld [vmem:[%s1911_s25 + $0x1a60] sm:$0xff] }
  0xa8   : > { %455 = vst [vmem:[%s1916_s26 + $0x4b8] sm:$0xff] %v454_v23  ;;  %v582_v23 = vld [vmem:[%s1911_s25 + $0x1a68] sm:$0xff] }
  0xa9   : > { %457 = vst [vmem:[%s1916_s26 + $0x4c0] sm:$0xff] %v456_v24  ;;  %v584_v24 = vld [vmem:[%s1911_s25 + $0x1a70] sm:$0xff] }
  0xaa   : > { %459 = vst [vmem:[%s1916_s26 + $0x4c8] sm:$0xff] %v458_v25  ;;  %v586_v25 = vld [vmem:[%s1911_s25 + $0x1a78] sm:$0xff] }
  0xab   : > { %461 = vst [vmem:[%s1916_s26 + $0x4d0] sm:$0xff] %v460_v26  ;;  %v588_v26 = vld [vmem:[%s1911_s25 + $0x1a80] sm:$0xff] }
  0xac   : > { %463 = vst [vmem:[%s1916_s26 + $0x4d8] sm:$0xff] %v462_v27  ;;  %v590_v27 = vld [vmem:[%s1911_s25 + $0x1a88] sm:$0xff] }
  0xad   : > { %465 = vst [vmem:[%s1916_s26 + $0x4e0] sm:$0xff] %v464_v28  ;;  %v592_v28 = vld [vmem:[%s1911_s25 + $0x1a90] sm:$0xff] }
  0xae   : > { %467 = vst [vmem:[%s1916_s26 + $0x4e8] sm:$0xff] %v466_v29  ;;  %v594_v29 = vld [vmem:[%s1911_s25 + $0x1a98] sm:$0xff] }
  0xaf   : > { %469 = vst [vmem:[%s1916_s26 + $0x4f0] sm:$0xff] %v468_v30  ;;  %v596_v30 = vld [vmem:[%s1911_s25 + $0x1aa0] sm:$0xff] }
  0xb0   : > { %471 = vst [vmem:[%s1916_s26 + $0x4f8] sm:$0xff] %v470_v31  ;;  %v598_v31 = vld [vmem:[%s1911_s25 + $0x1aa8] sm:$0xff] }
  0xb1   : > { %473 = vst [vmem:[%s1916_s26 + $0x500] sm:$0xff] %v472_v32  ;;  %v600_v32 = vld [vmem:[%s1911_s25 + $0x1ab0] sm:$0xff] }
  0xb2   : > { %475 = vst [vmem:[%s1916_s26 + $0x508] sm:$0xff] %v474_v33  ;;  %v602_v33 = vld [vmem:[%s1911_s25 + $0x1ab8] sm:$0xff] }
  0xb3   : > { %477 = vst [vmem:[%s1916_s26 + $0x510] sm:$0xff] %v476_v34  ;;  %v604_v34 = vld [vmem:[%s1911_s25 + $0x1ac0] sm:$0xff] }
  0xb4   : > { %479 = vst [vmem:[%s1916_s26 + $0x518] sm:$0xff] %v478_v35  ;;  %v606_v35 = vld [vmem:[%s1911_s25 + $0x1ac8] sm:$0xff] }
  0xb5   : > { %481 = vst [vmem:[%s1916_s26 + $0x520] sm:$0xff] %v480_v36  ;;  %v608_v36 = vld [vmem:[%s1911_s25 + $0x1ad0] sm:$0xff] }
  0xb6   : > { %483 = vst [vmem:[%s1916_s26 + $0x528] sm:$0xff] %v482_v37  ;;  %v610_v37 = vld [vmem:[%s1911_s25 + $0x1ad8] sm:$0xff] }
  0xb7   : > { %485 = vst [vmem:[%s1916_s26 + $0x530] sm:$0xff] %v484_v38  ;;  %v612_v38 = vld [vmem:[%s1911_s25 + $0x1ae0] sm:$0xff] }
  0xb8   : > { %487 = vst [vmem:[%s1916_s26 + $0x538] sm:$0xff] %v486_v39  ;;  %v614_v39 = vld [vmem:[%s1911_s25 + $0x1ae8] sm:$0xff] }
  0xb9   : > { %489 = vst [vmem:[%s1916_s26 + $0x540] sm:$0xff] %v488_v40  ;;  %v616_v40 = vld [vmem:[%s1911_s25 + $0x1af0] sm:$0xff] }
  0xba   : > { %491 = vst [vmem:[%s1916_s26 + $0x548] sm:$0xff] %v490_v41  ;;  %v618_v41 = vld [vmem:[%s1911_s25 + $0x1af8] sm:$0xff] }
  0xbb   : > { %493 = vst [vmem:[%s1916_s26 + $0x550] sm:$0xff] %v492_v42  ;;  %v620_v42 = vld [vmem:[%s1911_s25 + $0x1b00] sm:$0xff] }
  0xbc   : > { %495 = vst [vmem:[%s1916_s26 + $0x558] sm:$0xff] %v494_v43  ;;  %v622_v43 = vld [vmem:[%s1911_s25 + $0x1b08] sm:$0xff] }
  0xbd   : > { %497 = vst [vmem:[%s1916_s26 + $0x560] sm:$0xff] %v496_v44  ;;  %v624_v44 = vld [vmem:[%s1911_s25 + $0x1b10] sm:$0xff] }
  0xbe   : > { %499 = vst [vmem:[%s1916_s26 + $0x568] sm:$0xff] %v498_v45  ;;  %v626_v45 = vld [vmem:[%s1911_s25 + $0x1b18] sm:$0xff] }
  0xbf   : > { %501 = vst [vmem:[%s1916_s26 + $0x570] sm:$0xff] %v500_v46  ;;  %v628_v46 = vld [vmem:[%s1911_s25 + $0x1b20] sm:$0xff] }
  0xc0   : > { %503 = vst [vmem:[%s1916_s26 + $0x578] sm:$0xff] %v502_v47  ;;  %v630_v47 = vld [vmem:[%s1911_s25 + $0x1b28] sm:$0xff] }
  0xc1   : > { %505 = vst [vmem:[%s1916_s26 + $0x580] sm:$0xff] %v504_v48 }
  0xc2   : > { %507 = vst [vmem:[%s1916_s26 + $0x588] sm:$0xff] %v506_v49 }
  0xc3   : > { %509 = vst [vmem:[%s1916_s26 + $0x590] sm:$0xff] %v508_v50 }
  0xc4   : > { %511 = vst [vmem:[%s1916_s26 + $0x598] sm:$0xff] %v510_v51 }
  0xc5   : > { %513 = vst [vmem:[%s1916_s26 + $0x5a0] sm:$0xff] %v512_v52 }
  0xc6   : > { %515 = vst [vmem:[%s1916_s26 + $0x5a8] sm:$0xff] %v514_v53 }
  0xc7   : > { %517 = vst [vmem:[%s1916_s26 + $0x5b0] sm:$0xff] %v516_v54 }
  0xc8   : > { %519 = vst [vmem:[%s1916_s26 + $0x5b8] sm:$0xff] %v518_v55 }
  0xc9   : > { %521 = vst [vmem:[%s1916_s26 + $0x5c0] sm:$0xff] %v520_v56 }
  0xca   : > { %523 = vst [vmem:[%s1916_s26 + $0x5c8] sm:$0xff] %v522_v57 }
  0xcb   : > { %525 = vst [vmem:[%s1916_s26 + $0x5d0] sm:$0xff] %v524_v58 }
  0xcc   : > { %527 = vst [vmem:[%s1916_s26 + $0x5d8] sm:$0xff] %v526_v59 }
  0xcd   : > { %529 = vst [vmem:[%s1916_s26 + $0x5e0] sm:$0xff] %v528_v60 }
  0xce   : > { %531 = vst [vmem:[%s1916_s26 + $0x5e8] sm:$0xff] %v530_v61 }
  0xcf   : > { %533 = vst [vmem:[%s1916_s26 + $0x5f0] sm:$0xff] %v532_v62 }
  0xd0   : > { %535 = vst [vmem:[%s1916_s26 + $0x5f8] sm:$0xff] %v534_v63 }
  0xd1   : > { %537 = vst [vmem:[%s1916_s26 + $0x600] sm:$0xff] %v536_v0 }
  0xd2   : > { %539 = vst [vmem:[%s1916_s26 + $0x608] sm:$0xff] %v538_v1 }
  0xd3   : > { %541 = vst [vmem:[%s1916_s26 + $0x610] sm:$0xff] %v540_v2 }
  0xd4   : > { %543 = vst [vmem:[%s1916_s26 + $0x618] sm:$0xff] %v542_v3 }
  0xd5   : > { %545 = vst [vmem:[%s1916_s26 + $0x620] sm:$0xff] %v544_v4 }
  0xd6   : > { %547 = vst [vmem:[%s1916_s26 + $0x628] sm:$0xff] %v546_v5 }
  0xd7   : > { %549 = vst [vmem:[%s1916_s26 + $0x630] sm:$0xff] %v548_v6 }
  0xd8   : > { %551 = vst [vmem:[%s1916_s26 + $0x638] sm:$0xff] %v550_v7 }
  0xd9   : > { %553 = vst [vmem:[%s1916_s26 + $0x640] sm:$0xff] %v552_v8 }
  0xda   : > { %555 = vst [vmem:[%s1916_s26 + $0x648] sm:$0xff] %v554_v9 }
  0xdb   : > { %557 = vst [vmem:[%s1916_s26 + $0x650] sm:$0xff] %v556_v10 }
  0xdc   : > { %559 = vst [vmem:[%s1916_s26 + $0x658] sm:$0xff] %v558_v11 }
  0xdd   : > { %561 = vst [vmem:[%s1916_s26 + $0x660] sm:$0xff] %v560_v12 }
  0xde   : > { %563 = vst [vmem:[%s1916_s26 + $0x668] sm:$0xff] %v562_v13 }
  0xdf   : > { %565 = vst [vmem:[%s1916_s26 + $0x670] sm:$0xff] %v564_v14 }
  0xe0   : > { %567 = vst [vmem:[%s1916_s26 + $0x678] sm:$0xff] %v566_v15 }
  0xe1   : > { %569 = vst [vmem:[%s1916_s26 + $0x680] sm:$0xff] %v568_v16 }
  0xe2   : > { %571 = vst [vmem:[%s1916_s26 + $0x688] sm:$0xff] %v570_v17 }
  0xe3   : > { %573 = vst [vmem:[%s1916_s26 + $0x690] sm:$0xff] %v572_v18 }
  0xe4   : > { %575 = vst [vmem:[%s1916_s26 + $0x698] sm:$0xff] %v574_v19 }
  0xe5   : > { %577 = vst [vmem:[%s1916_s26 + $0x6a0] sm:$0xff] %v576_v20 }
  0xe6   : > { %579 = vst [vmem:[%s1916_s26 + $0x6a8] sm:$0xff] %v578_v21 }
  0xe7   : > { %581 = vst [vmem:[%s1916_s26 + $0x6b0] sm:$0xff] %v580_v22 }
  0xe8   : > { %583 = vst [vmem:[%s1916_s26 + $0x6b8] sm:$0xff] %v582_v23 }
  0xe9   : > { %585 = vst [vmem:[%s1916_s26 + $0x6c0] sm:$0xff] %v584_v24 }
  0xea   : > { %587 = vst [vmem:[%s1916_s26 + $0x6c8] sm:$0xff] %v586_v25 }
  0xeb   : > { %589 = vst [vmem:[%s1916_s26 + $0x6d0] sm:$0xff] %v588_v26 }
  0xec   : > { %591 = vst [vmem:[%s1916_s26 + $0x6d8] sm:$0xff] %v590_v27 }
  0xed   : > { %593 = vst [vmem:[%s1916_s26 + $0x6e0] sm:$0xff] %v592_v28 }
  0xee   : > { %595 = vst [vmem:[%s1916_s26 + $0x6e8] sm:$0xff] %v594_v29 }
  0xef   : > { %597 = vst [vmem:[%s1916_s26 + $0x6f0] sm:$0xff] %v596_v30 }
  0xf0   : > { %599 = vst [vmem:[%s1916_s26 + $0x6f8] sm:$0xff] %v598_v31 }
  0xf1   : > { %601 = vst [vmem:[%s1916_s26 + $0x700] sm:$0xff] %v600_v32 }
  0xf2   : > { %603 = vst [vmem:[%s1916_s26 + $0x708] sm:$0xff] %v602_v33 }
  0xf3   : > { %605 = vst [vmem:[%s1916_s26 + $0x710] sm:$0xff] %v604_v34 }
  0xf4   : > { %607 = vst [vmem:[%s1916_s26 + $0x718] sm:$0xff] %v606_v35 }
  0xf5   : > { %609 = vst [vmem:[%s1916_s26 + $0x720] sm:$0xff] %v608_v36 }
  0xf6   : > { %611 = vst [vmem:[%s1916_s26 + $0x728] sm:$0xff] %v610_v37 }
  0xf7   : > { %613 = vst [vmem:[%s1916_s26 + $0x730] sm:$0xff] %v612_v38 }
  0xf8   : > { %615 = vst [vmem:[%s1916_s26 + $0x738] sm:$0xff] %v614_v39 }
  0xf9   : > { %617 = vst [vmem:[%s1916_s26 + $0x740] sm:$0xff] %v616_v40 }
  0xfa   : > { %619 = vst [vmem:[%s1916_s26 + $0x748] sm:$0xff] %v618_v41 }
  0xfb   : > { %621 = vst [vmem:[%s1916_s26 + $0x750] sm:$0xff] %v620_v42 }
  0xfc   : > { %623 = vst [vmem:[%s1916_s26 + $0x758] sm:$0xff] %v622_v43 }
  0xfd   : > { %625 = vst [vmem:[%s1916_s26 + $0x760] sm:$0xff] %v624_v44 }
  0xfe   : > { %627 = vst [vmem:[%s1916_s26 + $0x768] sm:$0xff] %v626_v45 }
  0xff   : > { %629 = vst [vmem:[%s1916_s26 + $0x770] sm:$0xff] %v628_v46 }
 0x100   : > { %631 = vst [vmem:[%s1916_s26 + $0x778] sm:$0xff] %v630_v47 }
 0x101 PF: > { %p1772_p5 = scmp.ge.s32.totalorder %s1855_s14, 1  ;;  %p644_p6 = scmp.lt.s32.totalorder %s1855_s14, 5 }
 0x103   : > { %p645_p7 = pnand %p1772_p5, %p644_p6 }
 0x104   : > { %s651_s27 = sand.u32 (!%p645_p7), 1, %s1847_s12   ;;  %s679_s5 = smul.u32 (!%p645_p7), 30, %s1767_s15 }
 0x105   : > { %648 = sbr.rel (%p645_p7) target bundleno = 538 (0x21a), region = 51 }
 0x106   : > { %s1808_s28 = smul.u32 (!%p645_p7), 1920, %s651_s27  ;;  %p680_p8 = scmp.lt.s32.totalorder (!%p645_p7), %s679_s5, 119 }
 0x108   : > { %s2398_s29 = scalar_lea.vmem (!%p645_p7), [#allocation2], %s1808_s28 }
 0x10a   : > { %v902_v48 = vld [vmem:[%s2398_s29 + $0x698] sm:$0xff]  ;;  %v903_v49 = vld [vmem:[%s2398_s29 + $0x6a0] sm:$0xff]  ;;  %v904_v50 = vld [vmem:[%s2398_s29 + $0x6a8] sm:$0xff]  ;;  %vm999_vm0 = vcmask 523264   ;;  %s2769_s5 = smov (!%p680_p8, %s679_s5), 119  ;;  %vm1657_vm1 = vcmask 1045508  }
 0x10b   : > { %1031 = vmatpush.msra.mxu1 %v902_v48  ;;  %1051 = vmatpush.msra.mxu2 %v903_v49  ;;  %v901_v51 = vld [vmem:[%s2398_s29 + $0x690] sm:$0xff]  ;;  %v872_v52 = vld [vmem:[%s2398_s29 + $0x5a8] sm:$0xff]  ;;  %v874_v54 = vld [vmem:[%s2398_s29 + $0x5b8] sm:$0xff]  ;;  %s2710_s8 = scalar_lea.vmem %s2763_s2, %s2769_s5  ;;  %s1773_s9 = sshll.u32 %s2769_s5, 1  ;;  %vm1655_vm2 = vcmask 1041408   ;;  %vm1659_vm3 = vcmask 1043456  }
 0x10c   : > { %v873_v53 = vld [vmem:[%s2398_s29 + $0x5b0] sm:$0xff]  ;;  %1071 = vmatpush.msra.mxu3 %v904_v50  ;;  %1011 = vmatpush.msra.mxu0 %v901_v51  ;;  %v871_v55 = vld [vmem:[%s2398_s29 + $0x5a0] sm:$0xff]  ;;  %v842_v56 = vld [vmem:[%s2398_s29 + $0x4b8] sm:$0xff]  ;;  %s2717_s12 = scalar_lea.vmem %s2764_s3, %s1773_s9 }
 0x10d   : > { %1032 = vmatpush.msra.mxu1 %v872_v52  ;;  %1052 = vmatpush.msra.mxu2 %v873_v53  ;;  %v843_v57 = vld [vmem:[%s2398_s29 + $0x4c0] sm:$0xff]  ;;  %v844_v58 = vld [vmem:[%s2398_s29 + $0x4c8] sm:$0xff]  ;;  %v841_v59 = vld [vmem:[%s2398_s29 + $0x4b0] sm:$0xff] }
 0x10e   : > { %1072 = vmatpush.msra.mxu3 %v874_v54  ;;  %1012 = vmatpush.msra.mxu0 %v871_v55  ;;  %v812_v60 = vld [vmem:[%s2398_s29 + $0x3c8] sm:$0xff]  ;;  %v813_v61 = vld [vmem:[%s2398_s29 + $0x3d0] sm:$0xff]  ;;  %v814_v62 = vld [vmem:[%s2398_s29 + $0x3d8] sm:$0xff] }
 0x10f   : > { %1033 = vmatpush.msra.mxu1 %v842_v56  ;;  %1053 = vmatpush.msra.mxu2 %v843_v57  ;;  %v811_v63 = vld [vmem:[%s2398_s29 + $0x3c0] sm:$0xff]  ;;  %v782_v0 = vld [vmem:[%s2398_s29 + $0x2d8] sm:$0xff]  ;;  %v784_v2 = vld [vmem:[%s2398_s29 + $0x2e8] sm:$0xff] }
 0x110   : > { %1073 = vmatpush.msra.mxu3 %v844_v58  ;;  %1013 = vmatpush.msra.mxu0 %v841_v59  ;;  %v783_v1 = vld [vmem:[%s2398_s29 + $0x2e0] sm:$0xff]  ;;  %v781_v3 = vld [vmem:[%s2398_s29 + $0x2d0] sm:$0xff]  ;;  %v752_v4 = vld [vmem:[%s2398_s29 + $0x1e8] sm:$0xff] }
 0x111   : > { %1034 = vmatpush.msra.mxu1 %v812_v60  ;;  %1054 = vmatpush.msra.mxu2 %v813_v61  ;;  %v753_v5 = vld [vmem:[%s2398_s29 + $0x1f0] sm:$0xff]  ;;  %v754_v6 = vld [vmem:[%s2398_s29 + $0x1f8] sm:$0xff]  ;;  %v751_v7 = vld [vmem:[%s2398_s29 + $0x1e0] sm:$0xff] }
 0x112   : > { %1074 = vmatpush.msra.mxu3 %v814_v62  ;;  %1014 = vmatpush.msra.mxu0 %v811_v63  ;;  %v722_v8 = vld [vmem:[%s2398_s29 + $0xf8] sm:$0xff]  ;;  %v723_v9 = vld [vmem:[%s2398_s29 + $0x100] sm:$0xff]  ;;  %v724_v10 = vld [vmem:[%s2398_s29 + $0x108] sm:$0xff] }
 0x113   : > { %1035 = vmatpush.msra.mxu1 %v782_v0  ;;  %1055 = vmatpush.msra.mxu2 %v783_v1  ;;  %v721_v11 = vld [vmem:[%s2398_s29 + $0xf0] sm:$0xff]  ;;  %v692_v12 = vld [vmem:[%s2398_s29 + $0x8] sm:$0xff]  ;;  %v694_v14 = vld [vmem:[%s2398_s29 + $0x18] sm:$0xff] }
 0x114   : > { %1075 = vmatpush.msra.mxu3 %v784_v2  ;;  %1015 = vmatpush.msra.mxu0 %v781_v3  ;;  %v693_v13 = vld [vmem:[%s2398_s29 + $0x10] sm:$0xff]  ;;  %v906_v15 = vld [vmem:[%s2398_s29 + $0x6b8] sm:$0xff]  ;;  %v691_v16 = vld [vmem:[%s2398_s29] sm:$0xff] }
 0x115   : > { %1036 = vmatpush.msra.mxu1 %v752_v4  ;;  %1056 = vmatpush.msra.mxu2 %v753_v5  ;;  %v907_v17 = vld [vmem:[%s2398_s29 + $0x6c0] sm:$0xff]  ;;  %v908_v18 = vld [vmem:[%s2398_s29 + $0x6c8] sm:$0xff]  ;;  %v905_v19 = vld [vmem:[%s2398_s29 + $0x6b0] sm:$0xff] }
 0x116   : > { %1076 = vmatpush.msra.mxu3 %v754_v6  ;;  %1016 = vmatpush.msra.mxu0 %v751_v7  ;;  %v876_v20 = vld [vmem:[%s2398_s29 + $0x5c8] sm:$0xff]  ;;  %v877_v21 = vld [vmem:[%s2398_s29 + $0x5d0] sm:$0xff]  ;;  %v878_v22 = vld [vmem:[%s2398_s29 + $0x5d8] sm:$0xff] }
 0x117   : > { %1037 = vmatpush.msra.mxu1 %v722_v8  ;;  %1057 = vmatpush.msra.mxu2 %v723_v9  ;;  %v875_v23 = vld [vmem:[%s2398_s29 + $0x5c0] sm:$0xff]  ;;  %v846_v24 = vld [vmem:[%s2398_s29 + $0x4d8] sm:$0xff]  ;;  %v848_v26 = vld [vmem:[%s2398_s29 + $0x4e8] sm:$0xff] }
 0x118   : > { %1077 = vmatpush.msra.mxu3 %v724_v10  ;;  %1017 = vmatpush.msra.mxu0 %v721_v11  ;;  %v847_v25 = vld [vmem:[%s2398_s29 + $0x4e0] sm:$0xff]  ;;  %v845_v27 = vld [vmem:[%s2398_s29 + $0x4d0] sm:$0xff]  ;;  %v816_v28 = vld [vmem:[%s2398_s29 + $0x3e8] sm:$0xff] }
 0x119   : > { %1038 = vmatpush.msra.mxu1 %v692_v12  ;;  %1058 = vmatpush.msra.mxu2 %v693_v13  ;;  %v817_v29 = vld [vmem:[%s2398_s29 + $0x3f0] sm:$0xff]  ;;  %v818_v30 = vld [vmem:[%s2398_s29 + $0x3f8] sm:$0xff]  ;;  %v815_v31 = vld [vmem:[%s2398_s29 + $0x3e0] sm:$0xff] }
 0x11a   : > { %1078 = vmatpush.msra.mxu3 %v694_v14  ;;  %1018 = vmatpush.msra.mxu0 %v691_v16  ;;  %v786_v32 = vld [vmem:[%s2398_s29 + $0x2f8] sm:$0xff]  ;;  %v2452_v33 = vld [vmem:[%s2761_s0] sm:$0x3]  ;;  %v788_v35 = vld [vmem:[%s2398_s29 + $0x308] sm:$0xff] }
 0x11b   : > { %1111 = vmatpush.msrb.mxu1 %v906_v15  ;;  %1131 = vmatpush.msrb.mxu2 %v907_v17  ;;  %v787_v34 = vld [vmem:[%s2398_s29 + $0x300] sm:$0xff]  ;;  %v785_v36 = vld [vmem:[%s2398_s29 + $0x2f0] sm:$0xff]  ;;  %v756_v37 = vld [vmem:[%s2398_s29 + $0x208] sm:$0xff] }
 0x11c   : > { %1151 = vmatpush.msrb.mxu3 %v908_v18  ;;  %1091 = vmatpush.msrb.mxu0 %v905_v19  ;;  %v757_v38 = vld [vmem:[%s2398_s29 + $0x210] sm:$0xff]  ;;  %v758_v39 = vld [vmem:[%s2398_s29 + $0x218] sm:$0xff]  ;;  %v755_v40 = vld [vmem:[%s2398_s29 + $0x200] sm:$0xff] }
 0x11d   : > { %1112 = vmatpush.msrb.mxu1 %v876_v20  ;;  %1132 = vmatpush.msrb.mxu2 %v877_v21  ;;  %v726_v41 = vld [vmem:[%s2398_s29 + $0x118] sm:$0xff]  ;;  %v727_v42 = vld [vmem:[%s2398_s29 + $0x120] sm:$0xff]  ;;  %v728_v43 = vld [vmem:[%s2398_s29 + $0x128] sm:$0xff] }
 0x11e   : > { %1152 = vmatpush.msrb.mxu3 %v878_v22  ;;  %1092 = vmatpush.msrb.mxu0 %v875_v23  ;;  %v725_v44 = vld [vmem:[%s2398_s29 + $0x110] sm:$0xff]  ;;  %v696_v45 = vld [vmem:[%s2398_s29 + $0x28] sm:$0xff]  ;;  %v698_v47 = vld [vmem:[%s2398_s29 + $0x38] sm:$0xff] }
 0x11f   : > { %1113 = vmatpush.msrb.mxu1 %v846_v24  ;;  %1133 = vmatpush.msrb.mxu2 %v847_v25  ;;  %v697_v46 = vld [vmem:[%s2398_s29 + $0x30] sm:$0xff]  ;;  %v910_v48 = vld [vmem:[%s2398_s29 + $0x6d8] sm:$0xff]  ;;  %v695_v49 = vld [vmem:[%s2398_s29 + $0x20] sm:$0xff] }
 0x120   : > { %1153 = vmatpush.msrb.mxu3 %v848_v26  ;;  %1093 = vmatpush.msrb.mxu0 %v845_v27  ;;  %v911_v50 = vld [vmem:[%s2398_s29 + $0x6e0] sm:$0xff]  ;;  %v912_v51 = vld [vmem:[%s2398_s29 + $0x6e8] sm:$0xff]  ;;  %v909_v53 = vld [vmem:[%s2398_s29 + $0x6d0] sm:$0xff] }
 0x121   : > { %1114 = vmatpush.msrb.mxu1 %v816_v28  ;;  %1134 = vmatpush.msrb.mxu2 %v817_v29  ;;  %v880_v52 = vld [vmem:[%s2398_s29 + $0x5e8] sm:$0xff]  ;;  %v881_v54 = vld [vmem:[%s2398_s29 + $0x5f0] sm:$0xff]  ;;  %v882_v55 = vld [vmem:[%s2398_s29 + $0x5f8] sm:$0xff] }
 0x122   : > { %1154 = vmatpush.msrb.mxu3 %v818_v30  ;;  %1094 = vmatpush.msrb.mxu0 %v815_v31  ;;  %v850_v56 = vld [vmem:[%s2398_s29 + $0x4f8] sm:$0xff]  ;;  %v879_v57 = vld [vmem:[%s2398_s29 + $0x5e0] sm:$0xff]  ;;  %v852_v59 = vld [vmem:[%s2398_s29 + $0x508] sm:$0xff] }
 0x123   : > { %1115 = vmatpush.msrb.mxu1 %v786_v32  ;;  %1776 = vmatmul.msk.f32.vlgmr.msra.gmra.mxu2 %vm999_vm0, %v2452_v33  ;;  %v851_v58 = vld [vmem:[%s2398_s29 + $0x500] sm:$0xff]  ;;  %v820_v60 = vld [vmem:[%s2398_s29 + $0x408] sm:$0xff]  ;;  %v849_v61 = vld [vmem:[%s2398_s29 + $0x4f0] sm:$0xff] }
 0x124   : > { %1777 = vmatmul.msk.f32.vlgmr.msra.gmra.mxu3 %vm999_vm0, %v2452_v33  ;;  %1135 = vmatpush.msrb.mxu2 %v787_v34  ;;  %v821_v62 = vld [vmem:[%s2398_s29 + $0x410] sm:$0xff]  ;;  %v822_v63 = vld [vmem:[%s2398_s29 + $0x418] sm:$0xff]  ;;  %v819_v1 = vld [vmem:[%s2398_s29 + $0x400] sm:$0xff] }
 0x125   : > { %1155 = vmatpush.msrb.mxu3 %v788_v35  ;;  %1095 = vmatpush.msrb.mxu0 %v785_v36  ;;  %v790_v0 = vld [vmem:[%s2398_s29 + $0x318] sm:$0xff]  ;;  %v791_v2 = vld [vmem:[%s2398_s29 + $0x320] sm:$0xff]  ;;  %v792_v3 = vld [vmem:[%s2398_s29 + $0x328] sm:$0xff] }
 0x126   : > { %1116 = vmatpush.msrb.mxu1 %v756_v37  ;;  %1136 = vmatpush.msrb.mxu2 %v757_v38  ;;  %v789_v4 = vld [vmem:[%s2398_s29 + $0x310] sm:$0xff]  ;;  %v760_v5 = vld [vmem:[%s2398_s29 + $0x228] sm:$0xff]  ;;  %v762_v7 = vld [vmem:[%s2398_s29 + $0x238] sm:$0xff] }
 0x127   : > { %1156 = vmatpush.msrb.mxu3 %v758_v39  ;;  %1096 = vmatpush.msrb.mxu0 %v755_v40  ;;  %v761_v6 = vld [vmem:[%s2398_s29 + $0x230] sm:$0xff]  ;;  %v759_v8 = vld [vmem:[%s2398_s29 + $0x220] sm:$0xff]  ;;  %v730_v9 = vld [vmem:[%s2398_s29 + $0x138] sm:$0xff] }
 0x128   : > { %1117 = vmatpush.msrb.mxu1 %v726_v41  ;;  %1137 = vmatpush.msrb.mxu2 %v727_v42  ;;  %v731_v10 = vld [vmem:[%s2398_s29 + $0x140] sm:$0xff]  ;;  %v732_v11 = vld [vmem:[%s2398_s29 + $0x148] sm:$0xff]  ;;  %v729_v12 = vld [vmem:[%s2398_s29 + $0x130] sm:$0xff] }
 0x129   : > { %1157 = vmatpush.msrb.mxu3 %v728_v43  ;;  %1097 = vmatpush.msrb.mxu0 %v725_v44  ;;  %v700_v13 = vld [vmem:[%s2398_s29 + $0x48] sm:$0xff]  ;;  %v701_v14 = vld [vmem:[%s2398_s29 + $0x50] sm:$0xff]  ;;  %v702_v15 = vld [vmem:[%s2398_s29 + $0x58] sm:$0xff] }
 0x12a   : > { %1118 = vmatpush.msrb.mxu1 %v696_v45  ;;  %1138 = vmatpush.msrb.mxu2 %v697_v46  ;;  %v914_v16 = vld [vmem:[%s2398_s29 + $0x6f8] sm:$0xff]  ;;  %v699_v17 = vld [vmem:[%s2398_s29 + $0x40] sm:$0xff]  ;;  %v916_v19 = vld [vmem:[%s2398_s29 + $0x708] sm:$0xff] }
 0x12b   : > { %1775 = vmatmul.msk.f32.vlgmr.msra.gmra.mxu1 %vm999_vm0, %v2452_v33  ;;  %1158 = vmatpush.msrb.mxu3 %v698_v47  ;;  %v915_v18 = vld [vmem:[%s2398_s29 + $0x700] sm:$0xff]  ;;  %v884_v20 = vld [vmem:[%s2398_s29 + $0x608] sm:$0xff]  ;;  %v913_v21 = vld [vmem:[%s2398_s29 + $0x6f0] sm:$0xff] }
 0x12c   : > { %1191 = vmatpush.msra.mxu1 %v910_v48  ;;  %1098 = vmatpush.msrb.mxu0 %v695_v49  ;;  %v885_v22 = vld [vmem:[%s2398_s29 + $0x610] sm:$0xff]  ;;  %v886_v23 = vld [vmem:[%s2398_s29 + $0x618] sm:$0xff]  ;;  %v883_v25 = vld [vmem:[%s2398_s29 + $0x600] sm:$0xff] }
 0x12d   : > { %1211 = vmatpush.msra.mxu2 %v911_v50  ;;  %1231 = vmatpush.msra.mxu3 %v912_v51  ;;  %v854_v24 = vld [vmem:[%s2398_s29 + $0x518] sm:$0xff]  ;;  %v855_v26 = vld [vmem:[%s2398_s29 + $0x520] sm:$0xff]  ;;  %v856_v27 = vld [vmem:[%s2398_s29 + $0x528] sm:$0xff] }
 0x12e   : > { %1774 = vmatmul.msk.f32.vlgmr.msra.gmra.mxu0 %vm999_vm0, %v2452_v33  ;;  %1192 = vmatpush.msra.mxu1 %v880_v52  ;;  %v824_v28 = vld [vmem:[%s2398_s29 + $0x428] sm:$0xff]  ;;  %v853_v29 = vld [vmem:[%s2398_s29 + $0x510] sm:$0xff]  ;;  %v826_v31 = vld [vmem:[%s2398_s29 + $0x438] sm:$0xff] }
 0x12f   : > { %1171 = vmatpush.msra.mxu0 %v909_v53  ;;  %1212 = vmatpush.msra.mxu2 %v881_v54  ;;  %v825_v30 = vld [vmem:[%s2398_s29 + $0x430] sm:$0xff]  ;;  %v794_v32 = vld [vmem:[%s2398_s29 + $0x338] sm:$0xff]  ;;  %v823_v34 = vld [vmem:[%s2398_s29 + $0x420] sm:$0xff] }
 0x130   : > { %1232 = vmatpush.msra.mxu3 %v882_v55  ;;  %1193 = vmatpush.msra.mxu1 %v850_v56  ;;  %v795_v35 = vld [vmem:[%s2398_s29 + $0x340] sm:$0xff]  ;;  %v796_v36 = vld [vmem:[%s2398_s29 + $0x348] sm:$0xff]  ;;  %v793_v37 = vld [vmem:[%s2398_s29 + $0x330] sm:$0xff] }
 0x131   : > { %1172 = vmatpush.msra.mxu0 %v879_v57  ;;  %1213 = vmatpush.msra.mxu2 %v851_v58  ;;  %v764_v38 = vld [vmem:[%s2398_s29 + $0x248] sm:$0xff]  ;;  %v765_v39 = vld [vmem:[%s2398_s29 + $0x250] sm:$0xff]  ;;  %v766_v40 = vld [vmem:[%s2398_s29 + $0x258] sm:$0xff] }
 0x132   : > { %1233 = vmatpush.msra.mxu3 %v852_v59  ;;  %1194 = vmatpush.msra.mxu1 %v820_v60  ;;  %v763_v41 = vld [vmem:[%s2398_s29 + $0x240] sm:$0xff]  ;;  %v734_v42 = vld [vmem:[%s2398_s29 + $0x158] sm:$0xff]  ;;  %v736_v44 = vld [vmem:[%s2398_s29 + $0x168] sm:$0xff] }
 0x133   : > { %1173 = vmatpush.msra.mxu0 %v849_v61  ;;  %1214 = vmatpush.msra.mxu2 %v821_v62  ;;  %v735_v43 = vld [vmem:[%s2398_s29 + $0x160] sm:$0xff]  ;;  %v733_v45 = vld [vmem:[%s2398_s29 + $0x150] sm:$0xff]  ;;  %v704_v46 = vld [vmem:[%s2398_s29 + $0x68] sm:$0xff] }
 0x134   : > { %1234 = vmatpush.msra.mxu3 %v822_v63  ;;  %1195 = vmatpush.msra.mxu1 %v790_v0  ;;  %v705_v47 = vld [vmem:[%s2398_s29 + $0x70] sm:$0xff]  ;;  %v706_v48 = vld [vmem:[%s2398_s29 + $0x78] sm:$0xff]  ;;  %v703_v50 = vld [vmem:[%s2398_s29 + $0x60] sm:$0xff] }
 0x135   : > { %1174 = vmatpush.msra.mxu0 %v819_v1  ;;  %1780 = vmatmul.msk.f32.vlgmr.msrb.gmra.mxu2 %vm999_vm0, %v2452_v33  ;;  %v918_v49 = vld [vmem:[%s2398_s29 + $0x718] sm:$0xff]  ;;  %v919_v51 = vld [vmem:[%s2398_s29 + $0x720] sm:$0xff]  ;;  %v920_v52 = vld [vmem:[%s2398_s29 + $0x728] sm:$0xff] }
 0x136   : > { %1781 = vmatmul.msk.f32.vlgmr.msrb.gmra.mxu3 %vm999_vm0, %v2452_v33  ;;  %1215 = vmatpush.msra.mxu2 %v791_v2  ;;  %v888_v53 = vld [vmem:[%s2398_s29 + $0x628] sm:$0xff]  ;;  %v917_v54 = vld [vmem:[%s2398_s29 + $0x710] sm:$0xff]  ;;  %v890_v56 = vld [vmem:[%s2398_s29 + $0x638] sm:$0xff] }
 0x137   : > { %1235 = vmatpush.msra.mxu3 %v792_v3  ;;  %1175 = vmatpush.msra.mxu0 %v789_v4  ;;  %v889_v55 = vld [vmem:[%s2398_s29 + $0x630] sm:$0xff]  ;;  %v858_v57 = vld [vmem:[%s2398_s29 + $0x538] sm:$0xff]  ;;  %v887_v58 = vld [vmem:[%s2398_s29 + $0x620] sm:$0xff] }
 0x138   : > { %1196 = vmatpush.msra.mxu1 %v760_v5  ;;  %1216 = vmatpush.msra.mxu2 %v761_v6  ;;  %v859_v59 = vld [vmem:[%s2398_s29 + $0x540] sm:$0xff]  ;;  %v860_v60 = vld [vmem:[%s2398_s29 + $0x548] sm:$0xff]  ;;  %v857_v62 = vld [vmem:[%s2398_s29 + $0x530] sm:$0xff] }
 0x139   : > { %1236 = vmatpush.msra.mxu3 %v762_v7  ;;  %1176 = vmatpush.msra.mxu0 %v759_v8  ;;  %v828_v61 = vld [vmem:[%s2398_s29 + $0x448] sm:$0xff]  ;;  %v829_v63 = vld [vmem:[%s2398_s29 + $0x450] sm:$0xff]  ;;  %v830_v0 = vld [vmem:[%s2398_s29 + $0x458] sm:$0xff] }
 0x13a   : > { %1197 = vmatpush.msra.mxu1 %v730_v9  ;;  %1217 = vmatpush.msra.mxu2 %v731_v10  ;;  %v798_v1 = vld [vmem:[%s2398_s29 + $0x358] sm:$0xff]  ;;  %v827_v2 = vld [vmem:[%s2398_s29 + $0x440] sm:$0xff]  ;;  %v800_v4 = vld [vmem:[%s2398_s29 + $0x368] sm:$0xff] }
 0x13b   : > { %1237 = vmatpush.msra.mxu3 %v732_v11  ;;  %1177 = vmatpush.msra.mxu0 %v729_v12  ;;  %v799_v3 = vld [vmem:[%s2398_s29 + $0x360] sm:$0xff]  ;;  %v797_v5 = vld [vmem:[%s2398_s29 + $0x350] sm:$0xff]  ;;  %v768_v6 = vld [vmem:[%s2398_s29 + $0x268] sm:$0xff] }
 0x13c   : > { %1198 = vmatpush.msra.mxu1 %v700_v13  ;;  %1218 = vmatpush.msra.mxu2 %v701_v14  ;;  %v769_v7 = vld [vmem:[%s2398_s29 + $0x270] sm:$0xff]  ;;  %v770_v8 = vld [vmem:[%s2398_s29 + $0x278] sm:$0xff]  ;;  %v767_v9 = vld [vmem:[%s2398_s29 + $0x260] sm:$0xff] }
 0x13d   : > { %1779 = vmatmul.msk.f32.vlgmr.msrb.gmra.mxu1 %vm999_vm0, %v2452_v33  ;;  %1238 = vmatpush.msra.mxu3 %v702_v15  ;;  %v738_v10 = vld [vmem:[%s2398_s29 + $0x178] sm:$0xff]  ;;  %v739_v11 = vld [vmem:[%s2398_s29 + $0x180] sm:$0xff]  ;;  %v740_v12 = vld [vmem:[%s2398_s29 + $0x188] sm:$0xff] }
 0x13e   : > { %1271 = vmatpush.msrb.mxu1 %v914_v16  ;;  %1178 = vmatpush.msra.mxu0 %v699_v17  ;;  %v737_v13 = vld [vmem:[%s2398_s29 + $0x170] sm:$0xff]  ;;  %v708_v14 = vld [vmem:[%s2398_s29 + $0x88] sm:$0xff]  ;;  %v710_v16 = vld [vmem:[%s2398_s29 + $0x98] sm:$0xff] }
 0x13f   : > { %1291 = vmatpush.msrb.mxu2 %v915_v18  ;;  %1311 = vmatpush.msrb.mxu3 %v916_v19  ;;  %v709_v15 = vld [vmem:[%s2398_s29 + $0x90] sm:$0xff]  ;;  %v922_v17 = vld [vmem:[%s2398_s29 + $0x738] sm:$0xff]  ;;  %v707_v18 = vld [vmem:[%s2398_s29 + $0x80] sm:$0xff] }
 0x140   : > { %1778 = vmatmul.msk.f32.vlgmr.msrb.gmra.mxu0 %vm999_vm0, %v2452_v33  ;;  %1272 = vmatpush.msrb.mxu1 %v884_v20  ;;  %v923_v19 = vld [vmem:[%s2398_s29 + $0x740] sm:$0xff]  ;;  %v924_v20 = vld [vmem:[%s2398_s29 + $0x748] sm:$0xff] }
 0x141   : > { %1251 = vmatpush.msrb.mxu0 %v913_v21  ;;  %1292 = vmatpush.msrb.mxu2 %v885_v22  ;;  %v892_v21 = vld [vmem:[%s2398_s29 + $0x648] sm:$0xff]  ;;  %v921_v22 = vld [vmem:[%s2398_s29 + $0x730] sm:$0xff] }
 0x142   : > { %1312 = vmatpush.msrb.mxu3 %v886_v23  ;;  %1273 = vmatpush.msrb.mxu1 %v854_v24  ;;  %v893_v23 = vld [vmem:[%s2398_s29 + $0x650] sm:$0xff]  ;;  %v894_v24 = vld [vmem:[%s2398_s29 + $0x658] sm:$0xff] }
 0x143   : > { %1252 = vmatpush.msrb.mxu0 %v883_v25  ;;  %1293 = vmatpush.msrb.mxu2 %v855_v26  ;;  %v862_v25 = vld [vmem:[%s2398_s29 + $0x558] sm:$0xff]  ;;  %v891_v26 = vld [vmem:[%s2398_s29 + $0x640] sm:$0xff] }
 0x144   : > { %1313 = vmatpush.msrb.mxu3 %v856_v27  ;;  %1274 = vmatpush.msrb.mxu1 %v824_v28  ;;  %v863_v27 = vld [vmem:[%s2398_s29 + $0x560] sm:$0xff]  ;;  %v864_v28 = vld [vmem:[%s2398_s29 + $0x568] sm:$0xff] }
 0x145   : > { %1253 = vmatpush.msrb.mxu0 %v853_v29  ;;  %1294 = vmatpush.msrb.mxu2 %v825_v30  ;;  %v832_v29 = vld [vmem:[%s2398_s29 + $0x468] sm:$0xff]  ;;  %v861_v30 = vld [vmem:[%s2398_s29 + $0x550] sm:$0xff] }
 0x146   : > { %1314 = vmatpush.msrb.mxu3 %v826_v31  ;;  %1275 = vmatpush.msrb.mxu1 %v794_v32  ;;  %v833_v31 = vld [vmem:[%s2398_s29 + $0x470] sm:$0xff]  ;;  %v834_v32 = vld [vmem:[%s2398_s29 + $0x478] sm:$0xff] }
 0x147   : > { %1254 = vmatpush.msrb.mxu0 %v823_v34  ;;  %1784 = vmatmul.msk.f32.vlgmr.msra.gmra.mxu2 %vm999_vm0, %v2452_v33  ;;  %v802_v34 = vld [vmem:[%s2398_s29 + $0x378] sm:$0xff] }
 0x148   : > { %1785 = vmatmul.msk.f32.vlgmr.msra.gmra.mxu3 %vm999_vm0, %v2452_v33  ;;  %1295 = vmatpush.msrb.mxu2 %v795_v35  ;;  %v831_v35 = vld [vmem:[%s2398_s29 + $0x460] sm:$0xff] }
 0x149   : > { %1315 = vmatpush.msrb.mxu3 %v796_v36  ;;  %1255 = vmatpush.msrb.mxu0 %v793_v37  ;;  %v803_v36 = vld [vmem:[%s2398_s29 + $0x380] sm:$0xff]  ;;  %v804_v37 = vld [vmem:[%s2398_s29 + $0x388] sm:$0xff] }
 0x14a   : > { %1276 = vmatpush.msrb.mxu1 %v764_v38  ;;  %1296 = vmatpush.msrb.mxu2 %v765_v39  ;;  %v801_v38 = vld [vmem:[%s2398_s29 + $0x370] sm:$0xff]  ;;  %v772_v39 = vld [vmem:[%s2398_s29 + $0x288] sm:$0xff] }
 0x14b   : > { %1316 = vmatpush.msrb.mxu3 %v766_v40  ;;  %1256 = vmatpush.msrb.mxu0 %v763_v41  ;;  %v773_v40 = vld [vmem:[%s2398_s29 + $0x290] sm:$0xff]  ;;  %v774_v41 = vld [vmem:[%s2398_s29 + $0x298] sm:$0xff] }
 0x14c   : > { %1277 = vmatpush.msrb.mxu1 %v734_v42  ;;  %1297 = vmatpush.msrb.mxu2 %v735_v43  ;;  %v771_v42 = vld [vmem:[%s2398_s29 + $0x280] sm:$0xff]  ;;  %v742_v43 = vld [vmem:[%s2398_s29 + $0x198] sm:$0xff] }
 0x14d   : > { %1317 = vmatpush.msrb.mxu3 %v736_v44  ;;  %1257 = vmatpush.msrb.mxu0 %v733_v45  ;;  %v743_v44 = vld [vmem:[%s2398_s29 + $0x1a0] sm:$0xff]  ;;  %v744_v45 = vld [vmem:[%s2398_s29 + $0x1a8] sm:$0xff] }
 0x14e   : > { %1278 = vmatpush.msrb.mxu1 %v704_v46  ;;  %1298 = vmatpush.msrb.mxu2 %v705_v47  ;;  %v741_v46 = vld [vmem:[%s2398_s29 + $0x190] sm:$0xff]  ;;  %v712_v47 = vld [vmem:[%s2398_s29 + $0xa8] sm:$0xff] }
 0x14f   : > { %1783 = vmatmul.msk.f32.vlgmr.msra.gmra.mxu1 %vm999_vm0, %v2452_v33  ;;  %1318 = vmatpush.msrb.mxu3 %v706_v48  ;;  %v713_v48 = vld [vmem:[%s2398_s29 + $0xb0] sm:$0xff] }
 0x150   : > { %1351 = vmatpush.msra.mxu1 %v918_v49  ;;  %1258 = vmatpush.msrb.mxu0 %v703_v50  ;;  %v714_v49 = vld [vmem:[%s2398_s29 + $0xb8] sm:$0xff] }
 0x151   : > { %1371 = vmatpush.msra.mxu2 %v919_v51  ;;  %1391 = vmatpush.msra.mxu3 %v920_v52  ;;  %v926_v50 = vld [vmem:[%s2398_s29 + $0x758] sm:$0xff]  ;;  %v711_v51 = vld [vmem:[%s2398_s29 + $0xa0] sm:$0xff] }
 0x152   : > { %1782 = vmatmul.msk.f32.vlgmr.msra.gmra.mxu0 %vm999_vm0, %v2452_v33  ;;  %1352 = vmatpush.msra.mxu1 %v888_v53  ;;  %v927_v52 = vld [vmem:[%s2398_s29 + $0x760] sm:$0xff]  ;;  %v928_v53 = vld [vmem:[%s2398_s29 + $0x768] sm:$0xff] }
 0x153   : > { %1331 = vmatpush.msra.mxu0 %v917_v54  ;;  %1372 = vmatpush.msra.mxu2 %v889_v55  ;;  %v896_v54 = vld [vmem:[%s2398_s29 + $0x668] sm:$0xff]  ;;  %v925_v55 = vld [vmem:[%s2398_s29 + $0x750] sm:$0xff] }
 0x154   : > { %1392 = vmatpush.msra.mxu3 %v890_v56  ;;  %1353 = vmatpush.msra.mxu1 %v858_v57  ;;  %v897_v56 = vld [vmem:[%s2398_s29 + $0x670] sm:$0xff]  ;;  %v898_v57 = vld [vmem:[%s2398_s29 + $0x678] sm:$0xff] }
 0x155   : > { %1332 = vmatpush.msra.mxu0 %v887_v58  ;;  %1373 = vmatpush.msra.mxu2 %v859_v59  ;;  %v866_v58 = vld [vmem:[%s2398_s29 + $0x578] sm:$0xff]  ;;  %v895_v59 = vld [vmem:[%s2398_s29 + $0x660] sm:$0xff] }
 0x156   : > { %1393 = vmatpush.msra.mxu3 %v860_v60  ;;  %1354 = vmatpush.msra.mxu1 %v828_v61  ;;  %v867_v60 = vld [vmem:[%s2398_s29 + $0x580] sm:$0xff]  ;;  %v868_v61 = vld [vmem:[%s2398_s29 + $0x588] sm:$0xff] }
 0x157   : > { %1333 = vmatpush.msra.mxu0 %v857_v62  ;;  %1374 = vmatpush.msra.mxu2 %v829_v63  ;;  %v836_v62 = vld [vmem:[%s2398_s29 + $0x488] sm:$0xff]  ;;  %v865_v63 = vld [vmem:[%s2398_s29 + $0x570] sm:$0xff] }
 0x158   : > { %1394 = vmatpush.msra.mxu3 %v830_v0  ;;  %1355 = vmatpush.msra.mxu1 %v798_v1  ;;  %v837_v0 = vld [vmem:[%s2398_s29 + $0x490] sm:$0xff]  ;;  %v838_v1 = vld [vmem:[%s2398_s29 + $0x498] sm:$0xff] }
 0x159   : > { %1334 = vmatpush.msra.mxu0 %v827_v2  ;;  %1788 = vmatmul.msk.f32.vlgmr.msrb.gmra.mxu2 %vm999_vm0, %v2452_v33  ;;  %v835_v2 = vld [vmem:[%s2398_s29 + $0x480] sm:$0xff] }
 0x15a   : > { %1789 = vmatmul.msk.f32.vlgmr.msrb.gmra.mxu3 %vm999_vm0, %v2452_v33  ;;  %1375 = vmatpush.msra.mxu2 %v799_v3  ;;  %v806_v3 = vld [vmem:[%s2398_s29 + $0x398] sm:$0xff] }
 0x15b   : > { %1395 = vmatpush.msra.mxu3 %v800_v4  ;;  %1335 = vmatpush.msra.mxu0 %v797_v5  ;;  %v807_v4 = vld [vmem:[%s2398_s29 + $0x3a0] sm:$0xff]  ;;  %v808_v5 = vld [vmem:[%s2398_s29 + $0x3a8] sm:$0xff] }
 0x15c   : > { %1356 = vmatpush.msra.mxu1 %v768_v6  ;;  %1376 = vmatpush.msra.mxu2 %v769_v7  ;;  %v805_v6 = vld [vmem:[%s2398_s29 + $0x390] sm:$0xff]  ;;  %v776_v7 = vld [vmem:[%s2398_s29 + $0x2a8] sm:$0xff] }
 0x15d   : > { %1396 = vmatpush.msra.mxu3 %v770_v8  ;;  %1336 = vmatpush.msra.mxu0 %v767_v9  ;;  %v777_v8 = vld [vmem:[%s2398_s29 + $0x2b0] sm:$0xff]  ;;  %v778_v9 = vld [vmem:[%s2398_s29 + $0x2b8] sm:$0xff] }
 0x15e   : > { %1357 = vmatpush.msra.mxu1 %v738_v10  ;;  %1377 = vmatpush.msra.mxu2 %v739_v11  ;;  %v775_v10 = vld [vmem:[%s2398_s29 + $0x2a0] sm:$0xff]  ;;  %v746_v11 = vld [vmem:[%s2398_s29 + $0x1b8] sm:$0xff] }
 0x15f   : > { %1397 = vmatpush.msra.mxu3 %v740_v12  ;;  %1337 = vmatpush.msra.mxu0 %v737_v13  ;;  %v747_v12 = vld [vmem:[%s2398_s29 + $0x1c0] sm:$0xff]  ;;  %v748_v13 = vld [vmem:[%s2398_s29 + $0x1c8] sm:$0xff] }
 0x160   : > { %1358 = vmatpush.msra.mxu1 %v708_v14  ;;  %1378 = vmatpush.msra.mxu2 %v709_v15  ;;  %v745_v14 = vld [vmem:[%s2398_s29 + $0x1b0] sm:$0xff]  ;;  %v716_v15 = vld [vmem:[%s2398_s29 + $0xc8] sm:$0xff] }
 0x161   : > { %1787 = vmatmul.msk.f32.vlgmr.msrb.gmra.mxu1 %vm999_vm0, %v2452_v33  ;;  %1398 = vmatpush.msra.mxu3 %v710_v16  ;;  %v717_v16 = vld [vmem:[%s2398_s29 + $0xd0] sm:$0xff] }
 0x162   : > { %1431 = vmatpush.msrb.mxu1 %v922_v17  ;;  %1338 = vmatpush.msra.mxu0 %v707_v18  ;;  %v718_v17 = vld [vmem:[%s2398_s29 + $0xd8] sm:$0xff] }
 0x163   : > { %1451 = vmatpush.msrb.mxu2 %v923_v19  ;;  %1471 = vmatpush.msrb.mxu3 %v924_v20  ;;  %v930_v18 = vld [vmem:[%s2398_s29 + $0x778] sm:$0xff]  ;;  %v715_v19 = vld [vmem:[%s2398_s29 + $0xc0] sm:$0xff]  ;;  %v929_v20 = vld [vmem:[%s2398_s29 + $0x770] sm:$0xff] }
 0x164   : > { %1786 = vmatmul.msk.f32.vlgmr.msrb.gmra.mxu0 %vm999_vm0, %v2452_v33  ;;  %1432 = vmatpush.msrb.mxu1 %v892_v21  ;;  %v900_v21 = vld [vmem:[%s2398_s29 + $0x688] sm:$0xff] }
 0x165   : > { %1411 = vmatpush.msrb.mxu0 %v921_v22  ;;  %1452 = vmatpush.msrb.mxu2 %v893_v23  ;;  %v899_v22 = vld [vmem:[%s2398_s29 + $0x680] sm:$0xff]  ;;  %v870_v23 = vld [vmem:[%s2398_s29 + $0x598] sm:$0xff] }
 0x166   : > { %1472 = vmatpush.msrb.mxu3 %v894_v24  ;;  %1433 = vmatpush.msrb.mxu1 %v862_v25  ;;  %v869_v24 = vld [vmem:[%s2398_s29 + $0x590] sm:$0xff]  ;;  %v840_v25 = vld [vmem:[%s2398_s29 + $0x4a8] sm:$0xff] }
 0x167   : > { %1412 = vmatpush.msrb.mxu0 %v891_v26  ;;  %1453 = vmatpush.msrb.mxu2 %v863_v27  ;;  %v839_v26 = vld [vmem:[%s2398_s29 + $0x4a0] sm:$0xff]  ;;  %v810_v27 = vld [vmem:[%s2398_s29 + $0x3b8] sm:$0xff] }
 0x168   : > { %1473 = vmatpush.msrb.mxu3 %v864_v28  ;;  %1434 = vmatpush.msrb.mxu1 %v832_v29  ;;  %v809_v28 = vld [vmem:[%s2398_s29 + $0x3b0] sm:$0xff]  ;;  %v780_v29 = vld [vmem:[%s2398_s29 + $0x2c8] sm:$0xff] }
 0x169   : > { %1413 = vmatpush.msrb.mxu0 %v861_v30  ;;  %1454 = vmatpush.msrb.mxu2 %v833_v31  ;;  %v779_v30 = vld [vmem:[%s2398_s29 + $0x2c0] sm:$0xff]  ;;  %v750_v31 = vld [vmem:[%s2398_s29 + $0x1d8] sm:$0xff] }
 0x16a   : > { %1474 = vmatpush.msrb.mxu3 %v834_v32  ;;  %1435 = vmatpush.msrb.mxu1 %v802_v34  ;;  %v749_v32 = vld [vmem:[%s2398_s29 + $0x1d0] sm:$0xff]  ;;  %v720_v34 = vld [vmem:[%s2398_s29 + $0xe8] sm:$0xff] }
 0x16b   : > { %1414 = vmatpush.msrb.mxu0 %v831_v35  ;;  %1792 = vmatmul.msk.f32.vlgmr.msra.gmra.mxu2 %vm999_vm0, %v2452_v33  ;;  %v719_v35 = vld [vmem:[%s2398_s29 + $0xe0] sm:$0xff] }
 0x16c   : > { %1793 = vmatmul.msk.f32.vlgmr.msra.gmra.mxu3 %vm999_vm0, %v2452_v33  ;;  %1455 = vmatpush.msrb.mxu2 %v803_v36  ;;  %v931_v36 = vld [vmem:[%s2710_s8] sm:$0xff] }
 0x16d   : > { %1475 = vmatpush.msrb.mxu3 %v804_v37  ;;  %1415 = vmatpush.msrb.mxu0 %v801_v38  ;;  %v941_v37 = vperm.slane %v931_v36, 2  ;;  %v942_v38 = vperm.slane %v931_v36, 3 }
 0x16e   : > { %1436 = vmatpush.msrb.mxu1 %v772_v39  ;;  %1456 = vmatpush.msrb.mxu2 %v773_v40  ;;  %v940_v39 = vperm.slane %v931_v36, 1 }
 0x16f   : > { %1476 = vmatpush.msrb.mxu3 %v774_v41  ;;  %1416 = vmatpush.msrb.mxu0 %v771_v42 }
 0x170   : > { %1437 = vmatpush.msrb.mxu1 %v742_v43  ;;  %1457 = vmatpush.msrb.mxu2 %v743_v44 }
 0x171   : > { %1477 = vmatpush.msrb.mxu3 %v744_v45  ;;  %1417 = vmatpush.msrb.mxu0 %v741_v46  ;;  %v939_v45 = vperm.slane %v931_v36, 0 }
 0x172   : > { %1438 = vmatpush.msrb.mxu1 %v712_v47  ;;  %1458 = vmatpush.msrb.mxu2 %v713_v48 }
 0x173   : > { %1791 = vmatmul.msk.f32.vlgmr.msra.gmra.mxu1 %vm999_vm0, %v2452_v33  ;;  %1478 = vmatpush.msrb.mxu3 %v714_v49 }
 0x174   : > { %1511 = vmatpush.msra.mxu1 %v926_v50  ;;  %1418 = vmatpush.msrb.mxu0 %v711_v51 }
 0x175   : > { %1531 = vmatpush.msra.mxu2 %v927_v52  ;;  %1551 = vmatpush.msra.mxu3 %v928_v53 }
 0x176   : > { %1790 = vmatmul.msk.f32.vlgmr.msra.gmra.mxu0 %vm999_vm0, %v2452_v33  ;;  %1512 = vmatpush.msra.mxu1 %v896_v54  ;;  %v945_v54 = vperm.slane %v931_v36, 6 }
 0x177   : > { %1491 = vmatpush.msra.mxu0 %v925_v55  ;;  %1532 = vmatpush.msra.mxu2 %v897_v56  ;;  %v946_v55 = vperm.slane %v931_v36, 7  ;;  %v944_v56 = vperm.slane %v931_v36, 5 }
 0x178   : > { %1552 = vmatpush.msra.mxu3 %v898_v57  ;;  %1513 = vmatpush.msra.mxu1 %v866_v58 }
 0x179   : > { %1492 = vmatpush.msra.mxu0 %v895_v59  ;;  %1533 = vmatpush.msra.mxu2 %v867_v60 }
 0x17a   : > { %1553 = vmatpush.msra.mxu3 %v868_v61  ;;  %1514 = vmatpush.msra.mxu1 %v836_v62  ;;  %v943_v62 = vperm.slane %v931_v36, 4 }
 0x17b   : > { %1493 = vmatpush.msra.mxu0 %v865_v63  ;;  %1534 = vmatpush.msra.mxu2 %v837_v0 }
 0x17c   : > { %1554 = vmatpush.msra.mxu3 %v838_v1  ;;  %1796 = vmatmul.msk.f32.vlgmr.msrb.gmra.mxu2 %vm999_vm0, %v2452_v33 }
 0x17d   : > { %1797 = vmatmul.msk.f32.vlgmr.msrb.gmra.mxu3 %vm999_vm0, %v2452_v33  ;;  %1494 = vmatpush.msra.mxu0 %v835_v2 }
 0x17e   : > { %1515 = vmatpush.msra.mxu1 %v806_v3  ;;  %1535 = vmatpush.msra.mxu2 %v807_v4 }
 0x17f   : > { %1555 = vmatpush.msra.mxu3 %v808_v5  ;;  %1495 = vmatpush.msra.mxu0 %v805_v6 }
 0x180   : > { %1516 = vmatpush.msra.mxu1 %v776_v7  ;;  %1536 = vmatpush.msra.mxu2 %v777_v8  ;;  %v932_v8 = vld [vmem:[%s2710_s8 + $0x8] sm:$0xff] }
 0x181   : > { %1556 = vmatpush.msra.mxu3 %v778_v9  ;;  %1496 = vmatpush.msra.mxu0 %v775_v10  ;;  %v949_v9 = vperm.slane %v932_v8, 2  ;;  %v950_v10 = vperm.slane %v932_v8, 3  ;;  %v951_v36 = vperm.slane %v932_v8, 4 }
 0x182   : > { %1517 = vmatpush.msra.mxu1 %v746_v11  ;;  %1537 = vmatpush.msra.mxu2 %v747_v12  ;;  %v948_v11 = vperm.slane %v932_v8, 1 }
 0x183   : > { %1557 = vmatpush.msra.mxu3 %v748_v13  ;;  %1795 = vmatmul.msk.f32.vlgmr.msrb.gmra.mxu1 %vm999_vm0, %v2452_v33 }
 0x184   : > { %1497 = vmatpush.msra.mxu0 %v745_v14  ;;  %1518 = vmatpush.msra.mxu1 %v716_v15 }
 0x185   : > { %1538 = vmatpush.msra.mxu2 %v717_v16  ;;  %1558 = vmatpush.msra.mxu3 %v718_v17  ;;  %v947_v17 = vperm.slane %v932_v8, 0 }
 0x186   : > { %1591 = vmatpush.msrb.mxu1 %v930_v18  ;;  %1794 = vmatmul.msk.f32.vlgmr.msrb.gmra.mxu0 %vm999_vm0, %v2452_v33 }
 0x187   : > { %1498 = vmatpush.msra.mxu0 %v715_v19  ;;  %1800 = vmatmul.msk.f32.vlgmr.msra.gmra.mxu2 %vm999_vm0, %v2452_v33 }
 0x188   : > { %1801 = vmatmul.msk.f32.vlgmr.msra.gmra.mxu3 %vm999_vm0, %v2452_v33  ;;  %1592 = vmatpush.msrb.mxu1 %v900_v21 }
 0x189   : > { %1571 = vmatpush.msrb.mxu0 %v929_v20 }
 0x18a   : > { %1593 = vmatpush.msrb.mxu1 %v870_v23 }
 0x18b   : > { %1572 = vmatpush.msrb.mxu0 %v899_v22  ;;  %1799 = vmatmul.msk.f32.vlgmr.msra.gmra.mxu1 %vm999_vm0, %v2452_v33 }
 0x18c   : > { %1594 = vmatpush.msrb.mxu1 %v840_v25 }
 0x18d   : > { %1573 = vmatpush.msrb.mxu0 %v869_v24 }
 0x18e   : > { %1595 = vmatpush.msrb.mxu1 %v810_v27  ;;  %1798 = vmatmul.msk.f32.vlgmr.msra.gmra.mxu0 %vm999_vm0, %v2452_v33  ;;  %v953_v27 = vperm.slane %v932_v8, 6 }
 0x18f   : > { %1574 = vmatpush.msrb.mxu0 %v839_v26 }
 0x190   : > { %1596 = vmatpush.msrb.mxu1 %v780_v29  ;;  %v952_v29 = vperm.slane %v932_v8, 5 }
 0x191   : > { %1575 = vmatpush.msrb.mxu0 %v809_v28  ;;  %v954_v28 = vperm.slane %v932_v8, 7 }
 0x192   : > { %1597 = vmatpush.msrb.mxu1 %v750_v31 }
 0x193   : > { %1576 = vmatpush.msrb.mxu0 %v779_v30 }
 0x194   : > { %1598 = vmatpush.msrb.mxu1 %v720_v34 }
 0x195   : > { %1577 = vmatpush.msrb.mxu0 %v749_v32  ;;  %1803 = vmatmul.msk.f32.vlgmr.msrb.gmra.mxu1 %vm999_vm0, %v2452_v33 }
 0x197   : > { %1578 = vmatpush.msrb.mxu0 %v719_v35 }
 0x198   : > { %1802 = vmatmul.msk.f32.vlgmr.msrb.gmra.mxu0 %vm999_vm0, %v2452_v33 }
 0x1a6   : > { %v1060_v40 = vpop.f32.mrf.mxu2 }
 0x1a7   : > { %v1061_v41 = vadd.f32 %v1060_v40, %v941_v37  ;;  %v1080_v42 = vpop.f32.mrf.mxu3 }
 0x1a8   : > { %v1040_v43 = vpop.f32.mrf.mxu1  ;;  %v1081_v44 = vadd.f32 %v1080_v42, %v942_v38 }
 0x1a9   : > { %v1041_v46 = vadd.f32 %v1040_v43, %v940_v39  ;;  %v1634_v47 = vrot.slane %v1061_v41, 4 }
 0x1aa   : > { %v1635_v33 = vrot.slane %v1081_v44, 2 }
 0x1ab   : > { %v1633_v48 = vrot.slane %v1041_v46, 6  ;;  %v1020_v49 = vpop.f32.mrf.mxu0  ;;  %v933_v46 = vld [vmem:[%s2710_s8 + $0x10] sm:$0xff] }
 0x1ac   : > { %v1658_v50 = vsel %vm1657_vm1, %v1634_v47, %v1635_v33  ;;  %v1021_v51 = vadd.f32 %v1020_v49, %v939_v45  ;;  %v957_v47 = vperm.slane %v933_v46, 2  ;;  %v958_v33 = vperm.slane %v933_v46, 3 }
 0x1ae   : > { %v1656_v52 = vsel %vm1655_vm2, %v1021_v51, %v1633_v48  ;;  %v956_v48 = vperm.slane %v933_v46, 1 }
 0x1af   : > { %v1660_v53 = vsel %vm1659_vm3, %v1656_v52, %v1658_v50 }
 0x1b0   : > { %1688 = vst [vmem:[%s2717_s12] sm:$0xff] %v1660_v53 }
 0x1b8   : > { %v1140_v57 = vpop.f32.mrf.mxu2 }
 0x1b9   : > { %v1141_v58 = vadd.f32 %v1140_v57, %v945_v54  ;;  %v1160_v59 = vpop.f32.mrf.mxu3  ;;  %v955_v54 = vperm.slane %v933_v46, 0 }
 0x1ba   : > { %v1120_v60 = vpop.f32.mrf.mxu1  ;;  %v1161_v61 = vadd.f32 %v1160_v59, %v946_v55 }
 0x1bb   : > { %v1121_v63 = vadd.f32 %v1120_v60, %v944_v56  ;;  %v1637_v0 = vrot.slane %v1141_v58, 4 }
 0x1bc   : > { %v1638_v1 = vrot.slane %v1161_v61, 2 }
 0x1bd   : > { %v1636_v2 = vrot.slane %v1121_v63, 6  ;;  %v1100_v3 = vpop.f32.mrf.mxu0 }
 0x1be   : > { %v1662_v4 = vsel %vm1657_vm1, %v1637_v0, %v1638_v1  ;;  %v1101_v5 = vadd.f32 %v1100_v3, %v943_v62  ;;  %v961_v0 = vperm.slane %v933_v46, 6  ;;  %v960_v1 = vperm.slane %v933_v46, 5 }
 0x1c0   : > { %v1661_v6 = vsel %vm1655_vm2, %v1101_v5, %v1636_v2  ;;  %v962_v2 = vperm.slane %v933_v46, 7 }
 0x1c1   : > { %v1663_v7 = vsel %vm1659_vm3, %v1661_v6, %v1662_v4 }
 0x1c2   : > { %1689 = vst [vmem:[%s2717_s12 + $0x8] sm:$0xff] %v1663_v7  ;;  %v959_v7 = vperm.slane %v933_v46, 4 }
 0x1ca   : > { %v1220_v12 = vpop.f32.mrf.mxu2 }
 0x1cb   : > { %v1221_v13 = vadd.f32 %v1220_v12, %v949_v9  ;;  %v1240_v14 = vpop.f32.mrf.mxu3 }
 0x1cc   : > { %v1200_v15 = vpop.f32.mrf.mxu1  ;;  %v1241_v16 = vadd.f32 %v1240_v14, %v950_v10  ;;  %v934_v14 = vld [vmem:[%s2710_s8 + $0x18] sm:$0x3f] }
 0x1cd   : > { %v1201_v18 = vadd.f32 %v1200_v15, %v948_v11  ;;  %v1640_v19 = vrot.slane %v1221_v13, 4 }
 0x1ce   : > { %v1641_v20 = vrot.slane %v1241_v16, 2 }
 0x1cf   : > { %v1639_v21 = vrot.slane %v1201_v18, 6  ;;  %v1180_v22 = vpop.f32.mrf.mxu0  ;;  %v964_v18 = vperm.slane %v934_v14, 1 }
 0x1d0   : > { %v1665_v23 = vsel %vm1657_vm1, %v1640_v19, %v1641_v20  ;;  %v1181_v24 = vadd.f32 %v1180_v22, %v947_v17  ;;  %v965_v20 = vperm.slane %v934_v14, 2 }
 0x1d2   : > { %v1664_v25 = vsel %vm1655_vm2, %v1181_v24, %v1639_v21  ;;  %v966_v21 = vperm.slane %v934_v14, 3 }
 0x1d3   : > { %v1666_v26 = vsel %vm1659_vm3, %v1664_v25, %v1665_v23  ;;  %v963_v23 = vperm.slane %v934_v14, 0 }
 0x1d4   : > { %1690 = vst [vmem:[%s2717_s12 + $0x10] sm:$0xff] %v1666_v26 }
 0x1dc   : > { %v1300_v30 = vpop.f32.mrf.mxu2 }
 0x1dd   : > { %v1301_v31 = vadd.f32 %v1300_v30, %v953_v27  ;;  %v1320_v32 = vpop.f32.mrf.mxu3 }
 0x1de   : > { %v1280_v34 = vpop.f32.mrf.mxu1  ;;  %v1321_v35 = vadd.f32 %v1320_v32, %v954_v28 }
 0x1df   : > { %v1281_v37 = vadd.f32 %v1280_v34, %v952_v29  ;;  %v1643_v38 = vrot.slane %v1301_v31, 4 }
 0x1e0   : > { %v1644_v39 = vrot.slane %v1321_v35, 2 }
 0x1e1   : > { %v1642_v40 = vrot.slane %v1281_v37, 6  ;;  %v1260_v41 = vpop.f32.mrf.mxu0  ;;  %v968_v37 = vperm.slane %v934_v14, 5 }
 0x1e2   : > { %v1668_v42 = vsel %vm1657_vm1, %v1643_v38, %v1644_v39  ;;  %v1261_v43 = vadd.f32 %v1260_v41, %v951_v36  ;;  %v967_v39 = vperm.slane %v934_v14, 4 }
 0x1e4   : > { %v1667_v44 = vsel %vm1655_vm2, %v1261_v43, %v1642_v40 }
 0x1e5   : > { %v1669_v45 = vsel %vm1659_vm3, %v1667_v44, %v1668_v42 }
 0x1e6   : > { %1691 = vst [vmem:[%s2717_s12 + $0x18] sm:$0xff] %v1669_v45 }
 0x1ee   : > { %v1380_v49 = vpop.f32.mrf.mxu2 }
 0x1ef   : > { %v1381_v50 = vadd.f32 %v1380_v49, %v957_v47  ;;  %v1400_v51 = vpop.f32.mrf.mxu3 }
 0x1f0   : > { %v1360_v52 = vpop.f32.mrf.mxu1  ;;  %v1401_v53 = vadd.f32 %v1400_v51, %v958_v33 }
 0x1f1   : > { %v1361_v55 = vadd.f32 %v1360_v52, %v956_v48  ;;  %v1646_v56 = vrot.slane %v1381_v50, 4 }
 0x1f2   : > { %v1647_v57 = vrot.slane %v1401_v53, 2 }
 0x1f3   : > { %v1645_v58 = vrot.slane %v1361_v55, 6  ;;  %v1340_v59 = vpop.f32.mrf.mxu0 }
 0x1f4   : > { %v1671_v60 = vsel %vm1657_vm1, %v1646_v56, %v1647_v57  ;;  %v1341_v61 = vadd.f32 %v1340_v59, %v955_v54 }
 0x1f6   : > { %v1670_v62 = vsel %vm1655_vm2, %v1341_v61, %v1645_v58 }
 0x1f7   : > { %v1672_v63 = vsel %vm1659_vm3, %v1670_v62, %v1671_v60 }
 0x1f8   : > { %1692 = vst [vmem:[%s2717_s12 + $0x20] sm:$0xff] %v1672_v63 }
 0x1ff   : > { %v1460_v3 = vpop.f32.mrf.mxu2 }
 0x200   : > { %v1440_v4 = vpop.f32.mrf.mxu1  ;;  %v1461_v5 = vadd.f32 %v1460_v3, %v961_v0  ;;  %v1480_v6 = vpop.f32.mrf.mxu3 }
 0x201   : > { %v1441_v8 = vadd.f32 %v1440_v4, %v960_v1  ;;  %v1481_v9 = vadd.f32 %v1480_v6, %v962_v2 }
 0x202   : > { %v1649_v10 = vrot.slane %v1461_v5, 4 }
 0x203   : > { %v1648_v11 = vrot.slane %v1441_v8, 6  ;;  %v1650_v12 = vrot.slane %v1481_v9, 2  ;;  %v1420_v13 = vpop.f32.mrf.mxu0 }
 0x204   : > { %v1421_v15 = vadd.f32 %v1420_v13, %v959_v7 }
 0x205   : > { %v1674_v16 = vsel %vm1657_vm1, %v1649_v10, %v1650_v12 }
 0x206   : > { %v1673_v17 = vsel %vm1655_vm2, %v1421_v15, %v1648_v11 }
 0x207   : > { %v1675_v19 = vsel %vm1659_vm3, %v1673_v17, %v1674_v16 }
 0x208   : > { %1693 = vst [vmem:[%s2717_s12 + $0x28] sm:$0xff] %v1675_v19  ;;  %v1520_v22 = vpop.f32.mrf.mxu1 }
 0x209   : > { %v1521_v24 = vadd.f32 %v1520_v22, %v964_v18 }
 0x20a   : > { %v1540_v25 = vpop.f32.mrf.mxu2 }
 0x20b   : > { %v1541_v26 = vadd.f32 %v1540_v25, %v965_v20  ;;  %v1560_v27 = vpop.f32.mrf.mxu3  ;;  %v1651_v28 = vrot.slane %v1521_v24, 6  ;;  %v1500_v30 = vpop.f32.mrf.mxu0 }
 0x20c   : > { %v1561_v29 = vadd.f32 %v1560_v27, %v966_v21  ;;  %v1501_v32 = vadd.f32 %v1500_v30, %v963_v23 }
 0x20d   : > { %v1652_v31 = vrot.slane %v1541_v26, 4 }
 0x20e   : > { %v1653_v34 = vrot.slane %v1561_v29, 2  ;;  %v1676_v35 = vsel %vm1655_vm2, %v1501_v32, %v1651_v28 }
 0x210   : > { %v1677_v36 = vsel %vm1657_vm1, %v1652_v31, %v1653_v34 }
 0x211   : > { %v1678_v38 = vsel %vm1659_vm3, %v1676_v35, %v1677_v36 }
 0x212   : > { %1694 = vst [vmem:[%s2717_s12 + $0x30] sm:$0xff] %v1678_v38  ;;  %v1600_v40 = vpop.f32.mrf.mxu1 }
 0x213   : > { %v1601_v41 = vadd.f32 %v1600_v40, %v968_v37 }
 0x215   : > { %v1580_v42 = vpop.f32.mrf.mxu0  ;;  %v1654_v44 = vrot.slane %v1601_v41, 6 }
 0x216   : > { %v1581_v43 = vadd.f32 %v1580_v42, %v967_v39 }
 0x218   : > { %v1679_v45 = vsel %vm1655_vm2, %v1581_v43, %v1654_v44 }
 0x219   : > { %1695 = vst [vmem:[%s2717_s12 + $0x38] sm:$0xf] %v1679_v45 }
 0x21a PF: > { %p10_p9 = scmp.ge.s32.totalorder %s1894_s16, 6   ;;  %s2765_s12 = smov %s1851_s13 }
 0x21b   : > { %s2766_s13 = smov %s1903_s19  ;;  %s2767_s14 = smov %s1894_s16 }
 0x21c   :  { %12 = sbr.rel (!%p10_p9) target bundleno = 2 (0x2), region = 93 }

</bundles_post_ra>
